<compile_context>
chip_gen: v7x
topology: tpu7x:2x2x1
jax: 0.10.0
libtpu: 0.0.40
codegen_flags: <defaults>
</compile_context>

<pallas_src>
import functools

import jax
import jax.numpy as jnp
from jax import lax
from jax.experimental import pallas as pl
from jax.experimental.pallas import tpu as pltpu

LN_EPS = 1e-5   # torch.nn.LayerNorm default eps
HIDDEN = 64     # local_nn output channels per conv


def _point_encoder_kernel(r1, r2,
                          pos_t_ref, batch_t_ref,            # target-row block
                          posT_ref, batchT_ref,              # full source-side arrays
                          a1T_ref, a1b_ref, m2a1_ref,        # conv1 source precompute
                          a2T_ref, a2b_ref, m2a2_ref,        # conv2 source precompute
                          wp1_ref, g1_ref, be1_ref,          # conv1 target-side params
                          wp2_ref, g2_ref, be2_ref,          # conv2 target-side params
                          wm1_ref, wm2_ref, bm_ref,          # final Linear (split, padded)
                          out_ref):
    C = HIDDEN
    f32 = jnp.float32

    pos_t = pos_t_ref[...]        # (TM, 2)   target positions (this block)
    batch_t = batch_t_ref[...]    # (TM, 1)   target graph ids (int32)
    posT = posT_ref[...]          # (2, Np)   all positions, transposed
    batchT = batchT_ref[...]      # (1, Np)   all graph ids

    # ---- pairwise geometry for this block of target rows (shared by both convs)
    d0 = pos_t[:, 0:1] - posT[0:1, :]
    d1 = pos_t[:, 1:2] - posT[1:2, :]
    dist2 = d0 * d0 + d1 * d1                         # (TM, Np)
    same = batch_t == batchT                          # (TM, Np) bool

    def conv_half(r, aT_ref, ab_ref, m2a_ref, wp_ref, g_ref, be_ref):
        # radius(pos, pos, r) neighborhood (same graph, dist <= r); self-loops kept
        # (matches remove_self_loops + add_self_loops).
        # TODO(synk): max_num_neighbors=128 cap of torch_cluster.radius not enforced.
        sel = jnp.logical_and(dist2 <= r * r, same)                       # predicate only
        cnt = jnp.sum(jnp.where(sel, 1.0, 0.0), axis=1, keepdims=True)    # (TM,1) >= 1

        # Target-side local_nn term hp[i] = pos_i @ Wp via VPU outer product (no K=2 MXU).
        wp = wp_ref[...]                                                  # (2, C)
        hp = pos_t[:, 0:1] * wp[0:1, :] + pos_t[:, 1:2] * wp[1:2, :]      # (TM, C)
        c = hp - jnp.mean(hp, axis=1, keepdims=True)                      # centered
        m2c = jnp.mean(c * c, axis=1, keepdims=True)                      # (TM, 1)

        # Variance of h[i,j,:] = m2a[j] + m2c[i] - (2/C) sum_k a[j,k] c[i,k];
        # one K=C MXU matmul against the precomputed, pre-transposed aT (C, Np).
        cross = jnp.dot(c * (-2.0 / C), aT_ref[...], preferred_element_type=f32)
        var = jnp.maximum(m2c + m2a_ref[...] + cross, 0.0)   # clamp fp cancellation
        rinv = lax.rsqrt(var + LN_EPS)                        # (TM, Np)

        w = jnp.where(sel, rinv, 0.0)                         # (TM, Np)
        w_rowsum = jnp.sum(w, axis=1, keepdims=True)          # (TM, 1)
        # Aggregation matmul in bf16 (f32 accumulation): K = Np dominates MXU time.
        wa = jnp.dot(w.astype(jnp.bfloat16), ab_ref[...],
                     preferred_element_type=f32)              # (TM, C)

        # mean aggregation + LayerNorm affine; global_nn = ReLU (Dropout(0.1) is
        # identity in eval mode).
        agg = g_ref[...] * (wa - c * w_rowsum) * (1.0 / cnt) + be_ref[...]
        return jnp.maximum(agg, 0.0)

    x1 = conv_half(r1, a1T_ref, a1b_ref, m2a1_ref, wp1_ref, g1_ref, be1_ref)
    x2 = conv_half(r2, a2T_ref, a2b_ref, m2a2_ref, wp2_ref, g2_ref, be2_ref)

    # Final Linear(128 -> out_c) split per conv (no 64-lane concat); output padded to
    # 128 lanes so stores stay lane-dense, wrapper slices [:, :out_channels].
    out_ref[...] = (jnp.dot(x1, wm1_ref[...], preferred_element_type=f32)
                    + jnp.dot(x2, wm2_ref[...], preferred_element_type=f32)
                    + bm_ref[...])


def point_encoder(x, pos, batch, params, r1=1.5, r2=2.5, tm=128):
    """Eval-mode forward of PointEncoder. x: (N,50), pos: (N,2), batch: (N,)."""
    N, F = x.shape
    out_c = params["wm"].shape[1]
    C = HIDDEN

    x = x.astype(jnp.float32)
    pos = pos.astype(jnp.float32)
    batch = batch.astype(jnp.int32)

    # --- tiling: source/lane axis padded to a multiple of 128 (lane-dense (TM, Np)
    # maps); tm a power of two capped at 128 (v7x VMEM) so it divides Np; keep >= 2
    # row blocks so the "parallel" axis can shard across v7x's 2 TensorCores.
    Np = max(128, -(-N // 128) * 128)
    tm = max(8, min(128, int(tm)))
    tm = 1 << (tm.bit_length() - 1)
    if Np // tm < 2:
        tm = max(8, tm // 2)
    n_blocks = Np // tm
    pad = Np - N
    if pad:
        x = jnp.pad(x, ((0, pad), (0, 0)))
        pos = jnp.pad(pos, ((0, pad), (0, 0)))
        # pad id strictly below any real graph id -> padded columns never match real rows.
        pad_id = jnp.min(batch) - jnp.int32(1)
        batch = jnp.concatenate([batch, jnp.full((pad,), pad_id, jnp.int32)])

    # --- source-only precompute hoisted out of the kernel (plain XLA, runs once) ---
    xp = jnp.concatenate([x, pos], axis=1)                    # (Np, 52)

    def source_precompute(wx, wp, b):
        w = jnp.concatenate([wx, wp], axis=0)                 # (52, C)
        hj = jnp.dot(xp, w) + b                               # (Np, C) source local_nn term
        a = hj - jnp.mean(hj, axis=1, keepdims=True)          # LN-centered
        m2a = jnp.mean(a * a, axis=1, keepdims=True)          # (Np, 1)
        return (jnp.transpose(a),                             # (C, Np)  f32, cross matmul RHS
                a.astype(jnp.bfloat16),                       # (Np, C)  bf16, aggregation RHS
                m2a.reshape(1, Np))                           # (1, Np)

    a1T, a1b, m2a1 = source_precompute(params["w1x"], params["w1p"], params["b1"])
    a2T, a2b, m2a2 = source_precompute(params["w2x"], params["w2p"], params["b2"])

    posT = jnp.transpose(pos)                                 # (2, Np)
    batch2d = batch.reshape(Np, 1)
    batchT = batch.reshape(1, Np)

    # Final Linear split per conv and zero-padded to 128 output lanes.
    wm1 = jnp.pad(params["wm"][:C], ((0, 0), (0, 2 * C - out_c)))
    wm2 = jnp.pad(params["wm"][C:], ((0, 0), (0, 2 * C - out_c)))
    bm = jnp.pad(params["bm"], ((0, 0), (0, 2 * C - out_c)))

    kernel = functools.partial(_point_encoder_kernel, float(r1), float(r2))

    def make_specs(inv_kwargs):
        def inv(shape):
            nd = len(shape)
            return pl.BlockSpec(shape, lambda i, nd=nd: (0,) * nd, **inv_kwargs)
        return [
            pl.BlockSpec((tm, 2), lambda i: (i, 0)),   # pos (target-row block)
            pl.BlockSpec((tm, 1), lambda i: (i, 0)),   # batch (target-row block)
            inv((2, Np)), inv((1, Np)),                # posT, batchT
            inv((C, Np)), inv((Np, C)), inv((1, Np)),  # a1T, a1b (bf16), m2a1
            inv((C, Np)), inv((Np, C)), inv((1, Np)),  # a2T, a2b (bf16), m2a2
            inv((2, C)), inv((1, C)), inv((1, C)),     # wp1, g1, be1
            inv((2, C)), inv((1, C)), inv((1, C)),     # wp2, g2, be2
            inv((C, 2 * C)), inv((C, 2 * C)), inv((1, 2 * C)),   # wm1, wm2, bm
        ]

    operands = (pos, batch2d, posT, batchT,
                a1T, a1b, m2a1, a2T, a2b, m2a2,
                params["w1p"], params["g1"], params["be1"],
                params["w2p"], params["g2"], params["be2"],
                wm1, wm2, bm)

    # Rough working set: ~6 live (tm, Np) f32 maps + grid-invariant source arrays.
    # Raise the scoped VMEM limit only when actually needed (v5e default is 16 MiB),
    # capped at 64 MiB so it still fits v7x physical VMEM.
    live_maps = 6 * tm * Np * 4
    invariant_bytes = Np * (2 * C * 4 + 2 * C * 2 + 2 * 4 + 16)
    est = live_maps + invariant_bytes + (2 << 20)
    cp_kwargs = dict(dimension_semantics=("parallel",))
    if est > (12 << 20):
        cp_kwargs["vmem_limit_bytes"] = int(min(64 << 20, 2 * est))

    def run(inv_kwargs):
        return pl.pallas_call(
            kernel,
            out_shape=jax.ShapeDtypeStruct((Np, 2 * C), jnp.float32),
            grid=(n_blocks,),
            in_specs=make_specs(inv_kwargs),
            out_specs=pl.BlockSpec((tm, 2 * C), lambda i: (i, 0)),
            compiler_params=pltpu.CompilerParams(**cp_kwargs),
        )(*operands)

    try:
        # Grid-invariant inputs: constant index map -> fetch once, single-buffered.
        out = run({"pipeline_mode": pl.Buffered(1)})
    except Exception:   # older jax without pipeline_mode / Buffered(1): default buffering
        out = run({})

    return out[:N, :out_c]


def init_params(key, in_feat=50, pos_dim=2, hidden=64, out_channels=3):
    """Deterministic synthetic weights matching the PyTorch module's shapes."""
    k1, k2, k3 = jax.random.split(key, 3)

    def lin(k, fin, fout):
        kw, kb = jax.random.split(k)
        bound = 1.0 / jnp.sqrt(jnp.asarray(fin, jnp.float32))
        w = jax.random.uniform(kw, (fin, fout), jnp.float32, -bound, bound)
        b = jax.random.uniform(kb, (1, fout), jnp.float32, -bound, bound)
        return w, b

    w1, b1 = lin(k1, in_feat + pos_dim, hidden)   # conv1 local_nn Linear(52, 64)
    w2, b2 = lin(k2, in_feat + pos_dim, hidden)   # conv2 local_nn Linear(52, 64)
    wm, bm = lin(k3, 2 * hidden, out_channels)    # mlp Linear(128, out_channels)

    return {
        "w1x": w1[:in_feat], "w1p": w1[in_feat:], "b1": b1,
        "g1": jnp.ones((1, hidden), jnp.float32), "be1": jnp.zeros((1, hidden), jnp.float32),
        "w2x": w2[:in_feat], "w2p": w2[in_feat:], "b2": b2,
        "g2": jnp.ones((1, hidden), jnp.float32), "be2": jnp.zeros((1, hidden), jnp.float32),
        "wm": wm, "bm": bm,
    }


if __name__ == "__main__":
    key = jax.random.PRNGKey(0)
    kx, kp, kparam = jax.random.split(key, 3)

    N = 64           # total points (2 graphs of 32 points each)
    F = 50           # node feature dim (module hard-codes 50 + 2)
    POS_DIM = 2      # implied by local_nn(50 + 2, 64)

    x = jax.random.normal(kx, (N, F), jnp.float32)
    pos = jax.random.uniform(kp, (N, POS_DIM), jnp.float32, minval=0.0, maxval=3.0)
    batch = jnp.concatenate([jnp.zeros((N // 2,), jnp.int32),
                             jnp.ones((N // 2,), jnp.int32)])

    params = init_params(kparam, in_feat=F, pos_dim=POS_DIM, hidden=HIDDEN, out_channels=3)

    # tm=32, Np padded to 128 -> grid=(4,), exercising the tiled / parallel path.
    out = point_encoder(x, pos, batch, params, r1=1.5, r2=2.5, tm=32)
    out = jax.block_until_ready(out)

    assert out.shape == (N, 3)
    assert bool(jnp.all(jnp.isfinite(out)))
    print("KERNEL_OK")
</pallas_src>

<mosaic_0001>
module attributes {stable_mosaic.version = 11 : i64} {
  func.func @_point_encoder_kernel(%arg0: i32, %arg1: memref<32x2xf32, #tpu.memory_space<vmem>>, %arg2: memref<32x1xi32, #tpu.memory_space<vmem>>, %arg3: memref<2x128xf32, #tpu.memory_space<vmem>>, %arg4: memref<1x128xi32, #tpu.memory_space<vmem>>, %arg5: memref<64x128xf32, #tpu.memory_space<vmem>>, %arg6: memref<128x64xbf16, #tpu.memory_space<vmem>>, %arg7: memref<1x128xf32, #tpu.memory_space<vmem>>, %arg8: memref<64x128xf32, #tpu.memory_space<vmem>>, %arg9: memref<128x64xbf16, #tpu.memory_space<vmem>>, %arg10: memref<1x128xf32, #tpu.memory_space<vmem>>, %arg11: memref<2x64xf32, #tpu.memory_space<vmem>>, %arg12: memref<1x64xf32, #tpu.memory_space<vmem>>, %arg13: memref<1x64xf32, #tpu.memory_space<vmem>>, %arg14: memref<2x64xf32, #tpu.memory_space<vmem>>, %arg15: memref<1x64xf32, #tpu.memory_space<vmem>>, %arg16: memref<1x64xf32, #tpu.memory_space<vmem>>, %arg17: memref<64x128xf32, #tpu.memory_space<vmem>>, %arg18: memref<64x128xf32, #tpu.memory_space<vmem>>, %arg19: memref<1x128xf32, #tpu.memory_space<vmem>>, %arg20: memref<32x128xf32, #tpu.memory_space<vmem>>) attributes {dimension_semantics = [#tpu.dimension_semantics<parallel>], iteration_bounds = array<i64: 4>, scalar_prefetch = 0 : i64, scratch_operands = 0 : i64, tpu.core_type = #tpu.core_type<tc>, window_params = [{transform_indices = @transform_0, window_bounds = array<i64: 32, 2>}, {transform_indices = @transform_1, window_bounds = array<i64: 32, 1>}, {pipeline_mode = #tpu.pipeline_mode<synchronous>, transform_indices = @transform_2, window_bounds = array<i64: 2, 128>}, {pipeline_mode = #tpu.pipeline_mode<synchronous>, transform_indices = @transform_3, window_bounds = array<i64: 1, 128>}, {pipeline_mode = #tpu.pipeline_mode<synchronous>, transform_indices = @transform_4, window_bounds = array<i64: 64, 128>}, {pipeline_mode = #tpu.pipeline_mode<synchronous>, transform_indices = @transform_5, window_bounds = array<i64: 128, 64>}, {pipeline_mode = #tpu.pipeline_mode<synchronous>, transform_indices = @transform_6, window_bounds = array<i64: 1, 128>}, {pipeline_mode = #tpu.pipeline_mode<synchronous>, transform_indices = @transform_7, window_bounds = array<i64: 64, 128>}, {pipeline_mode = #tpu.pipeline_mode<synchronous>, transform_indices = @transform_8, window_bounds = array<i64: 128, 64>}, {pipeline_mode = #tpu.pipeline_mode<synchronous>, transform_indices = @transform_9, window_bounds = array<i64: 1, 128>}, {pipeline_mode = #tpu.pipeline_mode<synchronous>, transform_indices = @transform_10, window_bounds = array<i64: 2, 64>}, {pipeline_mode = #tpu.pipeline_mode<synchronous>, transform_indices = @transform_11, window_bounds = array<i64: 1, 64>}, {pipeline_mode = #tpu.pipeline_mode<synchronous>, transform_indices = @transform_12, window_bounds = array<i64: 1, 64>}, {pipeline_mode = #tpu.pipeline_mode<synchronous>, transform_indices = @transform_13, window_bounds = array<i64: 2, 64>}, {pipeline_mode = #tpu.pipeline_mode<synchronous>, transform_indices = @transform_14, window_bounds = array<i64: 1, 64>}, {pipeline_mode = #tpu.pipeline_mode<synchronous>, transform_indices = @transform_15, window_bounds = array<i64: 1, 64>}, {pipeline_mode = #tpu.pipeline_mode<synchronous>, transform_indices = @transform_16, window_bounds = array<i64: 64, 128>}, {pipeline_mode = #tpu.pipeline_mode<synchronous>, transform_indices = @transform_17, window_bounds = array<i64: 64, 128>}, {pipeline_mode = #tpu.pipeline_mode<synchronous>, transform_indices = @transform_18, window_bounds = array<i64: 1, 128>}, {transform_indices = @transform_19, window_bounds = array<i64: 32, 128>}]} {
    %c0 = arith.constant 0 : index
    %c0_0 = arith.constant 0 : index
    %0 = vector.load %arg1[%c0, %c0_0] : memref<32x2xf32, #tpu.memory_space<vmem>>, vector<32x2xf32>
    %c0_1 = arith.constant 0 : index
    %c0_2 = arith.constant 0 : index
    %1 = vector.load %arg2[%c0_1, %c0_2] : memref<32x1xi32, #tpu.memory_space<vmem>>, vector<32x1xi32>
    %c0_3 = arith.constant 0 : index
    %c0_4 = arith.constant 0 : index
    %2 = vector.load %arg3[%c0_3, %c0_4] : memref<2x128xf32, #tpu.memory_space<vmem>>, vector<2x128xf32>
    %c0_5 = arith.constant 0 : index
    %c0_6 = arith.constant 0 : index
    %3 = vector.load %arg4[%c0_5, %c0_6] : memref<1x128xi32, #tpu.memory_space<vmem>>, vector<1x128xi32>
    %4 = vector.extract_strided_slice %0 {offsets = [0, 0], sizes = [32, 1], strides = [1, 1]} : vector<32x2xf32> to vector<32x1xf32>
    %5 = vector.extract_strided_slice %2 {offsets = [0, 0], sizes = [1, 128], strides = [1, 1]} : vector<2x128xf32> to vector<1x128xf32>
    %6 = vector.broadcast %4 : vector<32x1xf32> to vector<32x128xf32>
    %7 = vector.broadcast %5 : vector<1x128xf32> to vector<32x128xf32>
    %8 = arith.subf %6, %7 : vector<32x128xf32>
    %9 = vector.extract_strided_slice %0 {offsets = [0, 1], sizes = [32, 1], strides = [1, 1]} : vector<32x2xf32> to vector<32x1xf32>
    %10 = vector.extract_strided_slice %2 {offsets = [1, 0], sizes = [1, 128], strides = [1, 1]} : vector<2x128xf32> to vector<1x128xf32>
    %11 = vector.broadcast %9 : vector<32x1xf32> to vector<32x128xf32>
    %12 = vector.broadcast %10 : vector<1x128xf32> to vector<32x128xf32>
    %13 = arith.subf %11, %12 : vector<32x128xf32>
    %14 = arith.mulf %8, %8 : vector<32x128xf32>
    %15 = arith.mulf %13, %13 : vector<32x128xf32>
    %16 = arith.addf %14, %15 : vector<32x128xf32>
    %17 = vector.broadcast %1 : vector<32x1xi32> to vector<32x128xi32>
    %18 = vector.broadcast %3 : vector<1x128xi32> to vector<32x128xi32>
    %19 = arith.cmpi eq, %17, %18 : vector<32x128xi32>
    %cst = arith.constant 2.250000e+00 : f32
    %20 = vector.broadcast %cst : f32 to vector<32x128xf32>
    %21 = arith.cmpf ole, %16, %20 : vector<32x128xf32>
    %22 = arith.andi %21, %19 : vector<32x128xi1>
    %cst_7 = arith.constant 1.000000e+00 : f32
    %cst_8 = arith.constant 0.000000e+00 : f32
    %23 = vector.broadcast %cst_7 : f32 to vector<32x128xf32>
    %24 = vector.broadcast %cst_8 : f32 to vector<32x128xf32>
    %25 = arith.select %22, %23, %24 : vector<32x128xi1>, vector<32x128xf32>
    %cst_9 = arith.constant dense<0.000000e+00> : vector<32xf32>
    %26 = vector.multi_reduction <add>, %25, %cst_9 [1] : vector<32x128xf32> to vector<32xf32>
    %27 = vector.shape_cast %26 : vector<32xf32> to vector<32x1xf32>
    %c0_10 = arith.constant 0 : index
    %c0_11 = arith.constant 0 : index
    %28 = vector.load %arg11[%c0_10, %c0_11] : memref<2x64xf32, #tpu.memory_space<vmem>>, vector<2x64xf32>
    %29 = vector.extract_strided_slice %0 {offsets = [0, 0], sizes = [32, 1], strides = [1, 1]} : vector<32x2xf32> to vector<32x1xf32>
    %30 = vector.extract_strided_slice %28 {offsets = [0, 0], sizes = [1, 64], strides = [1, 1]} : vector<2x64xf32> to vector<1x64xf32>
    %31 = vector.broadcast %29 : vector<32x1xf32> to vector<32x64xf32>
    %32 = vector.broadcast %30 : vector<1x64xf32> to vector<32x64xf32>
    %33 = arith.mulf %31, %32 : vector<32x64xf32>
    %34 = vector.extract_strided_slice %0 {offsets = [0, 1], sizes = [32, 1], strides = [1, 1]} : vector<32x2xf32> to vector<32x1xf32>
    %35 = vector.extract_strided_slice %28 {offsets = [1, 0], sizes = [1, 64], strides = [1, 1]} : vector<2x64xf32> to vector<1x64xf32>
    %36 = vector.broadcast %34 : vector<32x1xf32> to vector<32x64xf32>
    %37 = vector.broadcast %35 : vector<1x64xf32> to vector<32x64xf32>
    %38 = arith.mulf %36, %37 : vector<32x64xf32>
    %39 = arith.addf %33, %38 : vector<32x64xf32>
    %cst_12 = arith.constant dense<0.000000e+00> : vector<32xf32>
    %40 = vector.multi_reduction <add>, %39, %cst_12 [1] : vector<32x64xf32> to vector<32xf32>
    %41 = vector.shape_cast %40 : vector<32xf32> to vector<32x1xf32>
    %cst_13 = arith.constant 6.400000e+01 : f32
    %42 = vector.broadcast %cst_13 : f32 to vector<32x1xf32>
    %43 = arith.divf %41, %42 : vector<32x1xf32>
    %44 = vector.broadcast %43 : vector<32x1xf32> to vector<32x64xf32>
    %45 = arith.subf %39, %44 : vector<32x64xf32>
    %46 = arith.mulf %45, %45 : vector<32x64xf32>
    %cst_14 = arith.constant dense<0.000000e+00> : vector<32xf32>
    %47 = vector.multi_reduction <add>, %46, %cst_14 [1] : vector<32x64xf32> to vector<32xf32>
    %48 = vector.shape_cast %47 : vector<32xf32> to vector<32x1xf32>
    %cst_15 = arith.constant 6.400000e+01 : f32
    %49 = vector.broadcast %cst_15 : f32 to vector<32x1xf32>
    %50 = arith.divf %48, %49 : vector<32x1xf32>
    %cst_16 = arith.constant -3.125000e-02 : f32
    %51 = vector.broadcast %cst_16 : f32 to vector<32x64xf32>
    %52 = arith.mulf %45, %51 : vector<32x64xf32>
    %c0_17 = arith.constant 0 : index
    %c0_18 = arith.constant 0 : index
    %53 = vector.load %arg5[%c0_17, %c0_18] : memref<64x128xf32, #tpu.memory_space<vmem>>, vector<64x128xf32>
    %cst_19 = arith.constant dense<0.000000e+00> : vector<32x128xf32>
    %54 = tpu.matmul %52, %53, %cst_19 {dimension_numbers = #tpu.dot_dimension_numbers<[1], [0], [0], [1], [0, 0, 1, 1], [], []>} : vector<32x64xf32>, vector<64x128xf32>, vector<32x128xf32> -> vector<32x128xf32>
    %c0_20 = arith.constant 0 : index
    %c0_21 = arith.constant 0 : index
    %55 = vector.load %arg7[%c0_20, %c0_21] : memref<1x128xf32, #tpu.memory_space<vmem>>, vector<1x128xf32>
    %56 = vector.broadcast %50 : vector<32x1xf32> to vector<32x128xf32>
    %57 = vector.broadcast %55 : vector<1x128xf32> to vector<32x128xf32>
    %58 = arith.addf %56, %57 : vector<32x128xf32>
    %59 = arith.addf %58, %54 : vector<32x128xf32>
    %cst_22 = arith.constant 0.000000e+00 : f32
    %60 = vector.broadcast %cst_22 : f32 to vector<32x128xf32>
    %61 = arith.maximumf %59, %60 : vector<32x128xf32>
    %cst_23 = arith.constant 9.99999974E-6 : f32
    %62 = vector.broadcast %cst_23 : f32 to vector<32x128xf32>
    %63 = arith.addf %61, %62 : vector<32x128xf32>
    %64 = math.rsqrt %63 : vector<32x128xf32>
    %cst_24 = arith.constant 0.000000e+00 : f32
    %65 = vector.broadcast %cst_24 : f32 to vector<32x128xf32>
    %66 = arith.select %22, %64, %65 : vector<32x128xi1>, vector<32x128xf32>
    %cst_25 = arith.constant dense<0.000000e+00> : vector<32xf32>
    %67 = vector.multi_reduction <add>, %66, %cst_25 [1] : vector<32x128xf32> to vector<32xf32>
    %68 = vector.shape_cast %67 : vector<32xf32> to vector<32x1xf32>
    %69 = arith.truncf %66 : vector<32x128xf32> to vector<32x128xbf16>
    %c0_26 = arith.constant 0 : index
    %c0_27 = arith.constant 0 : index
    %70 = vector.load %arg6[%c0_26, %c0_27] : memref<128x64xbf16, #tpu.memory_space<vmem>>, vector<128x64xbf16>
    %cst_28 = arith.constant dense<0.000000e+00> : vector<32x64xf32>
    %71 = tpu.matmul %69, %70, %cst_28 {dimension_numbers = #tpu.dot_dimension_numbers<[1], [0], [0], [1], [0, 0, 1, 1], [], []>} : vector<32x128xbf16>, vector<128x64xbf16>, vector<32x64xf32> -> vector<32x64xf32>
    %c0_29 = arith.constant 0 : index
    %c0_30 = arith.constant 0 : index
    %72 = vector.load %arg12[%c0_29, %c0_30] : memref<1x64xf32, #tpu.memory_space<vmem>>, vector<1x64xf32>
    %73 = vector.broadcast %68 : vector<32x1xf32> to vector<32x64xf32>
    %74 = arith.mulf %45, %73 : vector<32x64xf32>
    %75 = arith.subf %71, %74 : vector<32x64xf32>
    %76 = vector.broadcast %72 : vector<1x64xf32> to vector<32x64xf32>
    %77 = arith.mulf %76, %75 : vector<32x64xf32>
    %cst_31 = arith.constant 1.000000e+00 : f32
    %78 = vector.broadcast %cst_31 : f32 to vector<32x1xf32>
    %79 = arith.divf %78, %27 : vector<32x1xf32>
    %80 = vector.broadcast %79 : vector<32x1xf32> to vector<32x64xf32>
    %81 = arith.mulf %77, %80 : vector<32x64xf32>
    %c0_32 = arith.constant 0 : index
    %c0_33 = arith.constant 0 : index
    %82 = vector.load %arg13[%c0_32, %c0_33] : memref<1x64xf32, #tpu.memory_space<vmem>>, vector<1x64xf32>
    %83 = vector.broadcast %82 : vector<1x64xf32> to vector<32x64xf32>
    %84 = arith.addf %81, %83 : vector<32x64xf32>
    %cst_34 = arith.constant 0.000000e+00 : f32
    %85 = vector.broadcast %cst_34 : f32 to vector<32x64xf32>
    %86 = arith.maximumf %84, %85 : vector<32x64xf32>
    %cst_35 = arith.constant 6.250000e+00 : f32
    %87 = vector.broadcast %cst_35 : f32 to vector<32x128xf32>
    %88 = arith.cmpf ole, %16, %87 : vector<32x128xf32>
    %89 = arith.andi %88, %19 : vector<32x128xi1>
    %cst_36 = arith.constant 1.000000e+00 : f32
    %cst_37 = arith.constant 0.000000e+00 : f32
    %90 = vector.broadcast %cst_36 : f32 to vector<32x128xf32>
    %91 = vector.broadcast %cst_37 : f32 to vector<32x128xf32>
    %92 = arith.select %89, %90, %91 : vector<32x128xi1>, vector<32x128xf32>
    %cst_38 = arith.constant dense<0.000000e+00> : vector<32xf32>
    %93 = vector.multi_reduction <add>, %92, %cst_38 [1] : vector<32x128xf32> to vector<32xf32>
    %94 = vector.shape_cast %93 : vector<32xf32> to vector<32x1xf32>
    %c0_39 = arith.constant 0 : index
    %c0_40 = arith.constant 0 : index
    %95 = vector.load %arg14[%c0_39, %c0_40] : memref<2x64xf32, #tpu.memory_space<vmem>>, vector<2x64xf32>
    %96 = vector.extract_strided_slice %0 {offsets = [0, 0], sizes = [32, 1], strides = [1, 1]} : vector<32x2xf32> to vector<32x1xf32>
    %97 = vector.extract_strided_slice %95 {offsets = [0, 0], sizes = [1, 64], strides = [1, 1]} : vector<2x64xf32> to vector<1x64xf32>
    %98 = vector.broadcast %96 : vector<32x1xf32> to vector<32x64xf32>
    %99 = vector.broadcast %97 : vector<1x64xf32> to vector<32x64xf32>
    %100 = arith.mulf %98, %99 : vector<32x64xf32>
    %101 = vector.extract_strided_slice %0 {offsets = [0, 1], sizes = [32, 1], strides = [1, 1]} : vector<32x2xf32> to vector<32x1xf32>
    %102 = vector.extract_strided_slice %95 {offsets = [1, 0], sizes = [1, 64], strides = [1, 1]} : vector<2x64xf32> to vector<1x64xf32>
    %103 = vector.broadcast %101 : vector<32x1xf32> to vector<32x64xf32>
    %104 = vector.broadcast %102 : vector<1x64xf32> to vector<32x64xf32>
    %105 = arith.mulf %103, %104 : vector<32x64xf32>
    %106 = arith.addf %100, %105 : vector<32x64xf32>
    %cst_41 = arith.constant dense<0.000000e+00> : vector<32xf32>
    %107 = vector.multi_reduction <add>, %106, %cst_41 [1] : vector<32x64xf32> to vector<32xf32>
    %108 = vector.shape_cast %107 : vector<32xf32> to vector<32x1xf32>
    %cst_42 = arith.constant 6.400000e+01 : f32
    %109 = vector.broadcast %cst_42 : f32 to vector<32x1xf32>
    %110 = arith.divf %108, %109 : vector<32x1xf32>
    %111 = vector.broadcast %110 : vector<32x1xf32> to vector<32x64xf32>
    %112 = arith.subf %106, %111 : vector<32x64xf32>
    %113 = arith.mulf %112, %112 : vector<32x64xf32>
    %cst_43 = arith.constant dense<0.000000e+00> : vector<32xf32>
    %114 = vector.multi_reduction <add>, %113, %cst_43 [1] : vector<32x64xf32> to vector<32xf32>
    %115 = vector.shape_cast %114 : vector<32xf32> to vector<32x1xf32>
    %cst_44 = arith.constant 6.400000e+01 : f32
    %116 = vector.broadcast %cst_44 : f32 to vector<32x1xf32>
    %117 = arith.divf %115, %116 : vector<32x1xf32>
    %cst_45 = arith.constant -3.125000e-02 : f32
    %118 = vector.broadcast %cst_45 : f32 to vector<32x64xf32>
    %119 = arith.mulf %112, %118 : vector<32x64xf32>
    %c0_46 = arith.constant 0 : index
    %c0_47 = arith.constant 0 : index
    %120 = vector.load %arg8[%c0_46, %c0_47] : memref<64x128xf32, #tpu.memory_space<vmem>>, vector<64x128xf32>
    %cst_48 = arith.constant dense<0.000000e+00> : vector<32x128xf32>
    %121 = tpu.matmul %119, %120, %cst_48 {dimension_numbers = #tpu.dot_dimension_numbers<[1], [0], [0], [1], [0, 0, 1, 1], [], []>} : vector<32x64xf32>, vector<64x128xf32>, vector<32x128xf32> -> vector<32x128xf32>
    %c0_49 = arith.constant 0 : index
    %c0_50 = arith.constant 0 : index
    %122 = vector.load %arg10[%c0_49, %c0_50] : memref<1x128xf32, #tpu.memory_space<vmem>>, vector<1x128xf32>
    %123 = vector.broadcast %117 : vector<32x1xf32> to vector<32x128xf32>
    %124 = vector.broadcast %122 : vector<1x128xf32> to vector<32x128xf32>
    %125 = arith.addf %123, %124 : vector<32x128xf32>
    %126 = arith.addf %125, %121 : vector<32x128xf32>
    %cst_51 = arith.constant 0.000000e+00 : f32
    %127 = vector.broadcast %cst_51 : f32 to vector<32x128xf32>
    %128 = arith.maximumf %126, %127 : vector<32x128xf32>
    %cst_52 = arith.constant 9.99999974E-6 : f32
    %129 = vector.broadcast %cst_52 : f32 to vector<32x128xf32>
    %130 = arith.addf %128, %129 : vector<32x128xf32>
    %131 = math.rsqrt %130 : vector<32x128xf32>
    %cst_53 = arith.constant 0.000000e+00 : f32
    %132 = vector.broadcast %cst_53 : f32 to vector<32x128xf32>
    %133 = arith.select %89, %131, %132 : vector<32x128xi1>, vector<32x128xf32>
    %cst_54 = arith.constant dense<0.000000e+00> : vector<32xf32>
    %134 = vector.multi_reduction <add>, %133, %cst_54 [1] : vector<32x128xf32> to vector<32xf32>
    %135 = vector.shape_cast %134 : vector<32xf32> to vector<32x1xf32>
    %136 = arith.truncf %133 : vector<32x128xf32> to vector<32x128xbf16>
    %c0_55 = arith.constant 0 : index
    %c0_56 = arith.constant 0 : index
    %137 = vector.load %arg9[%c0_55, %c0_56] : memref<128x64xbf16, #tpu.memory_space<vmem>>, vector<128x64xbf16>
    %cst_57 = arith.constant dense<0.000000e+00> : vector<32x64xf32>
    %138 = tpu.matmul %136, %137, %cst_57 {dimension_numbers = #tpu.dot_dimension_numbers<[1], [0], [0], [1], [0, 0, 1, 1], [], []>} : vector<32x128xbf16>, vector<128x64xbf16>, vector<32x64xf32> -> vector<32x64xf32>
    %c0_58 = arith.constant 0 : index
    %c0_59 = arith.constant 0 : index
    %139 = vector.load %arg15[%c0_58, %c0_59] : memref<1x64xf32, #tpu.memory_space<vmem>>, vector<1x64xf32>
    %140 = vector.broadcast %135 : vector<32x1xf32> to vector<32x64xf32>
    %141 = arith.mulf %112, %140 : vector<32x64xf32>
    %142 = arith.subf %138, %141 : vector<32x64xf32>
    %143 = vector.broadcast %139 : vector<1x64xf32> to vector<32x64xf32>
    %144 = arith.mulf %143, %142 : vector<32x64xf32>
    %cst_60 = arith.constant 1.000000e+00 : f32
    %145 = vector.broadcast %cst_60 : f32 to vector<32x1xf32>
    %146 = arith.divf %145, %94 : vector<32x1xf32>
    %147 = vector.broadcast %146 : vector<32x1xf32> to vector<32x64xf32>
    %148 = arith.mulf %144, %147 : vector<32x64xf32>
    %c0_61 = arith.constant 0 : index
    %c0_62 = arith.constant 0 : index
    %149 = vector.load %arg16[%c0_61, %c0_62] : memref<1x64xf32, #tpu.memory_space<vmem>>, vector<1x64xf32>
    %150 = vector.broadcast %149 : vector<1x64xf32> to vector<32x64xf32>
    %151 = arith.addf %148, %150 : vector<32x64xf32>
    %cst_63 = arith.constant 0.000000e+00 : f32
    %152 = vector.broadcast %cst_63 : f32 to vector<32x64xf32>
    %153 = arith.maximumf %151, %152 : vector<32x64xf32>
    %c0_64 = arith.constant 0 : index
    %c0_65 = arith.constant 0 : index
    %154 = vector.load %arg17[%c0_64, %c0_65] : memref<64x128xf32, #tpu.memory_space<vmem>>, vector<64x128xf32>
    %cst_66 = arith.constant dense<0.000000e+00> : vector<32x128xf32>
    %155 = tpu.matmul %86, %154, %cst_66 {dimension_numbers = #tpu.dot_dimension_numbers<[1], [0], [0], [1], [0, 0, 1, 1], [], []>} : vector<32x64xf32>, vector<64x128xf32>, vector<32x128xf32> -> vector<32x128xf32>
    %c0_67 = arith.constant 0 : index
    %c0_68 = arith.constant 0 : index
    %156 = vector.load %arg18[%c0_67, %c0_68] : memref<64x128xf32, #tpu.memory_space<vmem>>, vector<64x128xf32>
    %cst_69 = arith.constant dense<0.000000e+00> : vector<32x128xf32>
    %157 = tpu.matmul %153, %156, %cst_69 {dimension_numbers = #tpu.dot_dimension_numbers<[1], [0], [0], [1], [0, 0, 1, 1], [], []>} : vector<32x64xf32>, vector<64x128xf32>, vector<32x128xf32> -> vector<32x128xf32>
    %158 = arith.addf %155, %157 : vector<32x128xf32>
    %c0_70 = arith.constant 0 : index
    %c0_71 = arith.constant 0 : index
    %159 = vector.load %arg19[%c0_70, %c0_71] : memref<1x128xf32, #tpu.memory_space<vmem>>, vector<1x128xf32>
    %160 = vector.broadcast %159 : vector<1x128xf32> to vector<32x128xf32>
    %161 = arith.addf %158, %160 : vector<32x128xf32>
    %c0_72 = arith.constant 0 : index
    %c0_73 = arith.constant 0 : index
    %162 = vector.load %arg20[%c0_72, %c0_73] : memref<32x128xf32, #tpu.memory_space<vmem>>, vector<32x128xf32>
    tpu.vector_store %arg20[%c0_72, %c0_73], %161 {strides = array<i32>} : memref<32x128xf32, #tpu.memory_space<vmem>>, vector<32x128xf32>,
    return
  }
  func.func @transform_0(%arg0: i32) -> (i32, i32) {
    %c0_i32 = arith.constant 0 : i32
    %c0_i32_0 = arith.constant 0 : i32
    return %arg0, %c0_i32 : i32, i32
  }
  func.func @transform_1(%arg0: i32) -> (i32, i32) {
    %c0_i32 = arith.constant 0 : i32
    %c0_i32_0 = arith.constant 0 : i32
    return %arg0, %c0_i32 : i32, i32
  }
  func.func @transform_2(%arg0: i32) -> (i32, i32) {
    %c0_i32 = arith.constant 0 : i32
    %c0_i32_0 = arith.constant 0 : i32
    %c0_i32_1 = arith.constant 0 : i32
    return %c0_i32, %c0_i32_0 : i32, i32
  }
  func.func @transform_3(%arg0: i32) -> (i32, i32) {
    %c0_i32 = arith.constant 0 : i32
    %c0_i32_0 = arith.constant 0 : i32
    %c0_i32_1 = arith.constant 0 : i32
    return %c0_i32, %c0_i32_0 : i32, i32
  }
  func.func @transform_4(%arg0: i32) -> (i32, i32) {
    %c0_i32 = arith.constant 0 : i32
    %c0_i32_0 = arith.constant 0 : i32
    %c0_i32_1 = arith.constant 0 : i32
    return %c0_i32, %c0_i32_0 : i32, i32
  }
  func.func @transform_5(%arg0: i32) -> (i32, i32) {
    %c0_i32 = arith.constant 0 : i32
    %c0_i32_0 = arith.constant 0 : i32
    %c0_i32_1 = arith.constant 0 : i32
    return %c0_i32, %c0_i32_0 : i32, i32
  }
  func.func @transform_6(%arg0: i32) -> (i32, i32) {
    %c0_i32 = arith.constant 0 : i32
    %c0_i32_0 = arith.constant 0 : i32
    %c0_i32_1 = arith.constant 0 : i32
    return %c0_i32, %c0_i32_0 : i32, i32
  }
  func.func @transform_7(%arg0: i32) -> (i32, i32) {
    %c0_i32 = arith.constant 0 : i32
    %c0_i32_0 = arith.constant 0 : i32
    %c0_i32_1 = arith.constant 0 : i32
    return %c0_i32, %c0_i32_0 : i32, i32
  }
  func.func @transform_8(%arg0: i32) -> (i32, i32) {
    %c0_i32 = arith.constant 0 : i32
    %c0_i32_0 = arith.constant 0 : i32
    %c0_i32_1 = arith.constant 0 : i32
    return %c0_i32, %c0_i32_0 : i32, i32
  }
  func.func @transform_9(%arg0: i32) -> (i32, i32) {
    %c0_i32 = arith.constant 0 : i32
    %c0_i32_0 = arith.constant 0 : i32
    %c0_i32_1 = arith.constant 0 : i32
    return %c0_i32, %c0_i32_0 : i32, i32
  }
  func.func @transform_10(%arg0: i32) -> (i32, i32) {
    %c0_i32 = arith.constant 0 : i32
    %c0_i32_0 = arith.constant 0 : i32
    %c0_i32_1 = arith.constant 0 : i32
    return %c0_i32, %c0_i32_0 : i32, i32
  }
  func.func @transform_11(%arg0: i32) -> (i32, i32) {
    %c0_i32 = arith.constant 0 : i32
    %c0_i32_0 = arith.constant 0 : i32
    %c0_i32_1 = arith.constant 0 : i32
    return %c0_i32, %c0_i32_0 : i32, i32
  }
  func.func @transform_12(%arg0: i32) -> (i32, i32) {
    %c0_i32 = arith.constant 0 : i32
    %c0_i32_0 = arith.constant 0 : i32
    %c0_i32_1 = arith.constant 0 : i32
    return %c0_i32, %c0_i32_0 : i32, i32
  }
  func.func @transform_13(%arg0: i32) -> (i32, i32) {
    %c0_i32 = arith.constant 0 : i32
    %c0_i32_0 = arith.constant 0 : i32
    %c0_i32_1 = arith.constant 0 : i32
    return %c0_i32, %c0_i32_0 : i32, i32
  }
  func.func @transform_14(%arg0: i32) -> (i32, i32) {
    %c0_i32 = arith.constant 0 : i32
    %c0_i32_0 = arith.constant 0 : i32
    %c0_i32_1 = arith.constant 0 : i32
    return %c0_i32, %c0_i32_0 : i32, i32
  }
  func.func @transform_15(%arg0: i32) -> (i32, i32) {
    %c0_i32 = arith.constant 0 : i32
    %c0_i32_0 = arith.constant 0 : i32
    %c0_i32_1 = arith.constant 0 : i32
    return %c0_i32, %c0_i32_0 : i32, i32
  }
  func.func @transform_16(%arg0: i32) -> (i32, i32) {
    %c0_i32 = arith.constant 0 : i32
    %c0_i32_0 = arith.constant 0 : i32
    %c0_i32_1 = arith.constant 0 : i32
    return %c0_i32, %c0_i32_0 : i32, i32
  }
  func.func @transform_17(%arg0: i32) -> (i32, i32) {
    %c0_i32 = arith.constant 0 : i32
    %c0_i32_0 = arith.constant 0 : i32
    %c0_i32_1 = arith.constant 0 : i32
    return %c0_i32, %c0_i32_0 : i32, i32
  }
  func.func @transform_18(%arg0: i32) -> (i32, i32) {
    %c0_i32 = arith.constant 0 : i32
    %c0_i32_0 = arith.constant 0 : i32
    %c0_i32_1 = arith.constant 0 : i32
    return %c0_i32, %c0_i32_0 : i32, i32
  }
  func.func @transform_19(%arg0: i32) -> (i32, i32) {
    %c0_i32 = arith.constant 0 : i32
    %c0_i32_0 = arith.constant 0 : i32
    return %arg0, %c0_i32 : i32, i32
  }
}

module attributes {stable_mosaic.version = 11 : i64} {
  func.func @_point_encoder_kernel(%arg0: i32, %arg1: memref<32x2xf32, #tpu.memory_space<vmem>>, %arg2: memref<32x1xi32, #tpu.memory_space<vmem>>, %arg3: memref<2x128xf32, #tpu.memory_space<vmem>>, %arg4: memref<1x128xi32, #tpu.memory_space<vmem>>, %arg5: memref<64x128xf32, #tpu.memory_space<vmem>>, %arg6: memref<128x64xbf16, #tpu.memory_space<vmem>>, %arg7: memref<1x128xf32, #tpu.memory_space<vmem>>, %arg8: memref<64x128xf32, #tpu.memory_space<vmem>>, %arg9: memref<128x64xbf16, #tpu.memory_space<vmem>>, %arg10: memref<1x128xf32, #tpu.memory_space<vmem>>, %arg11: memref<2x64xf32, #tpu.memory_space<vmem>>, %arg12: memref<1x64xf32, #tpu.memory_space<vmem>>, %arg13: memref<1x64xf32, #tpu.memory_space<vmem>>, %arg14: memref<2x64xf32, #tpu.memory_space<vmem>>, %arg15: memref<1x64xf32, #tpu.memory_space<vmem>>, %arg16: memref<1x64xf32, #tpu.memory_space<vmem>>, %arg17: memref<64x128xf32, #tpu.memory_space<vmem>>, %arg18: memref<64x128xf32, #tpu.memory_space<vmem>>, %arg19: memref<1x128xf32, #tpu.memory_space<vmem>>, %arg20: memref<32x128xf32, #tpu.memory_space<vmem>>) attributes {dimension_semantics = [#tpu.dimension_semantics<parallel>], iteration_bounds = array<i64: 4>, scalar_prefetch = 0 : i64, scratch_operands = 0 : i64, tpu.core_type = #tpu.core_type<tc>, window_params = [{transform_indices = @transform_0, window_bounds = array<i64: 32, 2>}, {transform_indices = @transform_1, window_bounds = array<i64: 32, 1>}, {pipeline_mode = #tpu.pipeline_mode<synchronous>, transform_indices = @transform_2, window_bounds = array<i64: 2, 128>}, {pipeline_mode = #tpu.pipeline_mode<synchronous>, transform_indices = @transform_3, window_bounds = array<i64: 1, 128>}, {pipeline_mode = #tpu.pipeline_mode<synchronous>, transform_indices = @transform_4, window_bounds = array<i64: 64, 128>}, {pipeline_mode = #tpu.pipeline_mode<synchronous>, transform_indices = @transform_5, window_bounds = array<i64: 128, 64>}, {pipeline_mode = #tpu.pipeline_mode<synchronous>, transform_indices = @transform_6, window_bounds = array<i64: 1, 128>}, {pipeline_mode = #tpu.pipeline_mode<synchronous>, transform_indices = @transform_7, window_bounds = array<i64: 64, 128>}, {pipeline_mode = #tpu.pipeline_mode<synchronous>, transform_indices = @transform_8, window_bounds = array<i64: 128, 64>}, {pipeline_mode = #tpu.pipeline_mode<synchronous>, transform_indices = @transform_9, window_bounds = array<i64: 1, 128>}, {pipeline_mode = #tpu.pipeline_mode<synchronous>, transform_indices = @transform_10, window_bounds = array<i64: 2, 64>}, {pipeline_mode = #tpu.pipeline_mode<synchronous>, transform_indices = @transform_11, window_bounds = array<i64: 1, 64>}, {pipeline_mode = #tpu.pipeline_mode<synchronous>, transform_indices = @transform_12, window_bounds = array<i64: 1, 64>}, {pipeline_mode = #tpu.pipeline_mode<synchronous>, transform_indices = @transform_13, window_bounds = array<i64: 2, 64>}, {pipeline_mode = #tpu.pipeline_mode<synchronous>, transform_indices = @transform_14, window_bounds = array<i64: 1, 64>}, {pipeline_mode = #tpu.pipeline_mode<synchronous>, transform_indices = @transform_15, window_bounds = array<i64: 1, 64>}, {pipeline_mode = #tpu.pipeline_mode<synchronous>, transform_indices = @transform_16, window_bounds = array<i64: 64, 128>}, {pipeline_mode = #tpu.pipeline_mode<synchronous>, transform_indices = @transform_17, window_bounds = array<i64: 64, 128>}, {pipeline_mode = #tpu.pipeline_mode<synchronous>, transform_indices = @transform_18, window_bounds = array<i64: 1, 128>}, {transform_indices = @transform_19, window_bounds = array<i64: 32, 128>}]} {
    %c0 = arith.constant 0 : index
    %c0_0 = arith.constant 0 : index
    %0 = vector.load %arg1[%c0, %c0_0] : memref<32x2xf32, #tpu.memory_space<vmem>>, vector<32x2xf32>
    %c0_1 = arith.constant 0 : index
    %c0_2 = arith.constant 0 : index
    %1 = vector.load %arg2[%c0_1, %c0_2] : memref<32x1xi32, #tpu.memory_space<vmem>>, vector<32x1xi32>
    %c0_3 = arith.constant 0 : index
    %c0_4 = arith.constant 0 : index
    %2 = vector.load %arg3[%c0_3, %c0_4] : memref<2x128xf32, #tpu.memory_space<vmem>>, vector<2x128xf32>
    %c0_5 = arith.constant 0 : index
    %c0_6 = arith.constant 0 : index
    %3 = vector.load %arg4[%c0_5, %c0_6] : memref<1x128xi32, #tpu.memory_space<vmem>>, vector<1x128xi32>
    %4 = vector.extract_strided_slice %0 {offsets = [0, 0], sizes = [32, 1], strides = [1, 1]} : vector<32x2xf32> to vector<32x1xf32>
    %5 = vector.extract_strided_slice %2 {offsets = [0, 0], sizes = [1, 128], strides = [1, 1]} : vector<2x128xf32> to vector<1x128xf32>
    %6 = vector.broadcast %4 : vector<32x1xf32> to vector<32x128xf32>
    %7 = vector.broadcast %5 : vector<1x128xf32> to vector<32x128xf32>
    %8 = arith.subf %6, %7 : vector<32x128xf32>
    %9 = vector.extract_strided_slice %0 {offsets = [0, 1], sizes = [32, 1], strides = [1, 1]} : vector<32x2xf32> to vector<32x1xf32>
    %10 = vector.extract_strided_slice %2 {offsets = [1, 0], sizes = [1, 128], strides = [1, 1]} : vector<2x128xf32> to vector<1x128xf32>
    %11 = vector.broadcast %9 : vector<32x1xf32> to vector<32x128xf32>
    %12 = vector.broadcast %10 : vector<1x128xf32> to vector<32x128xf32>
    %13 = arith.subf %11, %12 : vector<32x128xf32>
    %14 = arith.mulf %8, %8 : vector<32x128xf32>
    %15 = arith.mulf %13, %13 : vector<32x128xf32>
    %16 = arith.addf %14, %15 : vector<32x128xf32>
    %17 = vector.broadcast %1 : vector<32x1xi32> to vector<32x128xi32>
    %18 = vector.broadcast %3 : vector<1x128xi32> to vector<32x128xi32>
    %19 = arith.cmpi eq, %17, %18 : vector<32x128xi32>
    %cst = arith.constant 2.250000e+00 : f32
    %20 = vector.broadcast %cst : f32 to vector<32x128xf32>
    %21 = arith.cmpf ole, %16, %20 : vector<32x128xf32>
    %22 = arith.andi %21, %19 : vector<32x128xi1>
    %cst_7 = arith.constant 1.000000e+00 : f32
    %cst_8 = arith.constant 0.000000e+00 : f32
    %23 = vector.broadcast %cst_7 : f32 to vector<32x128xf32>
    %24 = vector.broadcast %cst_8 : f32 to vector<32x128xf32>
    %25 = arith.select %22, %23, %24 : vector<32x128xi1>, vector<32x128xf32>
    %cst_9 = arith.constant dense<0.000000e+00> : vector<32xf32>
    %26 = vector.multi_reduction <add>, %25, %cst_9 [1] : vector<32x128xf32> to vector<32xf32>
    %27 = vector.shape_cast %26 : vector<32xf32> to vector<32x1xf32>
    %c0_10 = arith.constant 0 : index
    %c0_11 = arith.constant 0 : index
    %28 = vector.load %arg11[%c0_10, %c0_11] : memref<2x64xf32, #tpu.memory_space<vmem>>, vector<2x64xf32>
    %29 = vector.extract_strided_slice %0 {offsets = [0, 0], sizes = [32, 1], strides = [1, 1]} : vector<32x2xf32> to vector<32x1xf32>
    %30 = vector.extract_strided_slice %28 {offsets = [0, 0], sizes = [1, 64], strides = [1, 1]} : vector<2x64xf32> to vector<1x64xf32>
    %31 = vector.broadcast %29 : vector<32x1xf32> to vector<32x64xf32>
    %32 = vector.broadcast %30 : vector<1x64xf32> to vector<32x64xf32>
    %33 = arith.mulf %31, %32 : vector<32x64xf32>
    %34 = vector.extract_strided_slice %0 {offsets = [0, 1], sizes = [32, 1], strides = [1, 1]} : vector<32x2xf32> to vector<32x1xf32>
    %35 = vector.extract_strided_slice %28 {offsets = [1, 0], sizes = [1, 64], strides = [1, 1]} : vector<2x64xf32> to vector<1x64xf32>
    %36 = vector.broadcast %34 : vector<32x1xf32> to vector<32x64xf32>
    %37 = vector.broadcast %35 : vector<1x64xf32> to vector<32x64xf32>
    %38 = arith.mulf %36, %37 : vector<32x64xf32>
    %39 = arith.addf %33, %38 : vector<32x64xf32>
    %cst_12 = arith.constant dense<0.000000e+00> : vector<32xf32>
    %40 = vector.multi_reduction <add>, %39, %cst_12 [1] : vector<32x64xf32> to vector<32xf32>
    %41 = vector.shape_cast %40 : vector<32xf32> to vector<32x1xf32>
    %cst_13 = arith.constant 6.400000e+01 : f32
    %42 = vector.broadcast %cst_13 : f32 to vector<32x1xf32>
    %43 = arith.divf %41, %42 : vector<32x1xf32>
    %44 = vector.broadcast %43 : vector<32x1xf32> to vector<32x64xf32>
    %45 = arith.subf %39, %44 : vector<32x64xf32>
    %46 = arith.mulf %45, %45 : vector<32x64xf32>
    %cst_14 = arith.constant dense<0.000000e+00> : vector<32xf32>
    %47 = vector.multi_reduction <add>, %46, %cst_14 [1] : vector<32x64xf32> to vector<32xf32>
    %48 = vector.shape_cast %47 : vector<32xf32> to vector<32x1xf32>
    %cst_15 = arith.constant 6.400000e+01 : f32
    %49 = vector.broadcast %cst_15 : f32 to vector<32x1xf32>
    %50 = arith.divf %48, %49 : vector<32x1xf32>
    %cst_16 = arith.constant -3.125000e-02 : f32
    %51 = vector.broadcast %cst_16 : f32 to vector<32x64xf32>
    %52 = arith.mulf %45, %51 : vector<32x64xf32>
    %c0_17 = arith.constant 0 : index
    %c0_18 = arith.constant 0 : index
    %53 = vector.load %arg5[%c0_17, %c0_18] : memref<64x128xf32, #tpu.memory_space<vmem>>, vector<64x128xf32>
    %cst_19 = arith.constant dense<0.000000e+00> : vector<32x128xf32>
    %54 = tpu.matmul %52, %53, %cst_19 {dimension_numbers = #tpu.dot_dimension_numbers<[1], [0], [0], [1], [0, 0, 1, 1], [], []>} : vector<32x64xf32>, vector<64x128xf32>, vector<32x128xf32> -> vector<32x128xf32>
    %c0_20 = arith.constant 0 : index
    %c0_21 = arith.constant 0 : index
    %55 = vector.load %arg7[%c0_20, %c0_21] : memref<1x128xf32, #tpu.memory_space<vmem>>, vector<1x128xf32>
    %56 = vector.broadcast %50 : vector<32x1xf32> to vector<32x128xf32>
    %57 = vector.broadcast %55 : vector<1x128xf32> to vector<32x128xf32>
    %58 = arith.addf %56, %57 : vector<32x128xf32>
    %59 = arith.addf %58, %54 : vector<32x128xf32>
    %cst_22 = arith.constant 0.000000e+00 : f32
    %60 = vector.broadcast %cst_22 : f32 to vector<32x128xf32>
    %61 = arith.maximumf %59, %60 : vector<32x128xf32>
    %cst_23 = arith.constant 9.99999974E-6 : f32
    %62 = vector.broadcast %cst_23 : f32 to vector<32x128xf32>
    %63 = arith.addf %61, %62 : vector<32x128xf32>
    %64 = math.rsqrt %63 : vector<32x128xf32>
    %cst_24 = arith.constant 0.000000e+00 : f32
    %65 = vector.broadcast %cst_24 : f32 to vector<32x128xf32>
    %66 = arith.select %22, %64, %65 : vector<32x128xi1>, vector<32x128xf32>
    %cst_25 = arith.constant dense<0.000000e+00> : vector<32xf32>
    %67 = vector.multi_reduction <add>, %66, %cst_25 [1] : vector<32x128xf32> to vector<32xf32>
    %68 = vector.shape_cast %67 : vector<32xf32> to vector<32x1xf32>
    %69 = arith.truncf %66 : vector<32x128xf32> to vector<32x128xbf16>
    %c0_26 = arith.constant 0 : index
    %c0_27 = arith.constant 0 : index
    %70 = vector.load %arg6[%c0_26, %c0_27] : memref<128x64xbf16, #tpu.memory_space<vmem>>, vector<128x64xbf16>
    %cst_28 = arith.constant dense<0.000000e+00> : vector<32x64xf32>
    %71 = tpu.matmul %69, %70, %cst_28 {dimension_numbers = #tpu.dot_dimension_numbers<[1], [0], [0], [1], [0, 0, 1, 1], [], []>} : vector<32x128xbf16>, vector<128x64xbf16>, vector<32x64xf32> -> vector<32x64xf32>
    %c0_29 = arith.constant 0 : index
    %c0_30 = arith.constant 0 : index
    %72 = vector.load %arg12[%c0_29, %c0_30] : memref<1x64xf32, #tpu.memory_space<vmem>>, vector<1x64xf32>
    %73 = vector.broadcast %68 : vector<32x1xf32> to vector<32x64xf32>
    %74 = arith.mulf %45, %73 : vector<32x64xf32>
    %75 = arith.subf %71, %74 : vector<32x64xf32>
    %76 = vector.broadcast %72 : vector<1x64xf32> to vector<32x64xf32>
    %77 = arith.mulf %76, %75 : vector<32x64xf32>
    %cst_31 = arith.constant 1.000000e+00 : f32
    %78 = vector.broadcast %cst_31 : f32 to vector<32x1xf32>
    %79 = arith.divf %78, %27 : vector<32x1xf32>
    %80 = vector.broadcast %79 : vector<32x1xf32> to vector<32x64xf32>
    %81 = arith.mulf %77, %80 : vector<32x64xf32>
    %c0_32 = arith.constant 0 : index
    %c0_33 = arith.constant 0 : index
    %82 = vector.load %arg13[%c0_32, %c0_33] : memref<1x64xf32, #tpu.memory_space<vmem>>, vector<1x64xf32>
    %83 = vector.broadcast %82 : vector<1x64xf32> to vector<32x64xf32>
    %84 = arith.addf %81, %83 : vector<32x64xf32>
    %cst_34 = arith.constant 0.000000e+00 : f32
    %85 = vector.broadcast %cst_34 : f32 to vector<32x64xf32>
    %86 = arith.maximumf %84, %85 : vector<32x64xf32>
    %cst_35 = arith.constant 6.250000e+00 : f32
    %87 = vector.broadcast %cst_35 : f32 to vector<32x128xf32>
    %88 = arith.cmpf ole, %16, %87 : vector<32x128xf32>
    %89 = arith.andi %88, %19 : vector<32x128xi1>
    %cst_36 = arith.constant 1.000000e+00 : f32
    %cst_37 = arith.constant 0.000000e+00 : f32
    %90 = vector.broadcast %cst_36 : f32 to vector<32x128xf32>
    %91 = vector.broadcast %cst_37 : f32 to vector<32x128xf32>
    %92 = arith.select %89, %90, %91 : vector<32x128xi1>, vector<32x128xf32>
    %cst_38 = arith.constant dense<0.000000e+00> : vector<32xf32>
    %93 = vector.multi_reduction <add>, %92, %cst_38 [1] : vector<32x128xf32> to vector<32xf32>
    %94 = vector.shape_cast %93 : vector<32xf32> to vector<32x1xf32>
    %c0_39 = arith.constant 0 : index
    %c0_40 = arith.constant 0 : index
    %95 = vector.load %arg14[%c0_39, %c0_40] : memref<2x64xf32, #tpu.memory_space<vmem>>, vector<2x64xf32>
    %96 = vector.extract_strided_slice %0 {offsets = [0, 0], sizes = [32, 1], strides = [1, 1]} : vector<32x2xf32> to vector<32x1xf32>
    %97 = vector.extract_strided_slice %95 {offsets = [0, 0], sizes = [1, 64], strides = [1, 1]} : vector<2x64xf32> to vector<1x64xf32>
    %98 = vector.broadcast %96 : vector<32x1xf32> to vector<32x64xf32>
    %99 = vector.broadcast %97 : vector<1x64xf32> to vector<32x64xf32>
    %100 = arith.mulf %98, %99 : vector<32x64xf32>
    %101 = vector.extract_strided_slice %0 {offsets = [0, 1], sizes = [32, 1], strides = [1, 1]} : vector<32x2xf32> to vector<32x1xf32>
    %102 = vector.extract_strided_slice %95 {offsets = [1, 0], sizes = [1, 64], strides = [1, 1]} : vector<2x64xf32> to vector<1x64xf32>
    %103 = vector.broadcast %101 : vector<32x1xf32> to vector<32x64xf32>
    %104 = vector.broadcast %102 : vector<1x64xf32> to vector<32x64xf32>
    %105 = arith.mulf %103, %104 : vector<32x64xf32>
    %106 = arith.addf %100, %105 : vector<32x64xf32>
    %cst_41 = arith.constant dense<0.000000e+00> : vector<32xf32>
    %107 = vector.multi_reduction <add>, %106, %cst_41 [1] : vector<32x64xf32> to vector<32xf32>
    %108 = vector.shape_cast %107 : vector<32xf32> to vector<32x1xf32>
    %cst_42 = arith.constant 6.400000e+01 : f32
    %109 = vector.broadcast %cst_42 : f32 to vector<32x1xf32>
    %110 = arith.divf %108, %109 : vector<32x1xf32>
    %111 = vector.broadcast %110 : vector<32x1xf32> to vector<32x64xf32>
    %112 = arith.subf %106, %111 : vector<32x64xf32>
    %113 = arith.mulf %112, %112 : vector<32x64xf32>
    %cst_43 = arith.constant dense<0.000000e+00> : vector<32xf32>
    %114 = vector.multi_reduction <add>, %113, %cst_43 [1] : vector<32x64xf32> to vector<32xf32>
    %115 = vector.shape_cast %114 : vector<32xf32> to vector<32x1xf32>
    %cst_44 = arith.constant 6.400000e+01 : f32
    %116 = vector.broadcast %cst_44 : f32 to vector<32x1xf32>
    %117 = arith.divf %115, %116 : vector<32x1xf32>
    %cst_45 = arith.constant -3.125000e-02 : f32
    %118 = vector.broadcast %cst_45 : f32 to vector<32x64xf32>
    %119 = arith.mulf %112, %118 : vector<32x64xf32>
    %c0_46 = arith.constant 0 : index
    %c0_47 = arith.constant 0 : index
    %120 = vector.load %arg8[%c0_46, %c0_47] : memref<64x128xf32, #tpu.memory_space<vmem>>, vector<64x128xf32>
    %cst_48 = arith.constant dense<0.000000e+00> : vector<32x128xf32>
    %121 = tpu.matmul %119, %120, %cst_48 {dimension_numbers = #tpu.dot_dimension_numbers<[1], [0], [0], [1], [0, 0, 1, 1], [], []>} : vector<32x64xf32>, vector<64x128xf32>, vector<32x128xf32> -> vector<32x128xf32>
    %c0_49 = arith.constant 0 : index
    %c0_50 = arith.constant 0 : index
    %122 = vector.load %arg10[%c0_49, %c0_50] : memref<1x128xf32, #tpu.memory_space<vmem>>, vector<1x128xf32>
    %123 = vector.broadcast %117 : vector<32x1xf32> to vector<32x128xf32>
    %124 = vector.broadcast %122 : vector<1x128xf32> to vector<32x128xf32>
    %125 = arith.addf %123, %124 : vector<32x128xf32>
    %126 = arith.addf %125, %121 : vector<32x128xf32>
    %cst_51 = arith.constant 0.000000e+00 : f32
    %127 = vector.broadcast %cst_51 : f32 to vector<32x128xf32>
    %128 = arith.maximumf %126, %127 : vector<32x128xf32>
    %cst_52 = arith.constant 9.99999974E-6 : f32
    %129 = vector.broadcast %cst_52 : f32 to vector<32x128xf32>
    %130 = arith.addf %128, %129 : vector<32x128xf32>
    %131 = math.rsqrt %130 : vector<32x128xf32>
    %cst_53 = arith.constant 0.000000e+00 : f32
    %132 = vector.broadcast %cst_53 : f32 to vector<32x128xf32>
    %133 = arith.select %89, %131, %132 : vector<32x128xi1>, vector<32x128xf32>
    %cst_54 = arith.constant dense<0.000000e+00> : vector<32xf32>
    %134 = vector.multi_reduction <add>, %133, %cst_54 [1] : vector<32x128xf32> to vector<32xf32>
    %135 = vector.shape_cast %134 : vector<32xf32> to vector<32x1xf32>
    %136 = arith.truncf %133 : vector<32x128xf32> to vector<32x128xbf16>
    %c0_55 = arith.constant 0 : index
    %c0_56 = arith.constant 0 : index
    %137 = vector.load %arg9[%c0_55, %c0_56] : memref<128x64xbf16, #tpu.memory_space<vmem>>, vector<128x64xbf16>
    %cst_57 = arith.constant dense<0.000000e+00> : vector<32x64xf32>
    %138 = tpu.matmul %136, %137, %cst_57 {dimension_numbers = #tpu.dot_dimension_numbers<[1], [0], [0], [1], [0, 0, 1, 1], [], []>} : vector<32x128xbf16>, vector<128x64xbf16>, vector<32x64xf32> -> vector<32x64xf32>
    %c0_58 = arith.constant 0 : index
    %c0_59 = arith.constant 0 : index
    %139 = vector.load %arg15[%c0_58, %c0_59] : memref<1x64xf32, #tpu.memory_space<vmem>>, vector<1x64xf32>
    %140 = vector.broadcast %135 : vector<32x1xf32> to vector<32x64xf32>
    %141 = arith.mulf %112, %140 : vector<32x64xf32>
    %142 = arith.subf %138, %141 : vector<32x64xf32>
    %143 = vector.broadcast %139 : vector<1x64xf32> to vector<32x64xf32>
    %144 = arith.mulf %143, %142 : vector<32x64xf32>
    %cst_60 = arith.constant 1.000000e+00 : f32
    %145 = vector.broadcast %cst_60 : f32 to vector<32x1xf32>
    %146 = arith.divf %145, %94 : vector<32x1xf32>
    %147 = vector.broadcast %146 : vector<32x1xf32> to vector<32x64xf32>
    %148 = arith.mulf %144, %147 : vector<32x64xf32>
    %c0_61 = arith.constant 0 : index
    %c0_62 = arith.constant 0 : index
    %149 = vector.load %arg16[%c0_61, %c0_62] : memref<1x64xf32, #tpu.memory_space<vmem>>, vector<1x64xf32>
    %150 = vector.broadcast %149 : vector<1x64xf32> to vector<32x64xf32>
    %151 = arith.addf %148, %150 : vector<32x64xf32>
    %cst_63 = arith.constant 0.000000e+00 : f32
    %152 = vector.broadcast %cst_63 : f32 to vector<32x64xf32>
    %153 = arith.maximumf %151, %152 : vector<32x64xf32>
    %c0_64 = arith.constant 0 : index
    %c0_65 = arith.constant 0 : index
    %154 = vector.load %arg17[%c0_64, %c0_65] : memref<64x128xf32, #tpu.memory_space<vmem>>, vector<64x128xf32>
    %cst_66 = arith.constant dense<0.000000e+00> : vector<32x128xf32>
    %155 = tpu.matmul %86, %154, %cst_66 {dimension_numbers = #tpu.dot_dimension_numbers<[1], [0], [0], [1], [0, 0, 1, 1], [], []>} : vector<32x64xf32>, vector<64x128xf32>, vector<32x128xf32> -> vector<32x128xf32>
    %c0_67 = arith.constant 0 : index
    %c0_68 = arith.constant 0 : index
    %156 = vector.load %arg18[%c0_67, %c0_68] : memref<64x128xf32, #tpu.memory_space<vmem>>, vector<64x128xf32>
    %cst_69 = arith.constant dense<0.000000e+00> : vector<32x128xf32>
    %157 = tpu.matmul %153, %156, %cst_69 {dimension_numbers = #tpu.dot_dimension_numbers<[1], [0], [0], [1], [0, 0, 1, 1], [], []>} : vector<32x64xf32>, vector<64x128xf32>, vector<32x128xf32> -> vector<32x128xf32>
    %158 = arith.addf %155, %157 : vector<32x128xf32>
    %c0_70 = arith.constant 0 : index
    %c0_71 = arith.constant 0 : index
    %159 = vector.load %arg19[%c0_70, %c0_71] : memref<1x128xf32, #tpu.memory_space<vmem>>, vector<1x128xf32>
    %160 = vector.broadcast %159 : vector<1x128xf32> to vector<32x128xf32>
    %161 = arith.addf %158, %160 : vector<32x128xf32>
    %c0_72 = arith.constant 0 : index
    %c0_73 = arith.constant 0 : index
    %162 = vector.load %arg20[%c0_72, %c0_73] : memref<32x128xf32, #tpu.memory_space<vmem>>, vector<32x128xf32>
    tpu.vector_store %arg20[%c0_72, %c0_73], %161 {strides = array<i32>} : memref<32x128xf32, #tpu.memory_space<vmem>>, vector<32x128xf32>,
    return
  }
  func.func @transform_0(%arg0: i32) -> (i32, i32) {
    %c0_i32 = arith.constant 0 : i32
    %c0_i32_0 = arith.constant 0 : i32
    return %arg0, %c0_i32 : i32, i32
  }
  func.func @transform_1(%arg0: i32) -> (i32, i32) {
    %c0_i32 = arith.constant 0 : i32
    %c0_i32_0 = arith.constant 0 : i32
    return %arg0, %c0_i32 : i32, i32
  }
  func.func @transform_2(%arg0: i32) -> (i32, i32) {
    %c0_i32 = arith.constant 0 : i32
    %c0_i32_0 = arith.constant 0 : i32
    %c0_i32_1 = arith.constant 0 : i32
    return %c0_i32, %c0_i32_0 : i32, i32
  }
  func.func @transform_3(%arg0: i32) -> (i32, i32) {
    %c0_i32 = arith.constant 0 : i32
    %c0_i32_0 = arith.constant 0 : i32
    %c0_i32_1 = arith.constant 0 : i32
    return %c0_i32, %c0_i32_0 : i32, i32
  }
  func.func @transform_4(%arg0: i32) -> (i32, i32) {
    %c0_i32 = arith.constant 0 : i32
    %c0_i32_0 = arith.constant 0 : i32
    %c0_i32_1 = arith.constant 0 : i32
    return %c0_i32, %c0_i32_0 : i32, i32
  }
  func.func @transform_5(%arg0: i32) -> (i32, i32) {
    %c0_i32 = arith.constant 0 : i32
    %c0_i32_0 = arith.constant 0 : i32
    %c0_i32_1 = arith.constant 0 : i32
    return %c0_i32, %c0_i32_0 : i32, i32
  }
  func.func @transform_6(%arg0: i32) -> (i32, i32) {
    %c0_i32 = arith.constant 0 : i32
    %c0_i32_0 = arith.constant 0 : i32
    %c0_i32_1 = arith.constant 0 : i32
    return %c0_i32, %c0_i32_0 : i32, i32
  }
  func.func @transform_7(%arg0: i32) -> (i32, i32) {
    %c0_i32 = arith.constant 0 : i32
    %c0_i32_0 = arith.constant 0 : i32
    %c0_i32_1 = arith.constant 0 : i32
    return %c0_i32, %c0_i32_0 : i32, i32
  }
  func.func @transform_8(%arg0: i32) -> (i32, i32) {
    %c0_i32 = arith.constant 0 : i32
    %c0_i32_0 = arith.constant 0 : i32
    %c0_i32_1 = arith.constant 0 : i32
    return %c0_i32, %c0_i32_0 : i32, i32
  }
  func.func @transform_9(%arg0: i32) -> (i32, i32) {
    %c0_i32 = arith.constant 0 : i32
    %c0_i32_0 = arith.constant 0 : i32
    %c0_i32_1 = arith.constant 0 : i32
    return %c0_i32, %c0_i32_0 : i32, i32
  }
  func.func @transform_10(%arg0: i32) -> (i32, i32) {
    %c0_i32 = arith.constant 0 : i32
    %c0_i32_0 = arith.constant 0 : i32
    %c0_i32_1 = arith.constant 0 : i32
    return %c0_i32, %c0_i32_0 : i32, i32
  }
  func.func @transform_11(%arg0: i32) -> (i32, i32) {
    %c0_i32 = arith.constant 0 : i32
    %c0_i32_0 = arith.constant 0 : i32
    %c0_i32_1 = arith.constant 0 : i32
    return %c0_i32, %c0_i32_0 : i32, i32
  }
  func.func @transform_12(%arg0: i32) -> (i32, i32) {
    %c0_i32 = arith.constant 0 : i32
    %c0_i32_0 = arith.constant 0 : i32
    %c0_i32_1 = arith.constant 0 : i32
    return %c0_i32, %c0_i32_0 : i32, i32
  }
  func.func @transform_13(%arg0: i32) -> (i32, i32) {
    %c0_i32 = arith.constant 0 : i32
    %c0_i32_0 = arith.constant 0 : i32
    %c0_i32_1 = arith.constant 0 : i32
    return %c0_i32, %c0_i32_0 : i32, i32
  }
  func.func @transform_14(%arg0: i32) -> (i32, i32) {
    %c0_i32 = arith.constant 0 : i32
    %c0_i32_0 = arith.constant 0 : i32
    %c0_i32_1 = arith.constant 0 : i32
    return %c0_i32, %c0_i32_0 : i32, i32
  }
  func.func @transform_15(%arg0: i32) -> (i32, i32) {
    %c0_i32 = arith.constant 0 : i32
    %c0_i32_0 = arith.constant 0 : i32
    %c0_i32_1 = arith.constant 0 : i32
    return %c0_i32, %c0_i32_0 : i32, i32
  }
  func.func @transform_16(%arg0: i32) -> (i32, i32) {
    %c0_i32 = arith.constant 0 : i32
    %c0_i32_0 = arith.constant 0 : i32
    %c0_i32_1 = arith.constant 0 : i32
    return %c0_i32, %c0_i32_0 : i32, i32
  }
  func.func @transform_17(%arg0: i32) -> (i32, i32) {
    %c0_i32 = arith.constant 0 : i32
    %c0_i32_0 = arith.constant 0 : i32
    %c0_i32_1 = arith.constant 0 : i32
    return %c0_i32, %c0_i32_0 : i32, i32
  }
  func.func @transform_18(%arg0: i32) -> (i32, i32) {
    %c0_i32 = arith.constant 0 : i32
    %c0_i32_0 = arith.constant 0 : i32
    %c0_i32_1 = arith.constant 0 : i32
    return %c0_i32, %c0_i32_0 : i32, i32
  }
  func.func @transform_19(%arg0: i32) -> (i32, i32) {
    %c0_i32 = arith.constant 0 : i32
    %c0_i32_0 = arith.constant 0 : i32
    return %arg0, %c0_i32 : i32, i32
  }
}

</mosaic_0001>

<bundles_post_ra>
// kernel: tpu_custom_call.1
= control target key start
LH: loop header
LB: loop body
LE: loop exit
PB: predicated region body
PF: predicated region fallthrough
CT: control target
= control target key end

     0   :  { %s2958_s0 = inlined_call_operand.vmem [shape: f32[128,2], index: 0, kind: input, shape index: {}]   ;;  %s2959_s1 = inlined_call_operand.vmem [shape: s32[128,1], index: 1, kind: input, shape index: {}]   ;;  %s2960_s2 = inlined_call_operand.vmem [shape: f32[2,128], index: 2, kind: input, shape index: {}]   ;;  %s2961_s3 = inlined_call_operand.vmem [shape: s32[1,128], index: 3, kind: input, shape index: {}]   ;;  %s2962_s4 = inlined_call_operand.vmem [shape: f32[64,128], index: 4, kind: input, shape index: {}]   ;;  %s2963_s5 = inlined_call_operand.vmem [shape: bf16[128,64], index: 5, kind: input, shape index: {}]   ;;  %s2964_s6 = inlined_call_operand.vmem [shape: f32[1,128], index: 6, kind: input, shape index: {}]   ;;  %s2965_s7 = inlined_call_operand.vmem [shape: f32[64,128], index: 7, kind: input, shape index: {}]   ;;  %s2966_s8 = inlined_call_operand.vmem [shape: bf16[128,64], index: 8, kind: input, shape index: {}]   ;;  %s2967_s9 = inlined_call_operand.vmem [shape: f32[1,128], index: 9, kind: input, shape index: {}]   ;;  %s2968_s10 = inlined_call_operand.vmem [shape: f32[2,64], index: 10, kind: input, shape index: {}]   ;;  %s2969_s11 = inlined_call_operand.vmem [shape: f32[1,64], index: 11, kind: input, shape index: {}]   ;;  %s2970_s12 = inlined_call_operand.vmem [shape: f32[1,64], index: 12, kind: input, shape index: {}]   ;;  %s2971_s13 = inlined_call_operand.vmem [shape: f32[2,64], index: 13, kind: input, shape index: {}]   ;;  %s2972_s14 = inlined_call_operand.vmem [shape: f32[1,64], index: 14, kind: input, shape index: {}]   ;;  %s2973_s15 = inlined_call_operand.vmem [shape: f32[1,64], index: 15, kind: input, shape index: {}]   ;;  %s2974_s16 = inlined_call_operand.vmem [shape: f32[64,128], index: 16, kind: input, shape index: {}]   ;;  %s2975_s17 = inlined_call_operand.vmem [shape: f32[64,128], index: 17, kind: input, shape index: {}]   ;;  %s2976_s18 = inlined_call_operand.vmem [shape: f32[1,128], index: 18, kind: input, shape index: {}]   ;;  %s2977_s19 = inlined_call_operand.hbm [shape: f32[128,128], index: 19, kind: output, shape index: {}]  }
   0x1   :  { %2984 = sst [smem:[#allocation10_spill]] %s2958_s0 }
   0x2   :  { %2985 = sst [smem:[#allocation11_spill]] %s2959_s1 }
   0x3   :  { %2986 = sst [smem:[#allocation12_spill]] %s2960_s2 }
   0x4   :  { %2987 = sst [smem:[#allocation13_spill]] %s2961_s3 }
   0x5   :  { %24 = vsyncpa [#allocation3], 0 }
   0x6   :  { %26 = vsyncpa [#allocation3 + $0x1], 0  ;;  %s2415_s0 = smov 0   ;;  %s2417_s30 = smov 0  }
   0x7   :  { %s2419_s20 = smov 0   ;;  %s2421_s21 = smov 0  }
   0x8 LB: > { %2988 = sst [smem:[#allocation5_spill]] %s2295_s0  ;;  %s2436_s1 = sadd.s32 4294967295, %s2307_s21   ;;  %s2307_s21 = sphi %s2421_s21, %s3018_s21   ;;  %s2303_s20 = sphi %s2419_s20, %s3023_s20   ;;  %s2299_s30 = sphi %s2417_s30, %s3022_s30   ;;  %s2295_s0 = sphi %s2415_s0, %s3021_s0  }
   0x9   : > { %2989 = sst [smem:[#allocation6_spill]] %s2303_s20  ;;  %s1816_s22 = sadd.s32 4294967294, %s2307_s21  }
   0xa   : > { %s2440_s2 = sadd.s32 1, %s2307_s21   ;;  %s448_s23 = sadd.s32 1, %s2303_s20 }
   0xb   : > { %2990 = sst [smem:[#allocation7_spill]] %s2440_s2  ;;  %s445_s24 = ssub.s32 %s2307_s21, %s2440_s2 }
   0xc   : > { %p458_p0 = scmp.ne.s32.totalorder %s2303_s20, %s2299_s30  ;;  %p446_p1 = scmp.eq.s32.totalorder %s445_s24, 0 }
   0xd   : > { %p459_p2 = scmp.eq.s32.totalorder %s2436_s1, 3  ;;  %p464_p3 = scmp.ne.s32.totalorder %s2299_s30, %s2295_s0 }
   0xe   : > { %p465_p4 = scmp.eq.s32.totalorder %s1816_s22, 3  ;;  %p1819_p7 = scmp.ge.s32.totalorder %s2307_s21, 1 }
   0xf   : > { %s2451_s25 = scalar_select %p446_p1, %s2303_s20, %s448_s23  }
  0x10   : > { %p2453_p5 = por %p459_p2, %p458_p0  ;;  %p2457_p6 = por %p465_p4, %p464_p3 }
  0x11   : > { %2991 = sst [smem:[#allocation8_spill]] %s2451_s25  ;;  %p552_p8 = scmp.lt.s32.totalorder %s2307_s21, 5 }
  0x12   : > { %s2993_s26 = scalar_select %p2457_p6, 1, 0 }
  0x13   : > { %p553_p9 = pnand %p1819_p7, %p552_p8 }
  0x14   : > { %2994 = sst [smem:[#allocation9_spill]] %s2993_s26  ;;  %s1821_s27 = sshll.u32 (!%p553_p9), %s2436_s1, 2  ;;  %v2309_v0 = vmov (!%p553_p9), 0   ;;  %v2310_v3 = vmov (!%p553_p9), 1   ;;  %v808_v6 = vld [vmem:[%s2962_s4] sm:$0xff] (!%p553_p9)  ;;  %v809_v7 = vld [vmem:[%s2962_s4 + $0x8] sm:$0xff] (!%p553_p9)  ;;  %v657_v15 = vlaneseq (!%p553_p9) }
  0x15   : > { %556 = sbr.rel (%p553_p9) target bundleno = 1046 (0x416), region = 96  ;;  %2193 = vset.pattern.permute.xlu1 (!%p553_p9), %v2309_v0  ;;  %2191 = vset.pattern.permute.xlu0 (!%p553_p9), %v2309_v0  ;;  %p614_p10 = scmp.lt.s32.totalorder (!%p553_p9), %s1821_s27, 15  ;;  %v810_v8 = vld [vmem:[%s2962_s4 + $0x10] sm:$0xff] (!%p553_p9)  ;;  %v2079_v9 = vpack.c.bf16 (!%p553_p9), %v809_v7, %v808_v6  ;;  %v811_v10 = vld [vmem:[%s2962_s4 + $0x18] sm:$0xff] (!%p553_p9)  ;;  %v812_v12 = vld [vmem:[%s2962_s4 + $0x20] sm:$0xff] (!%p553_p9)  ;;  %vm762_vm0 = vcmask (!%p553_p9), 523264  }
  0x16   : > { %s2995_s23 = sld [smem:[#allocation10_spill]] (!%p553_p9)  ;;  %v2083_v11 = vpack.c.bf16 (!%p553_p9), %v811_v10, %v810_v8  ;;  %v813_v13 = vld [vmem:[%s2962_s4 + $0x28] sm:$0xff] (!%p553_p9)  ;;  %v658_v16 = vshrl.u32 (!%p553_p9), %v657_v15, 7  ;;  %s2996_s26 = sld [smem:[#allocation12_spill]] (!%p553_p9)  ;;  %v741_v21 = vld [vmem:[%s2968_s10] sm:$0x3] (!%p553_p9) }
  0x17   : > { %2080 = vmatprep.subr.bf16.mxu0 (!%p553_p9), %v2079_v9  ;;  %v2087_v14 = vpack.c.bf16 (!%p553_p9), %v813_v13, %v812_v12  ;;  %v1133_v27 = vld [vmem:[%s2971_s13] sm:$0x3] (!%p553_p9)  ;;  %s2998_s20 = sld [smem:[#allocation11_spill]] (!%p553_p9)  ;;  %s2999_s0 = sld [smem:[#allocation13_spill]] (!%p553_p9) }
  0x18   : > { %2082 = vmatpush3.bf16.msra.mxu0 (!%p553_p9), %v2079_v9  ;;  %v659_v17 = vsub.s32 (!%p553_p9), 0, %v658_v16  ;;  %v683_v20 = vsub.s32 (!%p553_p9), 1, %v658_v16  ;;  %s1882_s29 = sshll.u32 (!%p553_p9), %s2436_s1, 9 }
  0x19   : > { %2084 = vmatprep.subr.bf16.mxu0 (!%p553_p9), %v2083_v11 }
  0x1a   : > { %v745_v26 = vrot.slane (!%p553_p9), %v741_v21, %v659_v17  ;;  %v753_v29 = vrot.slane (!%p553_p9), %v741_v21, %v683_v20  ;;  %v1137_v30 = vrot.slane (!%p553_p9), %v1133_v27, %v659_v17  ;;  %v1145_v31 = vrot.slane (!%p553_p9), %v1133_v27, %v683_v20  ;;  %v1198_v27 = vld [vmem:[%s2965_s7] sm:$0xff] (!%p553_p9) }
  0x1c   : > { %s3025_s27 = smov (!%p614_p10, %s1821_s27), 15  ;;  %2086 = vmatpush3.bf16.msra.mxu0 %v2083_v11  ;;  %v635_v18 = vld [vmem:[%s2996_s26] sm:$0x3]  ;;  %s2915_s26 = scalar_lea.hbm %s2977_s19, %s1882_s29 }
  0x1d   : > { %s2978_s28 = sshll.u32 %s3025_s27, 3  ;;  %2088 = vmatprep.subr.bf16.mxu0 %v2087_v14  ;;  %v660_v19 = vrot.slane %v635_v18, %v659_v17  ;;  %v684_v28 = vrot.slane %v635_v18, %v683_v20 }
  0x1e   : > { %s617_s24 = scalar_lea.vmem %s2995_s23, %s2978_s28 }
  0x1f   : > { %v628_v1 = vld [vmem:[%s617_s24 + $0x8] sm:$0xff]  ;;  %v627_v2 = vld [vmem:[%s617_s24] sm:$0xff]  ;;  %v629_v4 = vld [vmem:[%s617_s24 + $0x10] sm:$0xff] }
  0x20   : > { %644 = vperm.xlu1 %2193, %v628_v1   ;;  %639 = vperm.xlu0 %2191, %v627_v2   ;;  %v630_v5 = vld [vmem:[%s617_s24 + $0x18] sm:$0xff]  ;;  %s2997_s24 = sshll.u32 %s3025_s27, 3  ;;  %s610_s27 = sand.u32 1, %s2299_s30  }
  0x21   : > { %2090 = vmatpush3.bf16.msra.mxu0 %v2087_v14  ;;  %s623_s2 = scalar_lea.vmem %s2998_s20, %s2997_s24  ;;  %s1820_s28 = sshll.u32 %s610_s27, 5 }
  0x22   : > { %s612_s24 = scalar_lea.vmem [#allocation2], %s1820_s28  ;;  %s2312_s28 = smov [#allocation2]  }
  0x23   : > { %s1742_s25 = sshll.u32 %s612_s24, 4  ;;  %s2249_s22 = sshll.u32 %s2312_s28, 4  ;;  %s2910_s25 = int_to_ptr.vmem [resolvable:$true] %s1742_s25  ;;  %s2250_s22 = int_to_ptr.vmem [resolvable:$false] %s2249_s22 }
  0x24   : > { %2194 = vset.pattern.permute.xlu1 %v2310_v3  ;;  %2192 = vset.pattern.permute.xlu0 %v2310_v3  ;;  %s2245_s1 = scalar_lea.vmem %s2910_s25, 512  ;;  %s2251_s23 = scalar_lea.vmem %s2250_s22, 1024 }
  0x25   : > { %670 = vperm.xlu1 %2194, %v628_v1   ;;  %666 = vperm.xlu0 %2192, %v627_v2   ;;  %p2246_p11 = scmp.ne.s32.totalorder %s2910_s25, %s2245_s1  ;;  %p2252_p0 = scmp.lt.s32.totalorder %s2910_s25, %s2250_s22 }
  0x26   : > { %p2253_p1 = scmp.lt.s32.totalorder %s2251_s23, %s2245_s1 }
  0x27   : > { %p2247_p12 = pnand %p2246_p11, %p2453_p5 }
  0x28   : > { %p2254_p2 = por %p2253_p1, %p2252_p0 }
  0x29   : > { %2195 = vset.pattern.permute.xlu1 %v2309_v0  ;;  %674 = vperm.xlu0 %2192, %v629_v4   ;;  %p2248_p13 = pneg %p2247_p12 }
  0x2a   : > { %649 = vperm.xlu1 %2195, %v629_v4  }
  0x2b   : > { %p2255_p3 = pnand %p2254_p2, %p2248_p13 }
  0x2d   : > { %678 = vperm.xlu0 %2192, %v630_v5  }
  0x2e   : > { %654 = vperm.xlu1 %2195, %v630_v5  }
  0x31   : > { %2196 = vset.pattern.permute.xlu0 %v2309_v0 }
  0x9f   : > { %v640_v22 = vpop.permute.xlu0 %639  ;;  %v645_v23 = vpop.permute.xlu1 %644 }
  0xa0   : > { %v661_v24 = vsub.f32 %v640_v22, %v660_v19  ;;  %v662_v25 = vsub.f32 %v645_v23, %v660_v19  ;;  %v747_v34 = vmul.f32 %v745_v26, %v645_v23  ;;  %v746_v38 = vmul.f32 %v745_v26, %v640_v22 }
  0xa1   : > { %v1138_v42 = vmul.f32 %v1137_v30, %v640_v22  ;;  %v1139_v8 = vmul.f32 %v1137_v30, %v645_v23  ;;  %v814_v23 = vld [vmem:[%s2962_s4 + $0x30] sm:$0xff] }
  0xa2   : > { %v690_v47 = vmul.f32 %v662_v25, %v662_v25  ;;  %v689_v52 = vmul.f32 %v661_v24, %v661_v24  ;;  %v815_v24 = vld [vmem:[%s2962_s4 + $0x38] sm:$0xff] }
  0xa4   : > { %v671_v32 = vpop.permute.xlu1 %670  ;;  %v667_v33 = vpop.permute.xlu0 %666 }
  0xa5   : > { %v686_v35 = vsub.f32 %v671_v32, %v684_v28  ;;  %v755_v36 = vmul.f32 %v753_v29, %v671_v32  ;;  %v685_v37 = vsub.f32 %v667_v33, %v684_v28  ;;  %v754_v39 = vmul.f32 %v753_v29, %v667_v33 }
  0xa6   : > { %v1146_v44 = vmul.f32 %v1145_v31, %v667_v33  ;;  %v1147_v56 = vmul.f32 %v1145_v31, %v671_v32 }
  0xa7   : > { %v694_v40 = vmul.f32 %v686_v35, %v686_v35  ;;  %v2499_v41 = vadd.f32 %v755_v36, %v747_v34  ;;  %v693_v43 = vmul.f32 %v685_v37, %v685_v37  ;;  %v2501_v46 = vadd.f32 %v754_v39, %v746_v38  ;;  %v1200_v36 = vld [vmem:[%s2965_s7 + $0x10] sm:$0xff]  ;;  %v1201_v37 = vld [vmem:[%s2965_s7 + $0x18] sm:$0xff] }
  0xa8   : > { %v675_v45 = vpop.permute.xlu0 %674  ;;  %v2509_v62 = vadd.f32 %v1146_v44, %v1138_v42  ;;  %v2520_v15 = vadd.f32 %v1147_v56, %v1139_v8  ;;  %v1202_v44 = vld [vmem:[%s2965_s7 + $0x20] sm:$0xff] }
  0xa9   : > { %v687_v48 = vsub.f32 %v675_v45, %v684_v28  ;;  %v756_v49 = vmul.f32 %v753_v29, %v675_v45  ;;  %v650_v50 = vpop.permute.xlu1 %649  ;;  %v766_v51 = vsel %vm762_vm0, %v2499_v41, 0.0  ;;  %v763_v55 = vsel %vm762_vm0, %v2501_v46, 0.0 }
  0xaa   : > { %v663_v53 = vsub.f32 %v650_v50, %v660_v19  ;;  %v748_v54 = vmul.f32 %v745_v26, %v650_v50  ;;  %767 = vadd.xlane.f32.xlu0 %v766_v51  ;;  %764 = vadd.xlane.f32.xlu1 %v763_v55  ;;  %v2507_v58 = vadd.f32 %v694_v40, %v690_v47  ;;  %v1154_v13 = vsel %vm762_vm0, %v2509_v62, 0.0  ;;  %v1205_v55 = vld [vmem:[%s2965_s7 + $0x38] sm:$0xff] }
  0xab   : > { %v695_v57 = vmul.f32 %v687_v48, %v687_v48  ;;  %v2511_v63 = vadd.f32 %v693_v43, %v689_v52  ;;  %v1148_v0 = vmul.f32 %v1145_v31, %v675_v45  ;;  %v1140_v1 = vmul.f32 %v1137_v30, %v650_v50  ;;  %v1203_v45 = vld [vmem:[%s2965_s7 + $0x28] sm:$0xff] }
  0xac   : > { %v691_v59 = vmul.f32 %v663_v53, %v663_v53  ;;  %v679_v60 = vpop.permute.xlu0 %678  ;;  %v760_v61 = vadd.f32 %v756_v49, %v748_v54  ;;  %v1157_v21 = vsel %vm762_vm0, %v2520_v15, 0.0  ;;  %v2099_v43 = vpack.c.bf16 %v1201_v37, %v1200_v36  ;;  %v1204_v54 = vld [vmem:[%s2965_s7 + $0x30] sm:$0xff]  ;;  %v2200_v36 = vld [vmem:[%s2966_s8] sm:$0xff]   ;;  %v2201_v37 = vld [vmem:[%s2963_s5 + $0x18] sm:$0xff]  }
  0xad   : > { %v688_v2 = vsub.f32 %v679_v60, %v684_v28  ;;  %v757_v3 = vmul.f32 %v753_v29, %v679_v60  ;;  %v655_v4 = vpop.permute.xlu1 %654  ;;  %v2518_v14 = vadd.f32 %v1148_v0, %v1140_v1  ;;  %v1149_v16 = vmul.f32 %v1145_v31, %v679_v60  ;;  %v1199_v28 = vld [vmem:[%s2965_s7 + $0x8] sm:$0xff] }
  0xae   : > { %v664_v5 = vsub.f32 %v655_v4, %v660_v19  ;;  %v749_v6 = vmul.f32 %v745_v26, %v655_v4  ;;  %v769_v7 = vsel %vm762_vm0, %v760_v61, 0.0  ;;  %v2514_v10 = vadd.f32 %v695_v57, %v691_v59 }
  0xaf   : > { %v696_v9 = vmul.f32 %v688_v2, %v688_v2  ;;  %770 = vadd.xlane.f32.xlu0 %v769_v7  ;;  %v1141_v17 = vmul.f32 %v1137_v30, %v655_v4  ;;  %v1160_v20 = vsel %vm762_vm0, %v2518_v14, 0.0  ;;  %v2091_v26 = vpack.c.bf16 %v815_v24, %v814_v23 }
  0xb0   : > { %v692_v11 = vmul.f32 %v664_v5, %v664_v5  ;;  %v761_v12 = vadd.f32 %v757_v3, %v749_v6  ;;  %v2095_v29 = vpack.c.bf16 %v1199_v28, %v1198_v27  ;;  %v2103_v51 = vpack.c.bf16 %v1203_v45, %v1202_v44  ;;  %v631_v27 = vld [vmem:[%s623_s2] sm:$0xff]  ;;  %v2207_v44 = vld [vmem:[%s2963_s5 + $0x30] sm:$0xff]  }
  0xb1   : > { %v2529_v22 = vadd.f32 %v1149_v16, %v1141_v17  ;;  %2092 = vmatprep.subr.bf16.mxu0 %v2091_v26  ;;  %v2107_v1 = vpack.c.bf16 %v1205_v55, %v1204_v54  ;;  %v2208_v45 = vld [vmem:[%s2966_s8 + $0x20] sm:$0xff]   ;;  %vm722_vm1 = vcmp.le.f32.partialorder %v2507_v58, 2.25  ;;  %vm1114_vm3 = vcmp.le.f32.partialorder %v2507_v58, 6.25 }
  0xb2   : > { %v772_v18 = vsel %vm762_vm0, %v761_v12, 0.0  ;;  %v2523_v19 = vadd.f32 %v696_v9, %v692_v11  ;;  %2094 = vmatpush3.bf16.msra.mxu0 %v2091_v26  ;;  %v633_v26 = vld [vmem:[%s623_s2 + $0x10] sm:$0xff]  ;;  %vm723_vm7 = vcmp.le.f32.partialorder %v2514_v10, 2.25  ;;  %vm721_vm10 = vcmp.le.f32.partialorder %v2511_v63, 2.25 }
  0xb3   : > { %1155 = vadd.xlane.f32.xlu0 %v1154_v13  ;;  %773 = vadd.xlane.f32.xlu1 %v772_v18  ;;  %v1163_v25 = vsel %vm762_vm0, %v2529_v22, 0.0  ;;  %vm1113_vm11 = vcmp.le.f32.partialorder %v2511_v63, 6.25  ;;  %vm1115_vm14 = vcmp.le.f32.partialorder %v2514_v10, 6.25  ;;  %v1512_v63 = vld [vmem:[%s2975_s17 + $0x8] sm:$0xff] }
  0xb4   : > { %2096 = vmatprep.subr.bf16.mxu0 %v2095_v29 }
  0xb7   : > { %1161 = vadd.xlane.f32.xlu0 %v1160_v20  ;;  %1158 = vadd.xlane.f32.xlu1 %v1157_v21 }
  0xbb   : > { %1164 = vadd.xlane.f32.xlu1 %v1163_v25  ;;  %v632_v25 = vld [vmem:[%s623_s2 + $0x8] sm:$0xff] }
 0x137   : > { %v768_v30 = vpop.xlane.xlu0 %767  ;;  %v765_v31 = vpop.xlane.xlu1 %764 }
 0x138   : > { %v777_v32 = vmul.f32 0.015625, %v768_v30  ;;  %v776_v33 = vmul.f32 0.015625, %v765_v31  ;;  %v2197_v30 = vld [vmem:[%s2963_s5] sm:$0xff]   ;;  %v2198_v31 = vld [vmem:[%s2963_s5 + $0x8] sm:$0xff]  }
 0x139   : > { %1973 = vmatprep.subr.bf16.mxu1 %v2197_v30 }
 0x13a   : > { %v2546_v34 = vsub.f32 %v2499_v41, %v777_v32  ;;  %v2549_v35 = vsub.f32 %v2501_v46, %v776_v33  ;;  %1974 = vmatpush3.bf16.msra.mxu1 %v2197_v30  ;;  %v634_v32 = vld [vmem:[%s623_s2 + $0x18] sm:$0xff]  ;;  %v2199_v33 = vld [vmem:[%s2963_s5 + $0x10] sm:$0xff]  }
 0x13b   : > { %1975 = vmatprep.subr.bf16.mxu1 %v2198_v31 }
 0x13c   : > { %v805_v38 = vmul.f32 -0.03125, %v2546_v34  ;;  %v771_v39 = vpop.xlane.xlu0 %770  ;;  %v804_v42 = vmul.f32 -0.03125, %v2549_v35  ;;  %v784_v13 = vmul.f32 %v2549_v35, %v2549_v35  ;;  %v785_v18 = vmul.f32 %v2546_v34, %v2546_v34 }
 0x13d   : > { %v778_v40 = vmul.f32 0.015625, %v771_v39  ;;  %v2203_v39 = vld [vmem:[%s2963_s5 + $0x20] sm:$0xff]  }
 0x13e   : > { %1967 = vmatprep.mubr.msk.f32.mxu0 %vm762_vm0, %v804_v42  ;;  %v788_v20 = vsel %vm762_vm0, %v784_v13, 0.0  ;;  %v791_v23 = vsel %vm762_vm0, %v785_v18, 0.0  ;;  %1976 = vmatpush3.bf16.msra.mxu1 %v2198_v31  ;;  %v2205_v42 = vld [vmem:[%s2963_s5 + $0x28] sm:$0xff]  }
 0x13f   : > { %v2559_v41 = vsub.f32 %v760_v61, %v778_v40  ;;  %1968 = vmatmul.mubr.msk.f32.vlgmr.msra.gmra.mrb[0].mxu0 %vm762_vm0, %v805_v38  ;;  %1977 = vmatprep.subr.bf16.mxu1 %v2199_v33  ;;  %v2202_v38 = vld [vmem:[%s2966_s8 + $0x8] sm:$0xff]   ;;  %v2204_v40 = vld [vmem:[%s2966_s8 + $0x10] sm:$0xff]  }
 0x140   : > { %v774_v46 = vpop.xlane.xlu1 %773  ;;  %v1156_v47 = vpop.xlane.xlu0 %1155  ;;  %2098 = vmatpush3.bf16.msra.mxu0 %v2095_v29 }
 0x141   : > { %v806_v48 = vmul.f32 -0.03125, %v2559_v41  ;;  %v779_v49 = vmul.f32 0.015625, %v774_v46  ;;  %v1166_v50 = vmul.f32 0.015625, %v1156_v47  ;;  %2100 = vmatprep.subr.bf16.mxu0 %v2099_v43  ;;  %v786_v21 = vmul.f32 %v2559_v41, %v2559_v41  ;;  %v2209_v46 = vld [vmem:[%s2963_s5 + $0x38] sm:$0xff]   ;;  %v2210_v47 = vld [vmem:[%s2966_s8 + $0x28] sm:$0xff]  }
 0x142   : > { %1978 = vmatpush3.bf16.msra.mxu1 %v2199_v33 }
 0x143   : > { %v2570_v52 = vsub.f32 %v761_v12, %v779_v49  ;;  %v2573_v53 = vsub.f32 %v2509_v62, %v1166_v50  ;;  %1970 = vmatprep.mubr.msk.f32.mxu0 %vm762_vm0, %v806_v48  ;;  %v794_v24 = vsel %vm762_vm0, %v786_v21, 0.0  ;;  %1979 = vmatprep.subr.bf16.mxu1 %v2201_v37  ;;  %v2211_v48 = vld [vmem:[%s2966_s8 + $0x30] sm:$0xff]   ;;  %v2212_v49 = vld [vmem:[%s2966_s8 + $0x38] sm:$0xff]  }
 0x144   : > { %v1159_v56 = vpop.xlane.xlu1 %1158  ;;  %v1162_v57 = vpop.xlane.xlu0 %1161  ;;  %2102 = vmatpush3.bf16.msra.mxu0 %v2099_v43  ;;  %v2206_v43 = vld [vmem:[%s2966_s8 + $0x18] sm:$0xff]  }
 0x145   : > { %v807_v59 = vmul.f32 -0.03125, %v2570_v52  ;;  %v1194_v60 = vmul.f32 -0.03125, %v2573_v53  ;;  %v1167_v61 = vmul.f32 0.015625, %v1159_v56  ;;  %v1168_v62 = vmul.f32 0.015625, %v1162_v57  ;;  %2104 = vmatprep.subr.bf16.mxu0 %v2103_v51 }
 0x146   : > { %v1174_v0 = vmul.f32 %v2573_v53, %v2573_v53  ;;  %v787_v28 = vmul.f32 %v2570_v52, %v2570_v52  ;;  %1980 = vmatpush3.bf16.msra.mxu1 %v2201_v37 }
 0x147   : > { %v2587_v2 = vsub.f32 %v2520_v15, %v1167_v61  ;;  %v2590_v3 = vsub.f32 %v2518_v14, %v1168_v62  ;;  %1971 = vmatmul.mubr.msk.f32.gmra.mrb[2].mxu0 %vm762_vm0, %v807_v59  ;;  %1981 = vmatprep.subr.bf16.mxu1 %v2203_v39  ;;  %v2687_v59 = vld [vmem:[%s2999_s0] ss:$0 sm:$0xff]  ;;  %s2917_s0 = scalar_lea.sflag [#allocation3], %s610_s27 }
 0x148   : > { %v1165_v4 = vpop.xlane.xlu1 %1164  ;;  %2009 = vmatprep.mubr.msk.f32.mxu0 %vm762_vm0, %v1194_v60  ;;  %v1178_v5 = vsel %vm762_vm0, %v1174_v0, 0.0  ;;  %2106 = vmatpush3.bf16.msra.mxu0 %v2103_v51  ;;  %v797_v29 = vsel %vm762_vm0, %v787_v28, 0.0 }
 0x149   : > { %v1169_v6 = vmul.f32 0.015625, %v1165_v4  ;;  %1179 = vadd.xlane.f32.xlu0 %v1178_v5  ;;  %v1175_v7 = vmul.f32 %v2587_v2, %v2587_v2  ;;  %2108 = vmatprep.subr.bf16.mxu0 %v2107_v1  ;;  %v1176_v8 = vmul.f32 %v2590_v3, %v2590_v3  ;;  %v1195_v15 = vmul.f32 -0.03125, %v2587_v2 }
 0x14a   : > { %v1196_v16 = vmul.f32 -0.03125, %v2590_v3  ;;  %1982 = vmatpush3.bf16.msra.mxu1 %v2203_v39 }
 0x14b   : > { %v2600_v9 = vsub.f32 %v2529_v22, %v1169_v6  ;;  %v1181_v11 = vsel %vm762_vm0, %v1175_v7, 0.0  ;;  %v1184_v12 = vsel %vm762_vm0, %v1176_v8, 0.0  ;;  %1983 = vmatprep.subr.bf16.mxu1 %v2205_v42  ;;  %v1514_v7 = vld [vmem:[%s2975_s17 + $0x18] sm:$0xff] }
 0x14c   : > { %1182 = vadd.xlane.f32.xlu1 %v1181_v11  ;;  %2110 = vmatpush3.bf16.msra.mxu0 %v2107_v1  ;;  %v2311_v1 = vmov 0.0   ;;  %v1511_v11 = vld [vmem:[%s2975_s17] sm:$0xff] }
 0x14d   : > { %1185 = vadd.xlane.f32.xlu0 %v1184_v12  ;;  %v1177_v14 = vmul.f32 %v2600_v9, %v2600_v9  ;;  %v1197_v22 = vmul.f32 -0.03125, %v2600_v9  ;;  %2015 = vmatprep.subr.bf16.mxu0 %v2200_v36 }
 0x14e   : > { %1984 = vmatpush3.bf16.msra.mxu1 %v2205_v42 }
 0x14f   : > { %v1187_v17 = vsel %vm762_vm0, %v1177_v14, 0.0  ;;  %2010 = vmatmul.mubr.msk.f32.vlgmr.msra.gmra.mrb[4].mxu0 %vm762_vm0, %v1195_v15  ;;  %1985 = vmatprep.subr.bf16.mxu1 %v2207_v44 }
 0x150   : > { %1188 = vadd.xlane.f32.xlu1 %v1187_v17  ;;  %2012 = vmatprep.mubr.msk.f32.mxu0 %vm762_vm0, %v1196_v16  ;;  %v1830_v17 = vld [vmem:[%s2964_s6] ss:$0 sm:$0xff] }
 0x151   : > { %789 = vadd.xlane.f32.xlu0 %v788_v20  ;;  %2016 = vmatpush3.bf16.msra.mxu0 %v2200_v36 }
 0x152   : > { %2017 = vmatprep.subr.bf16.mxu0 %v2202_v38  ;;  %1986 = vmatpush3.bf16.msra.mxu1 %v2207_v44 }
 0x153   : > { %2013 = vmatmul.mubr.msk.f32.gmra.mrb[6].mxu0 %vm762_vm0, %v1197_v22  ;;  %1987 = vmatprep.subr.bf16.mxu1 %v2209_v46 }
 0x154   : > { %792 = vadd.xlane.f32.xlu1 %v791_v23 }
 0x155   : > { %795 = vadd.xlane.f32.xlu0 %v794_v24  ;;  %2018 = vmatpush3.bf16.msra.mxu0 %v2202_v38 }
 0x156   : > { %2019 = vmatprep.subr.bf16.mxu0 %v2204_v40  ;;  %1988 = vmatpush3.bf16.msra.mxu1 %v2209_v46  ;;  %v1516_v46 = vld [vmem:[%s2975_s17 + $0x28] sm:$0xff] }
 0x159   : > { %2020 = vmatpush3.bf16.msra.mxu0 %v2204_v40 }
 0x15a   : > { %2021 = vmatprep.subr.bf16.mxu0 %v2206_v43 }
 0x15d   : > { %2022 = vmatpush3.bf16.msra.mxu0 %v2206_v43 }
 0x15e   : > { %2023 = vmatprep.subr.bf16.mxu0 %v2208_v45 }
 0x161   : > { %2024 = vmatpush3.bf16.msra.mxu0 %v2208_v45 }
 0x162   : > { %2025 = vmatprep.subr.bf16.mxu0 %v2210_v47 }
 0x165   : > { %705 = vperm.xlu1 %2195, %v632_v25   ;;  %2026 = vmatpush3.bf16.msra.mxu0 %v2210_v47  ;;  %v1851_v47 = vld [vmem:[%s2967_s9] ss:$0 sm:$0xff] }
 0x166   : > { %2027 = vmatprep.subr.bf16.mxu0 %v2211_v48 }
 0x169   : > { %708 = vperm.xlu1 %2195, %v633_v26   ;;  %2028 = vmatpush3.bf16.msra.mxu0 %v2211_v48 }
 0x16a   : > { %2029 = vmatprep.subr.bf16.mxu0 %v2212_v49 }
 0x16b   : > { %702 = vperm.xlu0 %2196, %v631_v27  }
 0x16d   : > { %2030 = vmatpush3.bf16.msra.mxu0 %v2212_v49  ;;  %v1518_v49 = vld [vmem:[%s2975_s17 + $0x38] sm:$0xff] }
 0x18d   : > { %798 = vadd.xlane.f32.xlu1 %v797_v29 }
 0x19e   : > { %711 = vperm.xlu1 %2195, %v634_v32  }
 0x1d6   : > { %v2678_v50 = vpop.xlane.xlu0 %1179 }
 0x1d7   : > { %v1190_v43 = vmul.f32 0.015625, %v2678_v50 }
 0x1d9   : > { %v1183_v51 = vpop.xlane.xlu1 %1182 }
 0x1da   : > { %v2680_v54 = vpop.xlane.xlu0 %1185  ;;  %v1191_v39 = vmul.f32 0.015625, %v1183_v51 }
 0x1dd   : > { %v2682_v55 = vpop.xlane.xlu1 %1188 }
 0x1de   : > { %v790_v56 = vpop.xlane.xlu0 %789  ;;  %v1193_v51 = vmul.f32 0.015625, %v2682_v55 }
 0x1df   : > { %v800_v16 = vmul.f32 0.015625, %v790_v56 }
 0x1e1   : > { %v793_v57 = vpop.xlane.xlu1 %792  ;;  %v920_v21 = vadd.f32 %v1830_v17, %v800_v16 }
 0x1e2   : > { %v796_v61 = vpop.xlane.xlu0 %795  ;;  %v801_v15 = vmul.f32 0.015625, %v793_v57  ;;  %v1192_v57 = vmul.f32 0.015625, %v2680_v54 }
 0x1e3   : > { %v802_v25 = vmul.f32 0.015625, %v796_v61  ;;  %v1310_v61 = vadd.f32 %v1851_v47, %v1190_v43  ;;  %v2111_v43 = vpack.c.bf16 %v1512_v63, %v1511_v11 }
 0x1e4   : > { %v921_v18 = vadd.f32 %v1830_v17, %v801_v15 }
 0x1e5   : > { %v706_v60 = vpop.permute.xlu1 %705  ;;  %v922_v32 = vadd.f32 %v1830_v17, %v802_v25  ;;  %2112 = vmatprep.subr.bf16.mxu1 %v2111_v43 }
 0x1e6   : > { %vm718_vm2 = vcmp.eq.s32.totalorder %v706_v60, %v2687_v59 }
 0x1e7   : > { %vm2692_vm4 = vmand %vm722_vm1, %vm718_vm2 }
 0x1e8   : > { %vm2696_vm5 = vmand %vm1114_vm3, %vm718_vm2  ;;  %v2703_v4 = vsel %vm2692_vm4, 1.0, %v2311_v1  ;;  %vm724_vm2 = vcmp.le.f32.partialorder %v2523_v19, 2.25 }
 0x1e9   : > { %v709_v5 = vpop.permute.xlu1 %708  ;;  %v1122_v6 = vsel %vm2696_vm5, 1.0, %v2311_v1 }
 0x1ea   : > { %vm719_vm6 = vcmp.eq.s32.totalorder %v709_v5, %v2687_v59  ;;  %1127 = vadd.xlane.f32.xlu0 %v1122_v6  ;;  %v703_v58 = vpop.permute.xlu0 %702 }
 0x1eb   : > { %vm717_vm8 = vcmp.eq.s32.totalorder %v703_v58, %v2687_v59  ;;  %vm2713_vm9 = vmand %vm723_vm7, %vm719_vm6 }
 0x1ec   : > { %vm2719_vm12 = vmand %vm721_vm10, %vm717_vm8  ;;  %v731_v10 = vsel %vm2713_vm9, 1.0, %v2311_v1 }
 0x1ed   : > { %vm2723_vm13 = vmand %vm1113_vm11, %vm717_vm8  ;;  %v729_v12 = vsel %vm2719_vm12, 1.0, %v2311_v1 }
 0x1ee   : > { %v1121_v13 = vsel %vm2723_vm13, 1.0, %v2311_v1  ;;  %733 = vadd.xlane.f32.xlu0 %v729_v12  ;;  %vm1839_vm15 = vmpackc.low %vm2692_vm4, %vm2719_vm12 }
 0x1ef   : > { %vm2740_vm1 = vmand %vm1115_vm14, %vm719_vm6  ;;  %1125 = vadd.xlane.f32.xlu1 %v1121_v13  ;;  %vm1116_vm6 = vcmp.le.f32.partialorder %v2523_v19, 6.25  ;;  %v1311_v19 = vadd.f32 %v1851_v47, %v1191_v39 }
 0x1f0   : > { %v1123_v14 = vsel %vm2740_vm1, 1.0, %v2311_v1  ;;  %vm1860_vm10 = vmpackc.low %vm2696_vm5, %vm2723_vm13 }
 0x1f2   : > { %737 = vadd.xlane.f32.xlu0 %v731_v10 }
 0x1f3   : > { %1129 = vadd.xlane.f32.xlu1 %v1123_v14  ;;  %v1313_v14 = vadd.f32 %v1851_v47, %v1193_v51  ;;  %v1503_v51 = vld [vmem:[%s2974_s16] sm:$0xff] }
 0x212   : > { %v1969_v20 = vpop.f32.mrb[0].mxu0 }
 0x213   : > { %v925_v22 = vadd.f32 %v1969_v20, %v921_v18  ;;  %v894_v23 = vpop.f32.mrb[1].mxu0 }
 0x214   : > { %v924_v24 = vadd.f32 %v920_v21, %v894_v23 }
 0x215   : > { %v929_v26 = vmax.f32 %v925_v22, 0.0 }
 0x216   : > { %v928_v27 = vmax.f32 %v924_v24, 0.0 }
 0x217   : > { %v933_v28 = vadd.f32 1e-05, %v929_v26 }
 0x218   : > { %v932_v29 = vadd.f32 1e-05, %v928_v27 }
 0x219   : > { %2213 = vrsqrt.f32 %v933_v28 }
 0x21a   : > { %v799_v30 = vpop.xlane.xlu1 %798  ;;  %v1972_v31 = vpop.f32.mrb[2].mxu0  ;;  %2215 = vrsqrt.f32 %v932_v29 }
 0x21b   : > { %v803_v33 = vmul.f32 0.015625, %v799_v30  ;;  %v904_v36 = vpop.f32.mrb[3].mxu0 }
 0x21c   : > { %v926_v37 = vadd.f32 %v922_v32, %v904_v36 }
 0x21d   : > { %v923_v38 = vadd.f32 %v1830_v17, %v803_v33  ;;  %v1312_v17 = vadd.f32 %v1851_v47, %v1192_v57 }
 0x21e   : > { %v930_v40 = vmax.f32 %v926_v37, 0.0  ;;  %v712_v42 = vpop.permute.xlu1 %711 }
 0x21f   : > { %v927_v44 = vadd.f32 %v1972_v31, %v923_v38  ;;  %vm720_vm3 = vcmp.eq.s32.totalorder %v712_v42, %v2687_v59 }
 0x220   : > { %v934_v45 = vadd.f32 1e-05, %v930_v40  ;;  %vm2757_vm7 = vmand %vm724_vm2, %vm720_vm3 }
 0x221   : > { %v931_v48 = vmax.f32 %v927_v44, 0.0  ;;  %vm2764_vm8 = vmand %vm1116_vm6, %vm720_vm3  ;;  %v732_v50 = vsel %vm2757_vm7, 1.0, %v2311_v1 }
 0x222   : > { %v1124_v56 = vsel %vm2764_vm8, 1.0, %v2311_v1  ;;  %v2011_v60 = vpop.f32.mrb[4].mxu0  ;;  %2217 = vrsqrt.f32 %v934_v45  ;;  %vm1863_vm11 = vmpackc.low %vm2764_vm8, %vm2740_vm1  ;;  %v1515_v45 = vld [vmem:[%s2975_s17 + $0x20] sm:$0xff] }
 0x223   : > { %v935_v59 = vadd.f32 1e-05, %v931_v48  ;;  %1131 = vadd.xlane.f32.xlu1 %v1124_v56  ;;  %v2214_v5 = vpop.eup %2213  ;;  %v1315_v6 = vadd.f32 %v2011_v60, %v1311_v19  ;;  %v1284_v58 = vpop.f32.mrb[5].mxu0  ;;  %v2119_v47 = vpack.c.bf16 %v1516_v46, %v1515_v45  ;;  %v1517_v48 = vld [vmem:[%s2975_s17 + $0x30] sm:$0xff]  ;;  %v1504_v19 = vld [vmem:[%s2974_s16 + $0x8] sm:$0xff] }
 0x224   : > { %v2216_v12 = vpop.eup %2215  ;;  %v1314_v13 = vadd.f32 %v1310_v61, %v1284_v58  ;;  %v941_v55 = vsel %vm2692_vm4, %v2214_v5, 0.0  ;;  %vm1842_vm4 = vmpackc.low %vm2757_vm7, %vm2713_vm9  ;;  %v2840_v56 = vpack.c.bf16 %v1504_v19, %v1503_v51  ;;  %v1505_v46 = vld [vmem:[%s2974_s16 + $0x10] sm:$0xff] }
 0x225   : > { %2219 = vrsqrt.f32 %v935_v59  ;;  %v1319_v10 = vmax.f32 %v1315_v6, 0.0  ;;  %v1840_v15 = vpack.c.bf16 %v2214_v5, %v2216_v12  ;;  %v940_v54 = vsel %vm2719_vm12, %v2216_v12, 0.0 }
 0x226   : > { %v1318_v1 = vmax.f32 %v1314_v13, 0.0  ;;  %v2014_v16 = vpop.f32.mrb[6].mxu0 }
 0x227   : > { %v1323_v18 = vadd.f32 1e-05, %v1319_v10  ;;  %v1317_v20 = vadd.f32 %v2014_v16, %v1313_v14  ;;  %v1294_v21 = vpop.f32.mrb[7].mxu0  ;;  %1989 = vmatprep.mubr.msk.bf16.mxu1 %vm1839_vm15, %v1840_v15 }
 0x228   : > { %v1322_v22 = vadd.f32 1e-05, %v1318_v1  ;;  %v1316_v23 = vadd.f32 %v1312_v17, %v1294_v21 }
 0x229   : > { %2221 = vrsqrt.f32 %v1323_v18  ;;  %v1321_v24 = vmax.f32 %v1317_v20, 0.0 }
 0x22a   : > { %2223 = vrsqrt.f32 %v1322_v22  ;;  %v1320_v25 = vmax.f32 %v1316_v23, 0.0  ;;  %v1866_v23 = vld [vmem:[%s2972_s14] ss:$0 sm:$0xff] }
 0x22b   : > { %v1325_v26 = vadd.f32 1e-05, %v1321_v24 }
 0x22c   : > { %v1324_v27 = vadd.f32 1e-05, %v1320_v25  ;;  %v2218_v28 = vpop.eup %2217 }
 0x22d   : > { %2225 = vrsqrt.f32 %v1325_v26  ;;  %v942_v0 = vsel %vm2713_vm9, %v2218_v28, 0.0 }
 0x22e   : > { %2227 = vrsqrt.f32 %v1324_v27 }
 0x22f   : > { %v2220_v29 = vpop.eup %2219 }
 0x230   : > { %v1843_v30 = vpack.c.bf16 %v2220_v29, %v2218_v28  ;;  %v943_v62 = vsel %vm2757_vm7, %v2220_v29, 0.0 }
 0x232   : > { %1990 = vmatmul.mubr.msk.bf16.vlgmr.msra.gmra.mrb[0].mxu1 %vm1842_vm4, %v1843_v30 }
 0x233   : > { %v2222_v8 = vpop.eup %2221  ;;  %2114 = vmatpush3.bf16.msra.mxu1 %v2111_v43 }
 0x234   : > { %v2224_v31 = vpop.eup %2223  ;;  %v1331_v32 = vsel %vm2696_vm5, %v2222_v8, 0.0 }
 0x235   : > { %1336 = vadd.xlane.f32.xlu1 %v1331_v32  ;;  %v1861_v33 = vpack.c.bf16 %v2222_v8, %v2224_v31  ;;  %v1330_v38 = vsel %vm2723_vm13, %v2224_v31, 0.0 }
 0x237   : > { %v2226_v36 = vpop.eup %2225  ;;  %2031 = vmatprep.mubr.msk.bf16.mxu0 %vm1860_vm10, %v1861_v33 }
 0x238   : > { %v2228_v37 = vpop.eup %2227  ;;  %v1333_v39 = vsel %vm2764_vm8, %v2226_v36, 0.0 }
 0x239   : > { %v1864_v40 = vpack.c.bf16 %v2226_v36, %v2228_v37  ;;  %1334 = vadd.xlane.f32.xlu1 %v1330_v38  ;;  %v1332_v42 = vsel %vm2740_vm1, %v2228_v37, 0.0 }
 0x23a   : > { %1338 = vadd.xlane.f32.xlu0 %v1332_v42 }
 0x23b   : > { %2032 = vmatmul.mubr.msk.bf16.vlgmr.msra.gmra.mrb[8].mxu0 %vm1863_vm11, %v1864_v40 }
 0x23d   : > { %735 = vadd.xlane.f32.xlu1 %v2703_v4  ;;  %v1513_v4 = vld [vmem:[%s2975_s17 + $0x10] sm:$0xff] }
 0x23e   : > { %944 = vadd.xlane.f32.xlu0 %v940_v54  ;;  %v2115_v44 = vpack.c.bf16 %v1514_v7, %v1513_v4 }
 0x240   : > { %2116 = vmatprep.subr.bf16.mxu1 %v2115_v44 }
 0x241   : > { %739 = vadd.xlane.f32.xlu1 %v732_v50  ;;  %2118 = vmatpush3.bf16.msra.mxu1 %v2115_v44  ;;  %v2123_v50 = vpack.c.bf16 %v1518_v49, %v1517_v48  ;;  %v1846_v49 = vld [vmem:[%s2970_s12] ss:$0 sm:$0xff] }
 0x242   : > { %948 = vadd.xlane.f32.xlu0 %v942_v0  ;;  %2120 = vmatprep.subr.bf16.mxu1 %v2119_v47 }
 0x245   : > { %1340 = vadd.xlane.f32.xlu1 %v1333_v39  ;;  %2122 = vmatpush3.bf16.msra.mxu1 %v2119_v47  ;;  %v1506_v47 = vld [vmem:[%s2974_s16 + $0x18] sm:$0xff] }
 0x246   : > { %2124 = vmatprep.subr.bf16.mxu1 %v2123_v50 }
 0x249   : > { %946 = vadd.xlane.f32.xlu1 %v941_v55  ;;  %2126 = vmatpush3.bf16.msra.mxu1 %v2123_v50 }
 0x24a   : > { %2128 = vmatprep.subr.bf16.mxu1 %v2840_v56 }
 0x24d   : > { %950 = vadd.xlane.f32.xlu1 %v943_v62 }
 0x277   : > { %v1128_v61 = vpop.xlane.xlu0 %1127 }
 0x27b   : > { %v734_v6 = vpop.xlane.xlu0 %733 }
 0x27c   : > { %v1126_v57 = vpop.xlane.xlu1 %1125 }
 0x27f   : > { %v738_v12 = vpop.xlane.xlu0 %737 }
 0x280   : > { %v1130_v59 = vpop.xlane.xlu1 %1129 }
 0x281   : > { %2229 = vrcp.f32 %v1130_v59 }
 0x282   : > { %2231 = vrcp.f32 %v1126_v57 }
 0x283   : > { %2233 = vrcp.f32 %v1128_v61 }
 0x28b   : > { %v2230_v8 = vpop.eup %2229 }
 0x28c   : > { %v2232_v33 = vpop.eup %2231 }
 0x28d   : > { %v2234_v39 = vpop.eup %2233 }
 0x2b0   : > { %v1132_v60 = vpop.xlane.xlu1 %1131 }
 0x2b1   : > { %2235 = vrcp.f32 %v1132_v60 }
 0x2b2   : > { %2237 = vrcp.f32 %v734_v6 }
 0x2bb   : > { %v2236_v0 = vpop.eup %2235 }
 0x2bc   : > { %v2238_v11 = vpop.eup %2237 }
 0x2c2   : > { %v1337_v5 = vpop.xlane.xlu1 %1336 }
 0x2c3   : > { %v1459_v28 = vmul.f32 %v1337_v5, %v2587_v2  ;;  %v1867_v2 = vld [vmem:[%s2973_s15] ss:$0 sm:$0xff]  ;;  %v2131_v5 = vpack.c.bf16 %v1506_v47, %v1505_v46 }
 0x2c6   : > { %v1335_v58 = vpop.xlane.xlu1 %1334 }
 0x2c7   : > { %v1339_v55 = vpop.xlane.xlu0 %1338  ;;  %v1458_v21 = vmul.f32 %v1335_v58, %v2573_v53 }
 0x2c8   : > { %v1460_v18 = vmul.f32 %v1339_v55, %v2590_v3  ;;  %v2860_v3 = vld [vmem:[%s2969_s11] ss:$0 sm:$0xff] }
 0x2ca   : > { %v736_v13 = vpop.xlane.xlu1 %735 }
 0x2cb   : > { %v945_v16 = vpop.xlane.xlu0 %944  ;;  %2239 = vrcp.f32 %v736_v13 }
 0x2cc   : > { %v1068_v20 = vmul.f32 %v945_v16, %v2549_v35  ;;  %2241 = vrcp.f32 %v738_v12  ;;  %v1507_v12 = vld [vmem:[%s2974_s16 + $0x20] sm:$0xff] }
 0x2ce   : > { %v740_v15 = vpop.xlane.xlu1 %739 }
 0x2cf   : > { %v949_v63 = vpop.xlane.xlu0 %948  ;;  %2243 = vrcp.f32 %v740_v15 }
 0x2d0   : > { %v1070_v19 = vmul.f32 %v949_v63, %v2559_v41  ;;  %v1508_v41 = vld [vmem:[%s2974_s16 + $0x28] sm:$0xff] }
 0x2d1   : > { %v2135_v15 = vpack.c.bf16 %v1508_v41, %v1507_v12 }
 0x2d2   : > { %v1341_v17 = vpop.xlane.xlu1 %1340 }
 0x2d3   : > { %v1461_v24 = vmul.f32 %v1341_v17, %v2600_v9 }
 0x2d5   : > { %v2240_v17 = vpop.eup %2239 }
 0x2d6   : > { %v947_v9 = vpop.xlane.xlu1 %946 }
 0x2d7   : > { %v1069_v48 = vmul.f32 %v947_v9, %v2546_v34 }
 0x2da   : > { %v951_v57 = vpop.xlane.xlu1 %950 }
 0x2db   : > { %v1071_v13 = vmul.f32 %v951_v57, %v2570_v52  ;;  %v1509_v52 = vld [vmem:[%s2974_s16 + $0x30] sm:$0xff] }
 0x305   : > { %v2843_v10 = vpop.f32.mrb[0].mxu1 }
 0x306   : > { %v1052_v14 = vpop.f32.mrb[1].mxu1  ;;  %v1074_v6 = vsub.f32 %v2843_v10, %v1070_v19 }
 0x307   : > { %v2845_v54 = vpop.f32.mrb[2].mxu1  ;;  %v1072_v25 = vsub.f32 %v1052_v14, %v1068_v20 }
 0x308   : > { %v2847_v1 = vpop.f32.mrb[3].mxu1  ;;  %v1075_v55 = vsub.f32 %v2845_v54, %v1071_v13  ;;  %v2242_v54 = vpop.eup %2241 }
 0x309   : > { %v1082_v36 = vmul.f32 %v2860_v3, %v1072_v25  ;;  %v1073_v59 = vsub.f32 %v2847_v1, %v1069_v48  ;;  %v1084_v1 = vmul.f32 %v2860_v3, %v1074_v6 }
 0x30b   : > { %v1094_v44 = vmul.f32 %v2238_v11, %v1082_v36  ;;  %v1083_v10 = vmul.f32 %v2860_v3, %v1073_v59 }
 0x30d   : > { %v1105_v34 = vadd.f32 %v1846_v49, %v1094_v44  ;;  %v1095_v20 = vmul.f32 %v2240_v17, %v1083_v10 }
 0x30e   : > { %v2033_v22 = vpop.f32.mrb[8].mxu0 }
 0x30f   : > { %v1464_v26 = vsub.f32 %v2033_v22, %v1460_v18  ;;  %v1442_v27 = vpop.f32.mrb[9].mxu0  ;;  %v1109_v16 = vmax.f32 %v1105_v34, 0.0  ;;  %v1085_v18 = vmul.f32 %v2860_v3, %v1075_v55  ;;  %v1096_v22 = vmul.f32 %v2242_v54, %v1084_v1 }
 0x310   : > { %v1462_v35 = vsub.f32 %v1442_v27, %v1458_v21  ;;  %v2034_v29 = vpop.f32.mrb[10].mxu0  ;;  %v1106_v25 = vadd.f32 %v1846_v49, %v1095_v20 }
 0x311   : > { %v1474_v53 = vmul.f32 %v1866_v23, %v1464_v26  ;;  %v1465_v30 = vsub.f32 %v2034_v29, %v1461_v24  ;;  %v1445_v62 = vpop.f32.mrb[11].mxu0  ;;  %v1107_v26 = vadd.f32 %v1846_v49, %v1096_v22  ;;  %v1876_v29 = vld [vmem:[%s2976_s18] ss:$0 sm:$0xff] }
 0x312   : > { %v1472_v31 = vmul.f32 %v1866_v23, %v1462_v35  ;;  %v1463_v32 = vsub.f32 %v1445_v62, %v1459_v28  ;;  %v1110_v28 = vmax.f32 %v1106_v25, 0.0 }
 0x313   : > { %v1486_v37 = vmul.f32 %v2230_v8, %v1474_v53  ;;  %v1475_v38 = vmul.f32 %v1866_v23, %v1465_v30  ;;  %v1111_v35 = vmax.f32 %v1107_v26, 0.0 }
 0x314   : > { %v1484_v40 = vmul.f32 %v2232_v33, %v1472_v31  ;;  %v1473_v42 = vmul.f32 %v1866_v23, %v1463_v32  ;;  %v2244_v23 = vpop.eup %2243 }
 0x315   : > { %v1487_v4 = vmul.f32 %v2236_v0, %v1475_v38  ;;  %v1497_v45 = vadd.f32 %v1867_v2, %v1486_v37  ;;  %v1097_v24 = vmul.f32 %v2244_v23, %v1085_v18 }
 0x316   : > { %v1495_v43 = vadd.f32 %v1867_v2, %v1484_v40  ;;  %v1485_v7 = vmul.f32 %v2234_v39, %v1473_v42 }
 0x317   : > { %v1498_v60 = vadd.f32 %v1867_v2, %v1487_v4  ;;  %v1501_v58 = vmax.f32 %v1497_v45, 0.0  ;;  %v1108_v27 = vadd.f32 %v1846_v49, %v1097_v24 }
 0x318   : > { %v1499_v50 = vmax.f32 %v1495_v43, 0.0  ;;  %v1496_v51 = vadd.f32 %v1867_v2, %v1485_v7 }
 0x319   : > { %v1502_v14 = vmax.f32 %v1498_v60, 0.0  ;;  %v1112_v3 = vmax.f32 %v1108_v27, 0.0 }
 0x31a   : > { %v1500_v61 = vmax.f32 %v1496_v51, 0.0  ;;  %2051 = vmatprep.mubr.msk.f32.mxu1 %vm762_vm0, %v1499_v50 }
 0x31c   : > { %2052 = vmatmul.mubr.msk.f32.vlgmr.msra.gmra.mrb[4].mxu1 %vm762_vm0, %v1500_v61 }
 0x31d   : > { %2130 = vmatpush3.bf16.msra.mxu1 %v2840_v56  ;;  %2054 = vmatprep.mubr.msk.f32.mxu1 %vm762_vm0, %v1501_v58  ;;  %v1510_v56 = vld [vmem:[%s2974_s16 + $0x38] sm:$0xff] }
 0x31e   : > { %2132 = vmatprep.subr.bf16.mxu1 %v2131_v5  ;;  %v2139_v21 = vpack.c.bf16 %v1510_v56, %v1509_v52 }
 0x320   : > { %2055 = vmatmul.mubr.msk.f32.gmra.mrb[6].mxu1 %vm762_vm0, %v1502_v14 }
 0x321   : > { %2134 = vmatpush3.bf16.msra.mxu1 %v2131_v5  ;;  %2073 = vmatprep.mubr.msk.f32.mxu1 %vm762_vm0, %v1109_v16 }
 0x322   : > { %2136 = vmatprep.subr.bf16.mxu1 %v2135_v15 }
 0x325   : > { %2138 = vmatpush3.bf16.msra.mxu1 %v2135_v15 }
 0x326   : > { %2140 = vmatprep.subr.bf16.mxu1 %v2139_v21 }
 0x329   : > { %2142 = vmatpush3.bf16.msra.mxu1 %v2139_v21 }
 0x32c   : > { %2074 = vmatmul.mubr.msk.f32.vlgmr.msra.gmra.mrb[4].mxu1 %vm762_vm0, %v1110_v28 }
 0x32d   : > { %2076 = vmatprep.mubr.msk.f32.mxu1 %vm762_vm0, %v1111_v35 }
 0x330   : > { %2077 = vmatmul.mubr.msk.f32.gmra.mrb[6].mxu1 %vm762_vm0, %v1112_v3 }
 0x3ff   : > { %v2075_v53 = vpop.f32.mrb[4].mxu1 }
 0x400   : > { %v1721_v30 = vadd.f32 %v2075_v53, %v1876_v29  ;;  %v1694_v62 = vpop.f32.mrb[5].mxu1 }
 0x401   : > { %v1720_v8 = vadd.f32 %v1876_v29, %v1694_v62 }
 0x402   : > { %1725 = vst [vmem:[%s612_s24 + $0x8] sm:$0xff] %v1721_v30 }
 0x403   : > { %1724 = vst [vmem:[%s612_s24] sm:$0xff] %v1720_v8  ;;  %v2078_v31 = vpop.f32.mrb[6].mxu1 }
 0x404   : > { %v1723_v32 = vadd.f32 %v2078_v31, %v1876_v29  ;;  %v1704_v33 = vpop.f32.mrb[7].mxu1 }
 0x405   : > { %v1722_v9 = vadd.f32 %v1876_v29, %v1704_v33 }
 0x406   : > { %1727 = vst [vmem:[%s612_s24 + $0x18] sm:$0xff] %v1723_v32 }
 0x407   : > { %1726 = vst [vmem:[%s612_s24 + $0x10] sm:$0xff] %v1722_v9 }
 0x408   : > { %2258 = shalt.err (!%p2255_p3)
}
 0x409   : > { %s2259_s27 = scalar_lea.hbm %s2915_s26, 512  ;;  %s2263_s20 = scalar_lea.hbm %s2977_s19, 2048 }
 0x40a   : > { %p2260_p4 = scmp.ne.s32.totalorder %s2915_s26, %s2259_s27  ;;  %p2264_p9 = scmp.lt.u32.totalorder %s2915_s26, %s2977_s19 }
 0x40b   : > { %p2265_p10 = scmp.lt.u32.totalorder %s2263_s20, %s2259_s27  ;;  %p2267_p12 = scmp.lt.u32.totalorder %s2259_s27, %s2915_s26 }
 0x40c   : > { %p2261_p7 = pnand %p2260_p4, %p2453_p5 }
 0x40d   : > { %p2266_p11 = por %p2265_p10, %p2264_p9 }
 0x40e   : > { %p2262_p8 = pneg %p2261_p7 }
 0x40f   : > { %p2268_p13 = por %p2267_p12, %p2266_p11 }
 0x411   : > { %p2269_p0 = pnand %p2268_p13, %p2262_p8 }
 0x413   : > { %2272 = shalt.err (!%p2269_p0)
}
 0x414   : > { %s2313_s1 = smov 128   ;;  %s2314_s22 = smov 8  }
 0x415   : > { %2147 = dma.vmem_to_hbm [thread:$0]  (%p2453_p5), %s2910_s25, 512, %s2915_s26, %s2917_s0, %s2313_s1, %s2313_s1, %s2314_s22  }
 0x416 PF: > { %s3016_s23 = sld [smem:[#allocation5_spill]]  ;;  %p2153_p1 = scmp.ge.s32.totalorder %s2307_s21, 2 }
 0x418   : > { %p2150_p2 = pnand %p2153_p1, %p2457_p6 }
 0x41c   : > { %s1757_s29 = sand.u32 1, %s3016_s23  }
 0x41d   : > { %s1758_s27 = scalar_lea.sflag [#allocation3], %s1757_s29 }
 0x41e   : > { %2290 = dma.done.wait (!%p2150_p2), %s1758_s27, 512  }
 0x41f   : > { %2292 = vsyncadd (!%p2150_p2), %s1758_s27, 4294966784  ;;  %s3018_s21 = sld [smem:[#allocation7_spill]]  ;;  %s3019_s20 = sld [smem:[#allocation6_spill]] }
 0x420   : > { %s3020_s2 = sld [smem:[#allocation8_spill]]  ;;  %s3021_s0 = smov %s2299_s30 }
 0x425   : > { %p29_p3 = scmp.ge.s32.totalorder %s3018_s21, 6   ;;  %s3022_s30 = smov %s3019_s20 }
 0x426   : > { %s3023_s20 = smov %s3020_s2 }
 0x427   :  { %31 = sbr.rel (!%p29_p3) target bundleno = 8 (0x8), region = 134 }
 0x42e   :  { %1763 = vsyncpa [#allocation3], 1 }
 0x42f   :  { %1765 = vsyncpa [#allocation3 + $0x1], 1 }

// kernel: tpu_custom_call.1
= control target key start
LH: loop header
LB: loop body
LE: loop exit
PB: predicated region body
PF: predicated region fallthrough
CT: control target
= control target key end

     0   :  { %s2958_s0 = inlined_call_operand.vmem [shape: f32[128,2], index: 0, kind: input, shape index: {}]   ;;  %s2959_s1 = inlined_call_operand.vmem [shape: s32[128,1], index: 1, kind: input, shape index: {}]   ;;  %s2960_s2 = inlined_call_operand.vmem [shape: f32[2,128], index: 2, kind: input, shape index: {}]   ;;  %s2961_s3 = inlined_call_operand.vmem [shape: s32[1,128], index: 3, kind: input, shape index: {}]   ;;  %s2962_s4 = inlined_call_operand.vmem [shape: f32[64,128], index: 4, kind: input, shape index: {}]   ;;  %s2963_s5 = inlined_call_operand.vmem [shape: bf16[128,64], index: 5, kind: input, shape index: {}]   ;;  %s2964_s6 = inlined_call_operand.vmem [shape: f32[1,128], index: 6, kind: input, shape index: {}]   ;;  %s2965_s7 = inlined_call_operand.vmem [shape: f32[64,128], index: 7, kind: input, shape index: {}]   ;;  %s2966_s8 = inlined_call_operand.vmem [shape: bf16[128,64], index: 8, kind: input, shape index: {}]   ;;  %s2967_s9 = inlined_call_operand.vmem [shape: f32[1,128], index: 9, kind: input, shape index: {}]   ;;  %s2968_s10 = inlined_call_operand.vmem [shape: f32[2,64], index: 10, kind: input, shape index: {}]   ;;  %s2969_s11 = inlined_call_operand.vmem [shape: f32[1,64], index: 11, kind: input, shape index: {}]   ;;  %s2970_s12 = inlined_call_operand.vmem [shape: f32[1,64], index: 12, kind: input, shape index: {}]   ;;  %s2971_s13 = inlined_call_operand.vmem [shape: f32[2,64], index: 13, kind: input, shape index: {}]   ;;  %s2972_s14 = inlined_call_operand.vmem [shape: f32[1,64], index: 14, kind: input, shape index: {}]   ;;  %s2973_s15 = inlined_call_operand.vmem [shape: f32[1,64], index: 15, kind: input, shape index: {}]   ;;  %s2974_s16 = inlined_call_operand.vmem [shape: f32[64,128], index: 16, kind: input, shape index: {}]   ;;  %s2975_s17 = inlined_call_operand.vmem [shape: f32[64,128], index: 17, kind: input, shape index: {}]   ;;  %s2976_s18 = inlined_call_operand.vmem [shape: f32[1,128], index: 18, kind: input, shape index: {}]   ;;  %s2977_s19 = inlined_call_operand.hbm [shape: f32[128,128], index: 19, kind: output, shape index: {}]  }
   0x1   :  { %2984 = sst [smem:[#allocation10_spill]] %s2958_s0 }
   0x2   :  { %2985 = sst [smem:[#allocation11_spill]] %s2959_s1 }
   0x3   :  { %2986 = sst [smem:[#allocation12_spill]] %s2960_s2 }
   0x4   :  { %2987 = sst [smem:[#allocation13_spill]] %s2961_s3 }
   0x5   :  { %24 = vsyncpa [#allocation3], 0 }
   0x6   :  { %26 = vsyncpa [#allocation3 + $0x1], 0  ;;  %s2415_s0 = smov 0   ;;  %s2417_s30 = smov 0  }
   0x7   :  { %s2419_s20 = smov 0   ;;  %s2421_s21 = smov 0  }
   0x8 LB: > { %2988 = sst [smem:[#allocation5_spill]] %s2295_s0  ;;  %s2436_s1 = sadd.s32 4294967295, %s2307_s21   ;;  %s2307_s21 = sphi %s2421_s21, %s3018_s21   ;;  %s2303_s20 = sphi %s2419_s20, %s3023_s20   ;;  %s2299_s30 = sphi %s2417_s30, %s3022_s30   ;;  %s2295_s0 = sphi %s2415_s0, %s3021_s0  }
   0x9   : > { %2989 = sst [smem:[#allocation6_spill]] %s2303_s20  ;;  %s1816_s22 = sadd.s32 4294967294, %s2307_s21  }
   0xa   : > { %s2440_s2 = sadd.s32 1, %s2307_s21   ;;  %s448_s23 = sadd.s32 1, %s2303_s20 }
   0xb   : > { %2990 = sst [smem:[#allocation7_spill]] %s2440_s2  ;;  %s445_s24 = ssub.s32 %s2307_s21, %s2440_s2 }
   0xc   : > { %p458_p0 = scmp.ne.s32.totalorder %s2303_s20, %s2299_s30  ;;  %p446_p1 = scmp.eq.s32.totalorder %s445_s24, 0 }
   0xd   : > { %p459_p2 = scmp.eq.s32.totalorder %s2436_s1, 3  ;;  %p464_p3 = scmp.ne.s32.totalorder %s2299_s30, %s2295_s0 }
   0xe   : > { %p465_p4 = scmp.eq.s32.totalorder %s1816_s22, 3  ;;  %p1819_p7 = scmp.ge.s32.totalorder %s2307_s21, 1 }
   0xf   : > { %s2451_s25 = scalar_select %p446_p1, %s2303_s20, %s448_s23  }
  0x10   : > { %p2453_p5 = por %p459_p2, %p458_p0  ;;  %p2457_p6 = por %p465_p4, %p464_p3 }
  0x11   : > { %2991 = sst [smem:[#allocation8_spill]] %s2451_s25  ;;  %p552_p8 = scmp.lt.s32.totalorder %s2307_s21, 5 }
  0x12   : > { %s2993_s26 = scalar_select %p2457_p6, 1, 0 }
  0x13   : > { %p553_p9 = pnand %p1819_p7, %p552_p8 }
  0x14   : > { %2994 = sst [smem:[#allocation9_spill]] %s2993_s26  ;;  %s1821_s27 = sshll.u32 (!%p553_p9), %s2436_s1, 2  ;;  %v2309_v0 = vmov (!%p553_p9), 0   ;;  %v2310_v3 = vmov (!%p553_p9), 1   ;;  %v808_v6 = vld [vmem:[%s2962_s4] sm:$0xff] (!%p553_p9)  ;;  %v809_v7 = vld [vmem:[%s2962_s4 + $0x8] sm:$0xff] (!%p553_p9)  ;;  %v657_v15 = vlaneseq (!%p553_p9) }
  0x15   : > { %556 = sbr.rel (%p553_p9) target bundleno = 1046 (0x416), region = 96  ;;  %2193 = vset.pattern.permute.xlu1 (!%p553_p9), %v2309_v0  ;;  %2191 = vset.pattern.permute.xlu0 (!%p553_p9), %v2309_v0  ;;  %p614_p10 = scmp.lt.s32.totalorder (!%p553_p9), %s1821_s27, 15  ;;  %v810_v8 = vld [vmem:[%s2962_s4 + $0x10] sm:$0xff] (!%p553_p9)  ;;  %v2079_v9 = vpack.c.bf16 (!%p553_p9), %v809_v7, %v808_v6  ;;  %v811_v10 = vld [vmem:[%s2962_s4 + $0x18] sm:$0xff] (!%p553_p9)  ;;  %v812_v12 = vld [vmem:[%s2962_s4 + $0x20] sm:$0xff] (!%p553_p9)  ;;  %vm762_vm0 = vcmask (!%p553_p9), 523264  }
  0x16   : > { %s2995_s23 = sld [smem:[#allocation10_spill]] (!%p553_p9)  ;;  %v2083_v11 = vpack.c.bf16 (!%p553_p9), %v811_v10, %v810_v8  ;;  %v813_v13 = vld [vmem:[%s2962_s4 + $0x28] sm:$0xff] (!%p553_p9)  ;;  %v658_v16 = vshrl.u32 (!%p553_p9), %v657_v15, 7  ;;  %s2996_s26 = sld [smem:[#allocation12_spill]] (!%p553_p9)  ;;  %v741_v21 = vld [vmem:[%s2968_s10] sm:$0x3] (!%p553_p9) }
  0x17   : > { %2080 = vmatprep.subr.bf16.mxu0 (!%p553_p9), %v2079_v9  ;;  %v2087_v14 = vpack.c.bf16 (!%p553_p9), %v813_v13, %v812_v12  ;;  %v1133_v27 = vld [vmem:[%s2971_s13] sm:$0x3] (!%p553_p9)  ;;  %s2998_s20 = sld [smem:[#allocation11_spill]] (!%p553_p9)  ;;  %s2999_s0 = sld [smem:[#allocation13_spill]] (!%p553_p9) }
  0x18   : > { %2082 = vmatpush3.bf16.msra.mxu0 (!%p553_p9), %v2079_v9  ;;  %v659_v17 = vsub.s32 (!%p553_p9), 0, %v658_v16  ;;  %v683_v20 = vsub.s32 (!%p553_p9), 1, %v658_v16  ;;  %s1882_s29 = sshll.u32 (!%p553_p9), %s2436_s1, 9 }
  0x19   : > { %2084 = vmatprep.subr.bf16.mxu0 (!%p553_p9), %v2083_v11 }
  0x1a   : > { %v745_v26 = vrot.slane (!%p553_p9), %v741_v21, %v659_v17  ;;  %v753_v29 = vrot.slane (!%p553_p9), %v741_v21, %v683_v20  ;;  %v1137_v30 = vrot.slane (!%p553_p9), %v1133_v27, %v659_v17  ;;  %v1145_v31 = vrot.slane (!%p553_p9), %v1133_v27, %v683_v20  ;;  %v1198_v27 = vld [vmem:[%s2965_s7] sm:$0xff] (!%p553_p9) }
  0x1c   : > { %s3025_s27 = smov (!%p614_p10, %s1821_s27), 15  ;;  %2086 = vmatpush3.bf16.msra.mxu0 %v2083_v11  ;;  %v635_v18 = vld [vmem:[%s2996_s26] sm:$0x3]  ;;  %s2915_s26 = scalar_lea.hbm %s2977_s19, %s1882_s29 }
  0x1d   : > { %s2978_s28 = sshll.u32 %s3025_s27, 3  ;;  %2088 = vmatprep.subr.bf16.mxu0 %v2087_v14  ;;  %v660_v19 = vrot.slane %v635_v18, %v659_v17  ;;  %v684_v28 = vrot.slane %v635_v18, %v683_v20 }
  0x1e   : > { %s617_s24 = scalar_lea.vmem %s2995_s23, %s2978_s28 }
  0x1f   : > { %v628_v1 = vld [vmem:[%s617_s24 + $0x8] sm:$0xff]  ;;  %v627_v2 = vld [vmem:[%s617_s24] sm:$0xff]  ;;  %v629_v4 = vld [vmem:[%s617_s24 + $0x10] sm:$0xff] }
  0x20   : > { %644 = vperm.xlu1 %2193, %v628_v1   ;;  %639 = vperm.xlu0 %2191, %v627_v2   ;;  %v630_v5 = vld [vmem:[%s617_s24 + $0x18] sm:$0xff]  ;;  %s2997_s24 = sshll.u32 %s3025_s27, 3  ;;  %s610_s27 = sand.u32 1, %s2299_s30  }
  0x21   : > { %2090 = vmatpush3.bf16.msra.mxu0 %v2087_v14  ;;  %s623_s2 = scalar_lea.vmem %s2998_s20, %s2997_s24  ;;  %s1820_s28 = sshll.u32 %s610_s27, 5 }
  0x22   : > { %s612_s24 = scalar_lea.vmem [#allocation2], %s1820_s28  ;;  %s2312_s28 = smov [#allocation2]  }
  0x23   : > { %s1742_s25 = sshll.u32 %s612_s24, 4  ;;  %s2249_s22 = sshll.u32 %s2312_s28, 4  ;;  %s2910_s25 = int_to_ptr.vmem [resolvable:$true] %s1742_s25  ;;  %s2250_s22 = int_to_ptr.vmem [resolvable:$false] %s2249_s22 }
  0x24   : > { %2194 = vset.pattern.permute.xlu1 %v2310_v3  ;;  %2192 = vset.pattern.permute.xlu0 %v2310_v3  ;;  %s2245_s1 = scalar_lea.vmem %s2910_s25, 512  ;;  %s2251_s23 = scalar_lea.vmem %s2250_s22, 1024 }
  0x25   : > { %670 = vperm.xlu1 %2194, %v628_v1   ;;  %666 = vperm.xlu0 %2192, %v627_v2   ;;  %p2246_p11 = scmp.ne.s32.totalorder %s2910_s25, %s2245_s1  ;;  %p2252_p0 = scmp.lt.s32.totalorder %s2910_s25, %s2250_s22 }
  0x26   : > { %p2253_p1 = scmp.lt.s32.totalorder %s2251_s23, %s2245_s1 }
  0x27   : > { %p2247_p12 = pnand %p2246_p11, %p2453_p5 }
  0x28   : > { %p2254_p2 = por %p2253_p1, %p2252_p0 }
  0x29   : > { %2195 = vset.pattern.permute.xlu1 %v2309_v0  ;;  %674 = vperm.xlu0 %2192, %v629_v4   ;;  %p2248_p13 = pneg %p2247_p12 }
  0x2a   : > { %649 = vperm.xlu1 %2195, %v629_v4  }
  0x2b   : > { %p2255_p3 = pnand %p2254_p2, %p2248_p13 }
  0x2d   : > { %678 = vperm.xlu0 %2192, %v630_v5  }
  0x2e   : > { %654 = vperm.xlu1 %2195, %v630_v5  }
  0x31   : > { %2196 = vset.pattern.permute.xlu0 %v2309_v0 }
  0x9f   : > { %v640_v22 = vpop.permute.xlu0 %639  ;;  %v645_v23 = vpop.permute.xlu1 %644 }
  0xa0   : > { %v661_v24 = vsub.f32 %v640_v22, %v660_v19  ;;  %v662_v25 = vsub.f32 %v645_v23, %v660_v19  ;;  %v747_v34 = vmul.f32 %v745_v26, %v645_v23  ;;  %v746_v38 = vmul.f32 %v745_v26, %v640_v22 }
  0xa1   : > { %v1138_v42 = vmul.f32 %v1137_v30, %v640_v22  ;;  %v1139_v8 = vmul.f32 %v1137_v30, %v645_v23  ;;  %v814_v23 = vld [vmem:[%s2962_s4 + $0x30] sm:$0xff] }
  0xa2   : > { %v690_v47 = vmul.f32 %v662_v25, %v662_v25  ;;  %v689_v52 = vmul.f32 %v661_v24, %v661_v24  ;;  %v815_v24 = vld [vmem:[%s2962_s4 + $0x38] sm:$0xff] }
  0xa4   : > { %v671_v32 = vpop.permute.xlu1 %670  ;;  %v667_v33 = vpop.permute.xlu0 %666 }
  0xa5   : > { %v686_v35 = vsub.f32 %v671_v32, %v684_v28  ;;  %v755_v36 = vmul.f32 %v753_v29, %v671_v32  ;;  %v685_v37 = vsub.f32 %v667_v33, %v684_v28  ;;  %v754_v39 = vmul.f32 %v753_v29, %v667_v33 }
  0xa6   : > { %v1146_v44 = vmul.f32 %v1145_v31, %v667_v33  ;;  %v1147_v56 = vmul.f32 %v1145_v31, %v671_v32 }
  0xa7   : > { %v694_v40 = vmul.f32 %v686_v35, %v686_v35  ;;  %v2499_v41 = vadd.f32 %v755_v36, %v747_v34  ;;  %v693_v43 = vmul.f32 %v685_v37, %v685_v37  ;;  %v2501_v46 = vadd.f32 %v754_v39, %v746_v38  ;;  %v1200_v36 = vld [vmem:[%s2965_s7 + $0x10] sm:$0xff]  ;;  %v1201_v37 = vld [vmem:[%s2965_s7 + $0x18] sm:$0xff] }
  0xa8   : > { %v675_v45 = vpop.permute.xlu0 %674  ;;  %v2509_v62 = vadd.f32 %v1146_v44, %v1138_v42  ;;  %v2520_v15 = vadd.f32 %v1147_v56, %v1139_v8  ;;  %v1202_v44 = vld [vmem:[%s2965_s7 + $0x20] sm:$0xff] }
  0xa9   : > { %v687_v48 = vsub.f32 %v675_v45, %v684_v28  ;;  %v756_v49 = vmul.f32 %v753_v29, %v675_v45  ;;  %v650_v50 = vpop.permute.xlu1 %649  ;;  %v766_v51 = vsel %vm762_vm0, %v2499_v41, 0.0  ;;  %v763_v55 = vsel %vm762_vm0, %v2501_v46, 0.0 }
  0xaa   : > { %v663_v53 = vsub.f32 %v650_v50, %v660_v19  ;;  %v748_v54 = vmul.f32 %v745_v26, %v650_v50  ;;  %767 = vadd.xlane.f32.xlu0 %v766_v51  ;;  %764 = vadd.xlane.f32.xlu1 %v763_v55  ;;  %v2507_v58 = vadd.f32 %v694_v40, %v690_v47  ;;  %v1154_v13 = vsel %vm762_vm0, %v2509_v62, 0.0  ;;  %v1205_v55 = vld [vmem:[%s2965_s7 + $0x38] sm:$0xff] }
  0xab   : > { %v695_v57 = vmul.f32 %v687_v48, %v687_v48  ;;  %v2511_v63 = vadd.f32 %v693_v43, %v689_v52  ;;  %v1148_v0 = vmul.f32 %v1145_v31, %v675_v45  ;;  %v1140_v1 = vmul.f32 %v1137_v30, %v650_v50  ;;  %v1203_v45 = vld [vmem:[%s2965_s7 + $0x28] sm:$0xff] }
  0xac   : > { %v691_v59 = vmul.f32 %v663_v53, %v663_v53  ;;  %v679_v60 = vpop.permute.xlu0 %678  ;;  %v760_v61 = vadd.f32 %v756_v49, %v748_v54  ;;  %v1157_v21 = vsel %vm762_vm0, %v2520_v15, 0.0  ;;  %v2099_v43 = vpack.c.bf16 %v1201_v37, %v1200_v36  ;;  %v1204_v54 = vld [vmem:[%s2965_s7 + $0x30] sm:$0xff]  ;;  %v2200_v36 = vld [vmem:[%s2966_s8] sm:$0xff]   ;;  %v2201_v37 = vld [vmem:[%s2963_s5 + $0x18] sm:$0xff]  }
  0xad   : > { %v688_v2 = vsub.f32 %v679_v60, %v684_v28  ;;  %v757_v3 = vmul.f32 %v753_v29, %v679_v60  ;;  %v655_v4 = vpop.permute.xlu1 %654  ;;  %v2518_v14 = vadd.f32 %v1148_v0, %v1140_v1  ;;  %v1149_v16 = vmul.f32 %v1145_v31, %v679_v60  ;;  %v1199_v28 = vld [vmem:[%s2965_s7 + $0x8] sm:$0xff] }
  0xae   : > { %v664_v5 = vsub.f32 %v655_v4, %v660_v19  ;;  %v749_v6 = vmul.f32 %v745_v26, %v655_v4  ;;  %v769_v7 = vsel %vm762_vm0, %v760_v61, 0.0  ;;  %v2514_v10 = vadd.f32 %v695_v57, %v691_v59 }
  0xaf   : > { %v696_v9 = vmul.f32 %v688_v2, %v688_v2  ;;  %770 = vadd.xlane.f32.xlu0 %v769_v7  ;;  %v1141_v17 = vmul.f32 %v1137_v30, %v655_v4  ;;  %v1160_v20 = vsel %vm762_vm0, %v2518_v14, 0.0  ;;  %v2091_v26 = vpack.c.bf16 %v815_v24, %v814_v23 }
  0xb0   : > { %v692_v11 = vmul.f32 %v664_v5, %v664_v5  ;;  %v761_v12 = vadd.f32 %v757_v3, %v749_v6  ;;  %v2095_v29 = vpack.c.bf16 %v1199_v28, %v1198_v27  ;;  %v2103_v51 = vpack.c.bf16 %v1203_v45, %v1202_v44  ;;  %v631_v27 = vld [vmem:[%s623_s2] sm:$0xff]  ;;  %v2207_v44 = vld [vmem:[%s2963_s5 + $0x30] sm:$0xff]  }
  0xb1   : > { %v2529_v22 = vadd.f32 %v1149_v16, %v1141_v17  ;;  %2092 = vmatprep.subr.bf16.mxu0 %v2091_v26  ;;  %v2107_v1 = vpack.c.bf16 %v1205_v55, %v1204_v54  ;;  %v2208_v45 = vld [vmem:[%s2966_s8 + $0x20] sm:$0xff]   ;;  %vm722_vm1 = vcmp.le.f32.partialorder %v2507_v58, 2.25  ;;  %vm1114_vm3 = vcmp.le.f32.partialorder %v2507_v58, 6.25 }
  0xb2   : > { %v772_v18 = vsel %vm762_vm0, %v761_v12, 0.0  ;;  %v2523_v19 = vadd.f32 %v696_v9, %v692_v11  ;;  %2094 = vmatpush3.bf16.msra.mxu0 %v2091_v26  ;;  %v633_v26 = vld [vmem:[%s623_s2 + $0x10] sm:$0xff]  ;;  %vm723_vm7 = vcmp.le.f32.partialorder %v2514_v10, 2.25  ;;  %vm721_vm10 = vcmp.le.f32.partialorder %v2511_v63, 2.25 }
  0xb3   : > { %1155 = vadd.xlane.f32.xlu0 %v1154_v13  ;;  %773 = vadd.xlane.f32.xlu1 %v772_v18  ;;  %v1163_v25 = vsel %vm762_vm0, %v2529_v22, 0.0  ;;  %vm1113_vm11 = vcmp.le.f32.partialorder %v2511_v63, 6.25  ;;  %vm1115_vm14 = vcmp.le.f32.partialorder %v2514_v10, 6.25  ;;  %v1512_v63 = vld [vmem:[%s2975_s17 + $0x8] sm:$0xff] }
  0xb4   : > { %2096 = vmatprep.subr.bf16.mxu0 %v2095_v29 }
  0xb7   : > { %1161 = vadd.xlane.f32.xlu0 %v1160_v20  ;;  %1158 = vadd.xlane.f32.xlu1 %v1157_v21 }
  0xbb   : > { %1164 = vadd.xlane.f32.xlu1 %v1163_v25  ;;  %v632_v25 = vld [vmem:[%s623_s2 + $0x8] sm:$0xff] }
 0x137   : > { %v768_v30 = vpop.xlane.xlu0 %767  ;;  %v765_v31 = vpop.xlane.xlu1 %764 }
 0x138   : > { %v777_v32 = vmul.f32 0.015625, %v768_v30  ;;  %v776_v33 = vmul.f32 0.015625, %v765_v31  ;;  %v2197_v30 = vld [vmem:[%s2963_s5] sm:$0xff]   ;;  %v2198_v31 = vld [vmem:[%s2963_s5 + $0x8] sm:$0xff]  }
 0x139   : > { %1973 = vmatprep.subr.bf16.mxu1 %v2197_v30 }
 0x13a   : > { %v2546_v34 = vsub.f32 %v2499_v41, %v777_v32  ;;  %v2549_v35 = vsub.f32 %v2501_v46, %v776_v33  ;;  %1974 = vmatpush3.bf16.msra.mxu1 %v2197_v30  ;;  %v634_v32 = vld [vmem:[%s623_s2 + $0x18] sm:$0xff]  ;;  %v2199_v33 = vld [vmem:[%s2963_s5 + $0x10] sm:$0xff]  }
 0x13b   : > { %1975 = vmatprep.subr.bf16.mxu1 %v2198_v31 }
 0x13c   : > { %v805_v38 = vmul.f32 -0.03125, %v2546_v34  ;;  %v771_v39 = vpop.xlane.xlu0 %770  ;;  %v804_v42 = vmul.f32 -0.03125, %v2549_v35  ;;  %v784_v13 = vmul.f32 %v2549_v35, %v2549_v35  ;;  %v785_v18 = vmul.f32 %v2546_v34, %v2546_v34 }
 0x13d   : > { %v778_v40 = vmul.f32 0.015625, %v771_v39  ;;  %v2203_v39 = vld [vmem:[%s2963_s5 + $0x20] sm:$0xff]  }
 0x13e   : > { %1967 = vmatprep.mubr.msk.f32.mxu0 %vm762_vm0, %v804_v42  ;;  %v788_v20 = vsel %vm762_vm0, %v784_v13, 0.0  ;;  %v791_v23 = vsel %vm762_vm0, %v785_v18, 0.0  ;;  %1976 = vmatpush3.bf16.msra.mxu1 %v2198_v31  ;;  %v2205_v42 = vld [vmem:[%s2963_s5 + $0x28] sm:$0xff]  }
 0x13f   : > { %v2559_v41 = vsub.f32 %v760_v61, %v778_v40  ;;  %1968 = vmatmul.mubr.msk.f32.vlgmr.msra.gmra.mrb[0].mxu0 %vm762_vm0, %v805_v38  ;;  %1977 = vmatprep.subr.bf16.mxu1 %v2199_v33  ;;  %v2202_v38 = vld [vmem:[%s2966_s8 + $0x8] sm:$0xff]   ;;  %v2204_v40 = vld [vmem:[%s2966_s8 + $0x10] sm:$0xff]  }
 0x140   : > { %v774_v46 = vpop.xlane.xlu1 %773  ;;  %v1156_v47 = vpop.xlane.xlu0 %1155  ;;  %2098 = vmatpush3.bf16.msra.mxu0 %v2095_v29 }
 0x141   : > { %v806_v48 = vmul.f32 -0.03125, %v2559_v41  ;;  %v779_v49 = vmul.f32 0.015625, %v774_v46  ;;  %v1166_v50 = vmul.f32 0.015625, %v1156_v47  ;;  %2100 = vmatprep.subr.bf16.mxu0 %v2099_v43  ;;  %v786_v21 = vmul.f32 %v2559_v41, %v2559_v41  ;;  %v2209_v46 = vld [vmem:[%s2963_s5 + $0x38] sm:$0xff]   ;;  %v2210_v47 = vld [vmem:[%s2966_s8 + $0x28] sm:$0xff]  }
 0x142   : > { %1978 = vmatpush3.bf16.msra.mxu1 %v2199_v33 }
 0x143   : > { %v2570_v52 = vsub.f32 %v761_v12, %v779_v49  ;;  %v2573_v53 = vsub.f32 %v2509_v62, %v1166_v50  ;;  %1970 = vmatprep.mubr.msk.f32.mxu0 %vm762_vm0, %v806_v48  ;;  %v794_v24 = vsel %vm762_vm0, %v786_v21, 0.0  ;;  %1979 = vmatprep.subr.bf16.mxu1 %v2201_v37  ;;  %v2211_v48 = vld [vmem:[%s2966_s8 + $0x30] sm:$0xff]   ;;  %v2212_v49 = vld [vmem:[%s2966_s8 + $0x38] sm:$0xff]  }
 0x144   : > { %v1159_v56 = vpop.xlane.xlu1 %1158  ;;  %v1162_v57 = vpop.xlane.xlu0 %1161  ;;  %2102 = vmatpush3.bf16.msra.mxu0 %v2099_v43  ;;  %v2206_v43 = vld [vmem:[%s2966_s8 + $0x18] sm:$0xff]  }
 0x145   : > { %v807_v59 = vmul.f32 -0.03125, %v2570_v52  ;;  %v1194_v60 = vmul.f32 -0.03125, %v2573_v53  ;;  %v1167_v61 = vmul.f32 0.015625, %v1159_v56  ;;  %v1168_v62 = vmul.f32 0.015625, %v1162_v57  ;;  %2104 = vmatprep.subr.bf16.mxu0 %v2103_v51 }
 0x146   : > { %v1174_v0 = vmul.f32 %v2573_v53, %v2573_v53  ;;  %v787_v28 = vmul.f32 %v2570_v52, %v2570_v52  ;;  %1980 = vmatpush3.bf16.msra.mxu1 %v2201_v37 }
 0x147   : > { %v2587_v2 = vsub.f32 %v2520_v15, %v1167_v61  ;;  %v2590_v3 = vsub.f32 %v2518_v14, %v1168_v62  ;;  %1971 = vmatmul.mubr.msk.f32.gmra.mrb[2].mxu0 %vm762_vm0, %v807_v59  ;;  %1981 = vmatprep.subr.bf16.mxu1 %v2203_v39  ;;  %v2687_v59 = vld [vmem:[%s2999_s0] ss:$0 sm:$0xff]  ;;  %s2917_s0 = scalar_lea.sflag [#allocation3], %s610_s27 }
 0x148   : > { %v1165_v4 = vpop.xlane.xlu1 %1164  ;;  %2009 = vmatprep.mubr.msk.f32.mxu0 %vm762_vm0, %v1194_v60  ;;  %v1178_v5 = vsel %vm762_vm0, %v1174_v0, 0.0  ;;  %2106 = vmatpush3.bf16.msra.mxu0 %v2103_v51  ;;  %v797_v29 = vsel %vm762_vm0, %v787_v28, 0.0 }
 0x149   : > { %v1169_v6 = vmul.f32 0.015625, %v1165_v4  ;;  %1179 = vadd.xlane.f32.xlu0 %v1178_v5  ;;  %v1175_v7 = vmul.f32 %v2587_v2, %v2587_v2  ;;  %2108 = vmatprep.subr.bf16.mxu0 %v2107_v1  ;;  %v1176_v8 = vmul.f32 %v2590_v3, %v2590_v3  ;;  %v1195_v15 = vmul.f32 -0.03125, %v2587_v2 }
 0x14a   : > { %v1196_v16 = vmul.f32 -0.03125, %v2590_v3  ;;  %1982 = vmatpush3.bf16.msra.mxu1 %v2203_v39 }
 0x14b   : > { %v2600_v9 = vsub.f32 %v2529_v22, %v1169_v6  ;;  %v1181_v11 = vsel %vm762_vm0, %v1175_v7, 0.0  ;;  %v1184_v12 = vsel %vm762_vm0, %v1176_v8, 0.0  ;;  %1983 = vmatprep.subr.bf16.mxu1 %v2205_v42  ;;  %v1514_v7 = vld [vmem:[%s2975_s17 + $0x18] sm:$0xff] }
 0x14c   : > { %1182 = vadd.xlane.f32.xlu1 %v1181_v11  ;;  %2110 = vmatpush3.bf16.msra.mxu0 %v2107_v1  ;;  %v2311_v1 = vmov 0.0   ;;  %v1511_v11 = vld [vmem:[%s2975_s17] sm:$0xff] }
 0x14d   : > { %1185 = vadd.xlane.f32.xlu0 %v1184_v12  ;;  %v1177_v14 = vmul.f32 %v2600_v9, %v2600_v9  ;;  %v1197_v22 = vmul.f32 -0.03125, %v2600_v9  ;;  %2015 = vmatprep.subr.bf16.mxu0 %v2200_v36 }
 0x14e   : > { %1984 = vmatpush3.bf16.msra.mxu1 %v2205_v42 }
 0x14f   : > { %v1187_v17 = vsel %vm762_vm0, %v1177_v14, 0.0  ;;  %2010 = vmatmul.mubr.msk.f32.vlgmr.msra.gmra.mrb[4].mxu0 %vm762_vm0, %v1195_v15  ;;  %1985 = vmatprep.subr.bf16.mxu1 %v2207_v44 }
 0x150   : > { %1188 = vadd.xlane.f32.xlu1 %v1187_v17  ;;  %2012 = vmatprep.mubr.msk.f32.mxu0 %vm762_vm0, %v1196_v16  ;;  %v1830_v17 = vld [vmem:[%s2964_s6] ss:$0 sm:$0xff] }
 0x151   : > { %789 = vadd.xlane.f32.xlu0 %v788_v20  ;;  %2016 = vmatpush3.bf16.msra.mxu0 %v2200_v36 }
 0x152   : > { %2017 = vmatprep.subr.bf16.mxu0 %v2202_v38  ;;  %1986 = vmatpush3.bf16.msra.mxu1 %v2207_v44 }
 0x153   : > { %2013 = vmatmul.mubr.msk.f32.gmra.mrb[6].mxu0 %vm762_vm0, %v1197_v22  ;;  %1987 = vmatprep.subr.bf16.mxu1 %v2209_v46 }
 0x154   : > { %792 = vadd.xlane.f32.xlu1 %v791_v23 }
 0x155   : > { %795 = vadd.xlane.f32.xlu0 %v794_v24  ;;  %2018 = vmatpush3.bf16.msra.mxu0 %v2202_v38 }
 0x156   : > { %2019 = vmatprep.subr.bf16.mxu0 %v2204_v40  ;;  %1988 = vmatpush3.bf16.msra.mxu1 %v2209_v46  ;;  %v1516_v46 = vld [vmem:[%s2975_s17 + $0x28] sm:$0xff] }
 0x159   : > { %2020 = vmatpush3.bf16.msra.mxu0 %v2204_v40 }
 0x15a   : > { %2021 = vmatprep.subr.bf16.mxu0 %v2206_v43 }
 0x15d   : > { %2022 = vmatpush3.bf16.msra.mxu0 %v2206_v43 }
 0x15e   : > { %2023 = vmatprep.subr.bf16.mxu0 %v2208_v45 }
 0x161   : > { %2024 = vmatpush3.bf16.msra.mxu0 %v2208_v45 }
 0x162   : > { %2025 = vmatprep.subr.bf16.mxu0 %v2210_v47 }
 0x165   : > { %705 = vperm.xlu1 %2195, %v632_v25   ;;  %2026 = vmatpush3.bf16.msra.mxu0 %v2210_v47  ;;  %v1851_v47 = vld [vmem:[%s2967_s9] ss:$0 sm:$0xff] }
 0x166   : > { %2027 = vmatprep.subr.bf16.mxu0 %v2211_v48 }
 0x169   : > { %708 = vperm.xlu1 %2195, %v633_v26   ;;  %2028 = vmatpush3.bf16.msra.mxu0 %v2211_v48 }
 0x16a   : > { %2029 = vmatprep.subr.bf16.mxu0 %v2212_v49 }
 0x16b   : > { %702 = vperm.xlu0 %2196, %v631_v27  }
 0x16d   : > { %2030 = vmatpush3.bf16.msra.mxu0 %v2212_v49  ;;  %v1518_v49 = vld [vmem:[%s2975_s17 + $0x38] sm:$0xff] }
 0x18d   : > { %798 = vadd.xlane.f32.xlu1 %v797_v29 }
 0x19e   : > { %711 = vperm.xlu1 %2195, %v634_v32  }
 0x1d6   : > { %v2678_v50 = vpop.xlane.xlu0 %1179 }
 0x1d7   : > { %v1190_v43 = vmul.f32 0.015625, %v2678_v50 }
 0x1d9   : > { %v1183_v51 = vpop.xlane.xlu1 %1182 }
 0x1da   : > { %v2680_v54 = vpop.xlane.xlu0 %1185  ;;  %v1191_v39 = vmul.f32 0.015625, %v1183_v51 }
 0x1dd   : > { %v2682_v55 = vpop.xlane.xlu1 %1188 }
 0x1de   : > { %v790_v56 = vpop.xlane.xlu0 %789  ;;  %v1193_v51 = vmul.f32 0.015625, %v2682_v55 }
 0x1df   : > { %v800_v16 = vmul.f32 0.015625, %v790_v56 }
 0x1e1   : > { %v793_v57 = vpop.xlane.xlu1 %792  ;;  %v920_v21 = vadd.f32 %v1830_v17, %v800_v16 }
 0x1e2   : > { %v796_v61 = vpop.xlane.xlu0 %795  ;;  %v801_v15 = vmul.f32 0.015625, %v793_v57  ;;  %v1192_v57 = vmul.f32 0.015625, %v2680_v54 }
 0x1e3   : > { %v802_v25 = vmul.f32 0.015625, %v796_v61  ;;  %v1310_v61 = vadd.f32 %v1851_v47, %v1190_v43  ;;  %v2111_v43 = vpack.c.bf16 %v1512_v63, %v1511_v11 }
 0x1e4   : > { %v921_v18 = vadd.f32 %v1830_v17, %v801_v15 }
 0x1e5   : > { %v706_v60 = vpop.permute.xlu1 %705  ;;  %v922_v32 = vadd.f32 %v1830_v17, %v802_v25  ;;  %2112 = vmatprep.subr.bf16.mxu1 %v2111_v43 }
 0x1e6   : > { %vm718_vm2 = vcmp.eq.s32.totalorder %v706_v60, %v2687_v59 }
 0x1e7   : > { %vm2692_vm4 = vmand %vm722_vm1, %vm718_vm2 }
 0x1e8   : > { %vm2696_vm5 = vmand %vm1114_vm3, %vm718_vm2  ;;  %v2703_v4 = vsel %vm2692_vm4, 1.0, %v2311_v1  ;;  %vm724_vm2 = vcmp.le.f32.partialorder %v2523_v19, 2.25 }
 0x1e9   : > { %v709_v5 = vpop.permute.xlu1 %708  ;;  %v1122_v6 = vsel %vm2696_vm5, 1.0, %v2311_v1 }
 0x1ea   : > { %vm719_vm6 = vcmp.eq.s32.totalorder %v709_v5, %v2687_v59  ;;  %1127 = vadd.xlane.f32.xlu0 %v1122_v6  ;;  %v703_v58 = vpop.permute.xlu0 %702 }
 0x1eb   : > { %vm717_vm8 = vcmp.eq.s32.totalorder %v703_v58, %v2687_v59  ;;  %vm2713_vm9 = vmand %vm723_vm7, %vm719_vm6 }
 0x1ec   : > { %vm2719_vm12 = vmand %vm721_vm10, %vm717_vm8  ;;  %v731_v10 = vsel %vm2713_vm9, 1.0, %v2311_v1 }
 0x1ed   : > { %vm2723_vm13 = vmand %vm1113_vm11, %vm717_vm8  ;;  %v729_v12 = vsel %vm2719_vm12, 1.0, %v2311_v1 }
 0x1ee   : > { %v1121_v13 = vsel %vm2723_vm13, 1.0, %v2311_v1  ;;  %733 = vadd.xlane.f32.xlu0 %v729_v12  ;;  %vm1839_vm15 = vmpackc.low %vm2692_vm4, %vm2719_vm12 }
 0x1ef   : > { %vm2740_vm1 = vmand %vm1115_vm14, %vm719_vm6  ;;  %1125 = vadd.xlane.f32.xlu1 %v1121_v13  ;;  %vm1116_vm6 = vcmp.le.f32.partialorder %v2523_v19, 6.25  ;;  %v1311_v19 = vadd.f32 %v1851_v47, %v1191_v39 }
 0x1f0   : > { %v1123_v14 = vsel %vm2740_vm1, 1.0, %v2311_v1  ;;  %vm1860_vm10 = vmpackc.low %vm2696_vm5, %vm2723_vm13 }
 0x1f2   : > { %737 = vadd.xlane.f32.xlu0 %v731_v10 }
 0x1f3   : > { %1129 = vadd.xlane.f32.xlu1 %v1123_v14  ;;  %v1313_v14 = vadd.f32 %v1851_v47, %v1193_v51  ;;  %v1503_v51 = vld [vmem:[%s2974_s16] sm:$0xff] }
 0x212   : > { %v1969_v20 = vpop.f32.mrb[0].mxu0 }
 0x213   : > { %v925_v22 = vadd.f32 %v1969_v20, %v921_v18  ;;  %v894_v23 = vpop.f32.mrb[1].mxu0 }
 0x214   : > { %v924_v24 = vadd.f32 %v920_v21, %v894_v23 }
 0x215   : > { %v929_v26 = vmax.f32 %v925_v22, 0.0 }
 0x216   : > { %v928_v27 = vmax.f32 %v924_v24, 0.0 }
 0x217   : > { %v933_v28 = vadd.f32 1e-05, %v929_v26 }
 0x218   : > { %v932_v29 = vadd.f32 1e-05, %v928_v27 }
 0x219   : > { %2213 = vrsqrt.f32 %v933_v28 }
 0x21a   : > { %v799_v30 = vpop.xlane.xlu1 %798  ;;  %v1972_v31 = vpop.f32.mrb[2].mxu0  ;;  %2215 = vrsqrt.f32 %v932_v29 }
 0x21b   : > { %v803_v33 = vmul.f32 0.015625, %v799_v30  ;;  %v904_v36 = vpop.f32.mrb[3].mxu0 }
 0x21c   : > { %v926_v37 = vadd.f32 %v922_v32, %v904_v36 }
 0x21d   : > { %v923_v38 = vadd.f32 %v1830_v17, %v803_v33  ;;  %v1312_v17 = vadd.f32 %v1851_v47, %v1192_v57 }
 0x21e   : > { %v930_v40 = vmax.f32 %v926_v37, 0.0  ;;  %v712_v42 = vpop.permute.xlu1 %711 }
 0x21f   : > { %v927_v44 = vadd.f32 %v1972_v31, %v923_v38  ;;  %vm720_vm3 = vcmp.eq.s32.totalorder %v712_v42, %v2687_v59 }
 0x220   : > { %v934_v45 = vadd.f32 1e-05, %v930_v40  ;;  %vm2757_vm7 = vmand %vm724_vm2, %vm720_vm3 }
 0x221   : > { %v931_v48 = vmax.f32 %v927_v44, 0.0  ;;  %vm2764_vm8 = vmand %vm1116_vm6, %vm720_vm3  ;;  %v732_v50 = vsel %vm2757_vm7, 1.0, %v2311_v1 }
 0x222   : > { %v1124_v56 = vsel %vm2764_vm8, 1.0, %v2311_v1  ;;  %v2011_v60 = vpop.f32.mrb[4].mxu0  ;;  %2217 = vrsqrt.f32 %v934_v45  ;;  %vm1863_vm11 = vmpackc.low %vm2764_vm8, %vm2740_vm1  ;;  %v1515_v45 = vld [vmem:[%s2975_s17 + $0x20] sm:$0xff] }
 0x223   : > { %v935_v59 = vadd.f32 1e-05, %v931_v48  ;;  %1131 = vadd.xlane.f32.xlu1 %v1124_v56  ;;  %v2214_v5 = vpop.eup %2213  ;;  %v1315_v6 = vadd.f32 %v2011_v60, %v1311_v19  ;;  %v1284_v58 = vpop.f32.mrb[5].mxu0  ;;  %v2119_v47 = vpack.c.bf16 %v1516_v46, %v1515_v45  ;;  %v1517_v48 = vld [vmem:[%s2975_s17 + $0x30] sm:$0xff]  ;;  %v1504_v19 = vld [vmem:[%s2974_s16 + $0x8] sm:$0xff] }
 0x224   : > { %v2216_v12 = vpop.eup %2215  ;;  %v1314_v13 = vadd.f32 %v1310_v61, %v1284_v58  ;;  %v941_v55 = vsel %vm2692_vm4, %v2214_v5, 0.0  ;;  %vm1842_vm4 = vmpackc.low %vm2757_vm7, %vm2713_vm9  ;;  %v2840_v56 = vpack.c.bf16 %v1504_v19, %v1503_v51  ;;  %v1505_v46 = vld [vmem:[%s2974_s16 + $0x10] sm:$0xff] }
 0x225   : > { %2219 = vrsqrt.f32 %v935_v59  ;;  %v1319_v10 = vmax.f32 %v1315_v6, 0.0  ;;  %v1840_v15 = vpack.c.bf16 %v2214_v5, %v2216_v12  ;;  %v940_v54 = vsel %vm2719_vm12, %v2216_v12, 0.0 }
 0x226   : > { %v1318_v1 = vmax.f32 %v1314_v13, 0.0  ;;  %v2014_v16 = vpop.f32.mrb[6].mxu0 }
 0x227   : > { %v1323_v18 = vadd.f32 1e-05, %v1319_v10  ;;  %v1317_v20 = vadd.f32 %v2014_v16, %v1313_v14  ;;  %v1294_v21 = vpop.f32.mrb[7].mxu0  ;;  %1989 = vmatprep.mubr.msk.bf16.mxu1 %vm1839_vm15, %v1840_v15 }
 0x228   : > { %v1322_v22 = vadd.f32 1e-05, %v1318_v1  ;;  %v1316_v23 = vadd.f32 %v1312_v17, %v1294_v21 }
 0x229   : > { %2221 = vrsqrt.f32 %v1323_v18  ;;  %v1321_v24 = vmax.f32 %v1317_v20, 0.0 }
 0x22a   : > { %2223 = vrsqrt.f32 %v1322_v22  ;;  %v1320_v25 = vmax.f32 %v1316_v23, 0.0  ;;  %v1866_v23 = vld [vmem:[%s2972_s14] ss:$0 sm:$0xff] }
 0x22b   : > { %v1325_v26 = vadd.f32 1e-05, %v1321_v24 }
 0x22c   : > { %v1324_v27 = vadd.f32 1e-05, %v1320_v25  ;;  %v2218_v28 = vpop.eup %2217 }
 0x22d   : > { %2225 = vrsqrt.f32 %v1325_v26  ;;  %v942_v0 = vsel %vm2713_vm9, %v2218_v28, 0.0 }
 0x22e   : > { %2227 = vrsqrt.f32 %v1324_v27 }
 0x22f   : > { %v2220_v29 = vpop.eup %2219 }
 0x230   : > { %v1843_v30 = vpack.c.bf16 %v2220_v29, %v2218_v28  ;;  %v943_v62 = vsel %vm2757_vm7, %v2220_v29, 0.0 }
 0x232   : > { %1990 = vmatmul.mubr.msk.bf16.vlgmr.msra.gmra.mrb[0].mxu1 %vm1842_vm4, %v1843_v30 }
 0x233   : > { %v2222_v8 = vpop.eup %2221  ;;  %2114 = vmatpush3.bf16.msra.mxu1 %v2111_v43 }
 0x234   : > { %v2224_v31 = vpop.eup %2223  ;;  %v1331_v32 = vsel %vm2696_vm5, %v2222_v8, 0.0 }
 0x235   : > { %1336 = vadd.xlane.f32.xlu1 %v1331_v32  ;;  %v1861_v33 = vpack.c.bf16 %v2222_v8, %v2224_v31  ;;  %v1330_v38 = vsel %vm2723_vm13, %v2224_v31, 0.0 }
 0x237   : > { %v2226_v36 = vpop.eup %2225  ;;  %2031 = vmatprep.mubr.msk.bf16.mxu0 %vm1860_vm10, %v1861_v33 }
 0x238   : > { %v2228_v37 = vpop.eup %2227  ;;  %v1333_v39 = vsel %vm2764_vm8, %v2226_v36, 0.0 }
 0x239   : > { %v1864_v40 = vpack.c.bf16 %v2226_v36, %v2228_v37  ;;  %1334 = vadd.xlane.f32.xlu1 %v1330_v38  ;;  %v1332_v42 = vsel %vm2740_vm1, %v2228_v37, 0.0 }
 0x23a   : > { %1338 = vadd.xlane.f32.xlu0 %v1332_v42 }
 0x23b   : > { %2032 = vmatmul.mubr.msk.bf16.vlgmr.msra.gmra.mrb[8].mxu0 %vm1863_vm11, %v1864_v40 }
 0x23d   : > { %735 = vadd.xlane.f32.xlu1 %v2703_v4  ;;  %v1513_v4 = vld [vmem:[%s2975_s17 + $0x10] sm:$0xff] }
 0x23e   : > { %944 = vadd.xlane.f32.xlu0 %v940_v54  ;;  %v2115_v44 = vpack.c.bf16 %v1514_v7, %v1513_v4 }
 0x240   : > { %2116 = vmatprep.subr.bf16.mxu1 %v2115_v44 }
 0x241   : > { %739 = vadd.xlane.f32.xlu1 %v732_v50  ;;  %2118 = vmatpush3.bf16.msra.mxu1 %v2115_v44  ;;  %v2123_v50 = vpack.c.bf16 %v1518_v49, %v1517_v48  ;;  %v1846_v49 = vld [vmem:[%s2970_s12] ss:$0 sm:$0xff] }
 0x242   : > { %948 = vadd.xlane.f32.xlu0 %v942_v0  ;;  %2120 = vmatprep.subr.bf16.mxu1 %v2119_v47 }
 0x245   : > { %1340 = vadd.xlane.f32.xlu1 %v1333_v39  ;;  %2122 = vmatpush3.bf16.msra.mxu1 %v2119_v47  ;;  %v1506_v47 = vld [vmem:[%s2974_s16 + $0x18] sm:$0xff] }
 0x246   : > { %2124 = vmatprep.subr.bf16.mxu1 %v2123_v50 }
 0x249   : > { %946 = vadd.xlane.f32.xlu1 %v941_v55  ;;  %2126 = vmatpush3.bf16.msra.mxu1 %v2123_v50 }
 0x24a   : > { %2128 = vmatprep.subr.bf16.mxu1 %v2840_v56 }
 0x24d   : > { %950 = vadd.xlane.f32.xlu1 %v943_v62 }
 0x277   : > { %v1128_v61 = vpop.xlane.xlu0 %1127 }
 0x27b   : > { %v734_v6 = vpop.xlane.xlu0 %733 }
 0x27c   : > { %v1126_v57 = vpop.xlane.xlu1 %1125 }
 0x27f   : > { %v738_v12 = vpop.xlane.xlu0 %737 }
 0x280   : > { %v1130_v59 = vpop.xlane.xlu1 %1129 }
 0x281   : > { %2229 = vrcp.f32 %v1130_v59 }
 0x282   : > { %2231 = vrcp.f32 %v1126_v57 }
 0x283   : > { %2233 = vrcp.f32 %v1128_v61 }
 0x28b   : > { %v2230_v8 = vpop.eup %2229 }
 0x28c   : > { %v2232_v33 = vpop.eup %2231 }
 0x28d   : > { %v2234_v39 = vpop.eup %2233 }
 0x2b0   : > { %v1132_v60 = vpop.xlane.xlu1 %1131 }
 0x2b1   : > { %2235 = vrcp.f32 %v1132_v60 }
 0x2b2   : > { %2237 = vrcp.f32 %v734_v6 }
 0x2bb   : > { %v2236_v0 = vpop.eup %2235 }
 0x2bc   : > { %v2238_v11 = vpop.eup %2237 }
 0x2c2   : > { %v1337_v5 = vpop.xlane.xlu1 %1336 }
 0x2c3   : > { %v1459_v28 = vmul.f32 %v1337_v5, %v2587_v2  ;;  %v1867_v2 = vld [vmem:[%s2973_s15] ss:$0 sm:$0xff]  ;;  %v2131_v5 = vpack.c.bf16 %v1506_v47, %v1505_v46 }
 0x2c6   : > { %v1335_v58 = vpop.xlane.xlu1 %1334 }
 0x2c7   : > { %v1339_v55 = vpop.xlane.xlu0 %1338  ;;  %v1458_v21 = vmul.f32 %v1335_v58, %v2573_v53 }
 0x2c8   : > { %v1460_v18 = vmul.f32 %v1339_v55, %v2590_v3  ;;  %v2860_v3 = vld [vmem:[%s2969_s11] ss:$0 sm:$0xff] }
 0x2ca   : > { %v736_v13 = vpop.xlane.xlu1 %735 }
 0x2cb   : > { %v945_v16 = vpop.xlane.xlu0 %944  ;;  %2239 = vrcp.f32 %v736_v13 }
 0x2cc   : > { %v1068_v20 = vmul.f32 %v945_v16, %v2549_v35  ;;  %2241 = vrcp.f32 %v738_v12  ;;  %v1507_v12 = vld [vmem:[%s2974_s16 + $0x20] sm:$0xff] }
 0x2ce   : > { %v740_v15 = vpop.xlane.xlu1 %739 }
 0x2cf   : > { %v949_v63 = vpop.xlane.xlu0 %948  ;;  %2243 = vrcp.f32 %v740_v15 }
 0x2d0   : > { %v1070_v19 = vmul.f32 %v949_v63, %v2559_v41  ;;  %v1508_v41 = vld [vmem:[%s2974_s16 + $0x28] sm:$0xff] }
 0x2d1   : > { %v2135_v15 = vpack.c.bf16 %v1508_v41, %v1507_v12 }
 0x2d2   : > { %v1341_v17 = vpop.xlane.xlu1 %1340 }
 0x2d3   : > { %v1461_v24 = vmul.f32 %v1341_v17, %v2600_v9 }
 0x2d5   : > { %v2240_v17 = vpop.eup %2239 }
 0x2d6   : > { %v947_v9 = vpop.xlane.xlu1 %946 }
 0x2d7   : > { %v1069_v48 = vmul.f32 %v947_v9, %v2546_v34 }
 0x2da   : > { %v951_v57 = vpop.xlane.xlu1 %950 }
 0x2db   : > { %v1071_v13 = vmul.f32 %v951_v57, %v2570_v52  ;;  %v1509_v52 = vld [vmem:[%s2974_s16 + $0x30] sm:$0xff] }
 0x305   : > { %v2843_v10 = vpop.f32.mrb[0].mxu1 }
 0x306   : > { %v1052_v14 = vpop.f32.mrb[1].mxu1  ;;  %v1074_v6 = vsub.f32 %v2843_v10, %v1070_v19 }
 0x307   : > { %v2845_v54 = vpop.f32.mrb[2].mxu1  ;;  %v1072_v25 = vsub.f32 %v1052_v14, %v1068_v20 }
 0x308   : > { %v2847_v1 = vpop.f32.mrb[3].mxu1  ;;  %v1075_v55 = vsub.f32 %v2845_v54, %v1071_v13  ;;  %v2242_v54 = vpop.eup %2241 }
 0x309   : > { %v1082_v36 = vmul.f32 %v2860_v3, %v1072_v25  ;;  %v1073_v59 = vsub.f32 %v2847_v1, %v1069_v48  ;;  %v1084_v1 = vmul.f32 %v2860_v3, %v1074_v6 }
 0x30b   : > { %v1094_v44 = vmul.f32 %v2238_v11, %v1082_v36  ;;  %v1083_v10 = vmul.f32 %v2860_v3, %v1073_v59 }
 0x30d   : > { %v1105_v34 = vadd.f32 %v1846_v49, %v1094_v44  ;;  %v1095_v20 = vmul.f32 %v2240_v17, %v1083_v10 }
 0x30e   : > { %v2033_v22 = vpop.f32.mrb[8].mxu0 }
 0x30f   : > { %v1464_v26 = vsub.f32 %v2033_v22, %v1460_v18  ;;  %v1442_v27 = vpop.f32.mrb[9].mxu0  ;;  %v1109_v16 = vmax.f32 %v1105_v34, 0.0  ;;  %v1085_v18 = vmul.f32 %v2860_v3, %v1075_v55  ;;  %v1096_v22 = vmul.f32 %v2242_v54, %v1084_v1 }
 0x310   : > { %v1462_v35 = vsub.f32 %v1442_v27, %v1458_v21  ;;  %v2034_v29 = vpop.f32.mrb[10].mxu0  ;;  %v1106_v25 = vadd.f32 %v1846_v49, %v1095_v20 }
 0x311   : > { %v1474_v53 = vmul.f32 %v1866_v23, %v1464_v26  ;;  %v1465_v30 = vsub.f32 %v2034_v29, %v1461_v24  ;;  %v1445_v62 = vpop.f32.mrb[11].mxu0  ;;  %v1107_v26 = vadd.f32 %v1846_v49, %v1096_v22  ;;  %v1876_v29 = vld [vmem:[%s2976_s18] ss:$0 sm:$0xff] }
 0x312   : > { %v1472_v31 = vmul.f32 %v1866_v23, %v1462_v35  ;;  %v1463_v32 = vsub.f32 %v1445_v62, %v1459_v28  ;;  %v1110_v28 = vmax.f32 %v1106_v25, 0.0 }
 0x313   : > { %v1486_v37 = vmul.f32 %v2230_v8, %v1474_v53  ;;  %v1475_v38 = vmul.f32 %v1866_v23, %v1465_v30  ;;  %v1111_v35 = vmax.f32 %v1107_v26, 0.0 }
 0x314   : > { %v1484_v40 = vmul.f32 %v2232_v33, %v1472_v31  ;;  %v1473_v42 = vmul.f32 %v1866_v23, %v1463_v32  ;;  %v2244_v23 = vpop.eup %2243 }
 0x315   : > { %v1487_v4 = vmul.f32 %v2236_v0, %v1475_v38  ;;  %v1497_v45 = vadd.f32 %v1867_v2, %v1486_v37  ;;  %v1097_v24 = vmul.f32 %v2244_v23, %v1085_v18 }
 0x316   : > { %v1495_v43 = vadd.f32 %v1867_v2, %v1484_v40  ;;  %v1485_v7 = vmul.f32 %v2234_v39, %v1473_v42 }
 0x317   : > { %v1498_v60 = vadd.f32 %v1867_v2, %v1487_v4  ;;  %v1501_v58 = vmax.f32 %v1497_v45, 0.0  ;;  %v1108_v27 = vadd.f32 %v1846_v49, %v1097_v24 }
 0x318   : > { %v1499_v50 = vmax.f32 %v1495_v43, 0.0  ;;  %v1496_v51 = vadd.f32 %v1867_v2, %v1485_v7 }
 0x319   : > { %v1502_v14 = vmax.f32 %v1498_v60, 0.0  ;;  %v1112_v3 = vmax.f32 %v1108_v27, 0.0 }
 0x31a   : > { %v1500_v61 = vmax.f32 %v1496_v51, 0.0  ;;  %2051 = vmatprep.mubr.msk.f32.mxu1 %vm762_vm0, %v1499_v50 }
 0x31c   : > { %2052 = vmatmul.mubr.msk.f32.vlgmr.msra.gmra.mrb[4].mxu1 %vm762_vm0, %v1500_v61 }
 0x31d   : > { %2130 = vmatpush3.bf16.msra.mxu1 %v2840_v56  ;;  %2054 = vmatprep.mubr.msk.f32.mxu1 %vm762_vm0, %v1501_v58  ;;  %v1510_v56 = vld [vmem:[%s2974_s16 + $0x38] sm:$0xff] }
 0x31e   : > { %2132 = vmatprep.subr.bf16.mxu1 %v2131_v5  ;;  %v2139_v21 = vpack.c.bf16 %v1510_v56, %v1509_v52 }
 0x320   : > { %2055 = vmatmul.mubr.msk.f32.gmra.mrb[6].mxu1 %vm762_vm0, %v1502_v14 }
 0x321   : > { %2134 = vmatpush3.bf16.msra.mxu1 %v2131_v5  ;;  %2073 = vmatprep.mubr.msk.f32.mxu1 %vm762_vm0, %v1109_v16 }
 0x322   : > { %2136 = vmatprep.subr.bf16.mxu1 %v2135_v15 }
 0x325   : > { %2138 = vmatpush3.bf16.msra.mxu1 %v2135_v15 }
 0x326   : > { %2140 = vmatprep.subr.bf16.mxu1 %v2139_v21 }
 0x329   : > { %2142 = vmatpush3.bf16.msra.mxu1 %v2139_v21 }
 0x32c   : > { %2074 = vmatmul.mubr.msk.f32.vlgmr.msra.gmra.mrb[4].mxu1 %vm762_vm0, %v1110_v28 }
 0x32d   : > { %2076 = vmatprep.mubr.msk.f32.mxu1 %vm762_vm0, %v1111_v35 }
 0x330   : > { %2077 = vmatmul.mubr.msk.f32.gmra.mrb[6].mxu1 %vm762_vm0, %v1112_v3 }
 0x3ff   : > { %v2075_v53 = vpop.f32.mrb[4].mxu1 }
 0x400   : > { %v1721_v30 = vadd.f32 %v2075_v53, %v1876_v29  ;;  %v1694_v62 = vpop.f32.mrb[5].mxu1 }
 0x401   : > { %v1720_v8 = vadd.f32 %v1876_v29, %v1694_v62 }
 0x402   : > { %1725 = vst [vmem:[%s612_s24 + $0x8] sm:$0xff] %v1721_v30 }
 0x403   : > { %1724 = vst [vmem:[%s612_s24] sm:$0xff] %v1720_v8  ;;  %v2078_v31 = vpop.f32.mrb[6].mxu1 }
 0x404   : > { %v1723_v32 = vadd.f32 %v2078_v31, %v1876_v29  ;;  %v1704_v33 = vpop.f32.mrb[7].mxu1 }
 0x405   : > { %v1722_v9 = vadd.f32 %v1876_v29, %v1704_v33 }
 0x406   : > { %1727 = vst [vmem:[%s612_s24 + $0x18] sm:$0xff] %v1723_v32 }
 0x407   : > { %1726 = vst [vmem:[%s612_s24 + $0x10] sm:$0xff] %v1722_v9 }
 0x408   : > { %2258 = shalt.err (!%p2255_p3)
}
 0x409   : > { %s2259_s27 = scalar_lea.hbm %s2915_s26, 512  ;;  %s2263_s20 = scalar_lea.hbm %s2977_s19, 2048 }
 0x40a   : > { %p2260_p4 = scmp.ne.s32.totalorder %s2915_s26, %s2259_s27  ;;  %p2264_p9 = scmp.lt.u32.totalorder %s2915_s26, %s2977_s19 }
 0x40b   : > { %p2265_p10 = scmp.lt.u32.totalorder %s2263_s20, %s2259_s27  ;;  %p2267_p12 = scmp.lt.u32.totalorder %s2259_s27, %s2915_s26 }
 0x40c   : > { %p2261_p7 = pnand %p2260_p4, %p2453_p5 }
 0x40d   : > { %p2266_p11 = por %p2265_p10, %p2264_p9 }
 0x40e   : > { %p2262_p8 = pneg %p2261_p7 }
 0x40f   : > { %p2268_p13 = por %p2267_p12, %p2266_p11 }
 0x411   : > { %p2269_p0 = pnand %p2268_p13, %p2262_p8 }
 0x413   : > { %2272 = shalt.err (!%p2269_p0)
}
 0x414   : > { %s2313_s1 = smov 128   ;;  %s2314_s22 = smov 8  }
 0x415   : > { %2147 = dma.vmem_to_hbm [thread:$0]  (%p2453_p5), %s2910_s25, 512, %s2915_s26, %s2917_s0, %s2313_s1, %s2313_s1, %s2314_s22  }
 0x416 PF: > { %s3016_s23 = sld [smem:[#allocation5_spill]]  ;;  %p2153_p1 = scmp.ge.s32.totalorder %s2307_s21, 2 }
 0x418   : > { %p2150_p2 = pnand %p2153_p1, %p2457_p6 }
 0x41c   : > { %s1757_s29 = sand.u32 1, %s3016_s23  }
 0x41d   : > { %s1758_s27 = scalar_lea.sflag [#allocation3], %s1757_s29 }
 0x41e   : > { %2290 = dma.done.wait (!%p2150_p2), %s1758_s27, 512  }
 0x41f   : > { %2292 = vsyncadd (!%p2150_p2), %s1758_s27, 4294966784  ;;  %s3018_s21 = sld [smem:[#allocation7_spill]]  ;;  %s3019_s20 = sld [smem:[#allocation6_spill]] }
 0x420   : > { %s3020_s2 = sld [smem:[#allocation8_spill]]  ;;  %s3021_s0 = smov %s2299_s30 }
 0x425   : > { %p29_p3 = scmp.ge.s32.totalorder %s3018_s21, 6   ;;  %s3022_s30 = smov %s3019_s20 }
 0x426   : > { %s3023_s20 = smov %s3020_s2 }
 0x427   :  { %31 = sbr.rel (!%p29_p3) target bundleno = 8 (0x8), region = 134 }
 0x42e   :  { %1763 = vsyncpa [#allocation3], 1 }
 0x42f   :  { %1765 = vsyncpa [#allocation3 + $0x1], 1 }

</bundles_post_ra>
